<compile_context>
chip_gen: v5e
topology: v5e:2x2
jax: 0.10.0
libtpu: 0.0.40
codegen_flags: <defaults>
</compile_context>

<pallas_src>
import functools

import jax
import jax.numpy as jnp
from jax.experimental import pallas as pl
from jax.experimental.pallas import tpu as pltpu

# Above the default scoped VMEM on v5e/v6e, safely under v7x's 64 MiB.
_VMEM_LIMIT_BYTES = 48 * 1024 * 1024


def _compiler_params(num_axes=1):
    return pltpu.CompilerParams(
        dimension_semantics=("parallel",) * num_axes,
        vmem_limit_bytes=_VMEM_LIMIT_BYTES,
    )


def _round_up(x, m):
    return (x + m - 1) // m * m


def _pick_tm(m):
    # Prefer big row tiles (amortize ~0.35 us/grid-step, mem-bound regime) but
    # aim for >= 4 grid steps so v7x megacore gets work and pipelining exists.
    for tm in (1024, 512, 256, 128):
        if m >= 4 * tm:
            return tm
    for tm in (512, 256, 128):
        if m >= 2 * tm:
            return tm
    return 128


def _pick_row_tile(h, w, nbatch):
    """Row tile R for the 3x3 conv: R | H, (R*W) % 8 == 0, R*W near 1024,
    and >= 4 total grid steps (batch x row tiles) when possible."""
    cands = [r for r in range(1, h + 1) if h % r == 0 and (r * w) % 8 == 0]
    if not cands:
        return h  # full image; block == full dim bypasses the (8,128) rule
    good = [r for r in cands if nbatch * (h // r) >= 4] or cands
    return min(good, key=lambda r: (abs(r * w - 1024), -r))


def _pad_rows(x2d, mp):
    m = x2d.shape[0]
    if mp == m:
        return x2d
    return jnp.pad(x2d, ((0, mp - m), (0, 0)))


# ---------------------------------------------------------------------------
# Pallas kernels (BN already folded into weights; only bias + SiLU in-kernel)
# ---------------------------------------------------------------------------
def _mm_bias_silu_kernel(x_ref, w_ref, b_ref, o_ref):
    """out = SiLU(x @ w + b); bf16 in, f32 accumulation, bf16 out."""
    y = jnp.dot(x_ref[...], w_ref[...],
                preferred_element_type=jnp.float32) + b_ref[...]
    o_ref[...] = (y * jax.nn.sigmoid(y)).astype(o_ref.dtype)


def _dual_mm_bias_silu_kernel(x_ref, w1_ref, b1_ref, w2_ref, b2_ref,
                              o1_ref, o2_ref):
    """Fused cbs1 + cbs2: one pass over x, two weight slabs, two outputs."""
    x = x_ref[...]
    y1 = jnp.dot(x, w1_ref[...],
                 preferred_element_type=jnp.float32) + b1_ref[...]
    o1_ref[...] = (y1 * jax.nn.sigmoid(y1)).astype(o1_ref.dtype)
    y2 = jnp.dot(x, w2_ref[...],
                 preferred_element_type=jnp.float32) + b2_ref[...]
    o2_ref[...] = (y2 * jax.nn.sigmoid(y2)).astype(o2_ref.dtype)


def _cbs3_concat_kernel(h_ref, i2_ref, b2_ref, wh_ref, wb_ref, b_ref, o_ref):
    """Fused cbs3: SiLU(cat([h + input2, branch2]) @ W + b), with the residual
    add distributed over the matmul (stays in f32 MXU accumulation)."""
    acc = jnp.dot(h_ref[...], wh_ref[...], preferred_element_type=jnp.float32)
    acc = acc + jnp.dot(i2_ref[...], wh_ref[...],
                        preferred_element_type=jnp.float32)
    acc = acc + jnp.dot(b2_ref[...], wb_ref[...],
                        preferred_element_type=jnp.float32)
    y = acc + b_ref[...]
    o_ref[...] = (y * jax.nn.sigmoid(y)).astype(o_ref.dtype)


def _conv3x3_bias_silu_res_kernel(x_ref, w_ref, b_ref, res_ref, o_ref,
                                  slab_ref, *, grouped):
    """Row-tiled 3x3 conv (stride 1, pad 1) + bias + SiLU + residual add.

    x_ref:    (H, W, C)        full image (bf16), resident across row tiles
    w_ref:    (3, 3C, cout)    grouped weights   [if grouped]
              (9, C,  cout)    per-tap weights   [if not grouped]
    b_ref:    (1, cout)        folded BN bias (f32)
    res_ref:  (R*W, cout)      residual row tile (bf16)
    o_ref:    (R*W, cout)      bf16 output row tile
    slab_ref: (R+2, W+2, C)    VMEM scratch: zero-padded input slab
    """
    H, W, C = x_ref.shape
    R = slab_ref.shape[0] - 2
    t = pl.program_id(1)
    nt = pl.num_programs(1)
    r0 = pl.multiple_of(t * R, R)

    # Build the zero-padded input slab for this row tile entirely in VMEM
    # (replaces the wrapper-side jnp.pad HBM pass).
    slab_ref[...] = jnp.zeros_like(slab_ref)
    slab_ref[1:R + 1, 1:W + 1, :] = x_ref[pl.ds(r0, R), :, :]

    @pl.when(t > 0)
    def _():
        slab_ref[0:1, 1:W + 1, :] = x_ref[pl.ds(r0 - 1, 1), :, :]

    @pl.when(t < nt - 1)
    def _():
        slab_ref[R + 1:R + 2, 1:W + 1, :] = x_ref[pl.ds(r0 + R, 1), :, :]

    slab = slab_ref[...]                               # (R+2, W+2, C)

    if grouped:
        # One K=3C dot per weight row (fills the 256-wide MXU on v6e/v7x).
        def dy_dot(dy):
            s = slab[dy:dy + R]                        # (R, W+2, C)
            b = jnp.concatenate([s[:, dx:dx + W, :] for dx in range(3)],
                                axis=-1)               # (R, W, 3C)
            return jnp.dot(b.reshape(R * W, 3 * C), w_ref[dy],
                           preferred_element_type=jnp.float32)

        acc = dy_dot(0)
        acc = acc + dy_dot(1)
        acc = acc + dy_dot(2)
    else:
        # Narrow-channel fallback: 9 K=C dots, acc seeded from the first dot.
        acc = None
        for dy in range(3):
            s = slab[dy:dy + R]
            for dx in range(3):
                p = s[:, dx:dx + W, :].reshape(R * W, C)
                d = jnp.dot(p, w_ref[dy * 3 + dx],
                            preferred_element_type=jnp.float32)
                acc = d if acc is None else acc + d

    y = acc + b_ref[...]
    y = y * jax.nn.sigmoid(y) + res_ref[...].astype(jnp.float32)
    o_ref[...] = y.astype(o_ref.dtype)


# ---------------------------------------------------------------------------
# Wrappers around pallas_call
# ---------------------------------------------------------------------------
def conv1x1_bias_silu(x2d, params):
    """x2d: (M, K) bf16 -> (M, N) bf16."""
    w, bias = params                        # w: (K, N) bf16, bias: (1, N) f32
    M, K = x2d.shape
    N = w.shape[1]
    tm = _pick_tm(M)
    Mp = _round_up(M, tm)
    xp = _pad_rows(x2d, Mp)

    out = pl.pallas_call(
        _mm_bias_silu_kernel,
        out_shape=jax.ShapeDtypeStruct((Mp, N), jnp.bfloat16),
        grid=(Mp // tm,),
        in_specs=[
            pl.BlockSpec((tm, K), lambda i: (i, 0)),   # activations, row-tiled
            pl.BlockSpec((K, N), lambda i: (0, 0)),    # weights, resident
            pl.BlockSpec((1, N), lambda i: (0, 0)),    # folded bias
        ],
        out_specs=pl.BlockSpec((tm, N), lambda i: (i, 0)),
        compiler_params=_compiler_params(1),
    )(xp, w, bias)
    return out[:M] if Mp != M else out


def dual_conv1x1_bias_silu(x2d, params1, params2):
    """Fused cbs1+cbs2: one pass over x2d, two (K, c) weight slabs, two outs."""
    w1, b1 = params1
    w2, b2 = params2
    M, K = x2d.shape
    N1, N2 = w1.shape[1], w2.shape[1]
    tm = _pick_tm(M)
    Mp = _round_up(M, tm)
    xp = _pad_rows(x2d, Mp)

    o1, o2 = pl.pallas_call(
        _dual_mm_bias_silu_kernel,
        out_shape=(jax.ShapeDtypeStruct((Mp, N1), jnp.bfloat16),
                   jax.ShapeDtypeStruct((Mp, N2), jnp.bfloat16)),
        grid=(Mp // tm,),
        in_specs=[
            pl.BlockSpec((tm, K), lambda i: (i, 0)),
            pl.BlockSpec((K, N1), lambda i: (0, 0)),
            pl.BlockSpec((1, N1), lambda i: (0, 0)),
            pl.BlockSpec((K, N2), lambda i: (0, 0)),
            pl.BlockSpec((1, N2), lambda i: (0, 0)),
        ],
        out_specs=(pl.BlockSpec((tm, N1), lambda i: (i, 0)),
                   pl.BlockSpec((tm, N2), lambda i: (i, 0))),
        compiler_params=_compiler_params(1),
    )(xp, w1, b1, w2, b2)
    if Mp != M:
        o1, o2 = o1[:M], o2[:M]
    return o1, o2


def conv3x3_bias_silu_res(x_nhwc, params, res_3d):
    """x_nhwc: (N, H, W, C) bf16; res_3d: (N, H*W, Cout) -> (N, H*W, Cout)."""
    w9, bias = params                       # w9: (9, C, cout) bf16 (scale folded)
    nb, H, W, C = x_nhwc.shape
    cout = w9.shape[-1]
    R = _pick_row_tile(H, W, nb)
    nt = H // R
    grouped = (C % 128 == 0)                # lane-aligned -> K=3C grouped dots
    w_in = w9.reshape(3, 3 * C, cout) if grouped else w9
    kernel = functools.partial(_conv3x3_bias_silu_res_kernel, grouped=grouped)

    return pl.pallas_call(
        kernel,
        out_shape=jax.ShapeDtypeStruct((nb, H * W, cout), jnp.bfloat16),
        grid=(nb, nt),
        in_specs=[
            # Full image resident across the row-tile axis (DMA'd once per n).
            pl.BlockSpec((None, H, W, C), lambda n, t: (n, 0, 0, 0)),
            pl.BlockSpec(w_in.shape, lambda n, t: (0, 0, 0)),
            pl.BlockSpec((1, cout), lambda n, t: (0, 0)),
            pl.BlockSpec((None, R * W, cout), lambda n, t: (n, t, 0)),
        ],
        out_specs=pl.BlockSpec((None, R * W, cout), lambda n, t: (n, t, 0)),
        scratch_shapes=[pltpu.VMEM((R + 2, W + 2, C), jnp.bfloat16)],
        compiler_params=_compiler_params(2),
    )(x_nhwc, w_in, bias, res_3d)


def cbs3_concat_fused(h2d, input2_2d, branch2_2d, params):
    """Fused: SiLU(cat([h + input2, branch2], ch) @ W + b) without
    materializing the concat or the residual add in HBM."""
    w, bias = params                        # w: (2c, out1) bf16
    M, c = h2d.shape
    out1 = w.shape[1]
    wh, wb = w[:c], w[c:]
    tm = _pick_tm(M)
    Mp = _round_up(M, tm)
    hp = _pad_rows(h2d, Mp)
    i2p = _pad_rows(input2_2d, Mp)
    b2p = _pad_rows(branch2_2d, Mp)

    out = pl.pallas_call(
        _cbs3_concat_kernel,
        out_shape=jax.ShapeDtypeStruct((Mp, out1), jnp.bfloat16),
        grid=(Mp // tm,),
        in_specs=[
            pl.BlockSpec((tm, c), lambda i: (i, 0)),
            pl.BlockSpec((tm, c), lambda i: (i, 0)),
            pl.BlockSpec((tm, c), lambda i: (i, 0)),
            pl.BlockSpec((c, out1), lambda i: (0, 0)),
            pl.BlockSpec((c, out1), lambda i: (0, 0)),
            pl.BlockSpec((1, out1), lambda i: (0, 0)),
        ],
        out_specs=pl.BlockSpec((tm, out1), lambda i: (i, 0)),
        compiler_params=_compiler_params(1),
    )(hp, i2p, b2p, wh, wb, bias)
    return out[:M] if Mp != M else out


# ---------------------------------------------------------------------------
# Parameter construction (deterministic; conv bias + BN folded into w / bias)
# ---------------------------------------------------------------------------
def make_cbs_params(key, cin, cout, ksize):
    k1, k2, k3, k4, k5, k6 = jax.random.split(key, 6)
    fan_in = ksize * ksize * cin
    w = jax.random.normal(k1, (ksize, ksize, cin, cout), jnp.float32)
    w = w * (1.0 / jnp.sqrt(jnp.float32(fan_in)))
    conv_b = 0.1 * jax.random.normal(k2, (cout,), jnp.float32)
    gamma = 1.0 + 0.1 * jax.random.normal(k3, (cout,), jnp.float32)
    beta = 0.1 * jax.random.normal(k4, (cout,), jnp.float32)
    rmean = 0.1 * jax.random.normal(k5, (cout,), jnp.float32)
    rvar = jnp.abs(jax.random.normal(k6, (cout,), jnp.float32)) + 0.5
    eps = 1e-5
    scale = gamma / jnp.sqrt(rvar + eps)
    bias = beta + (conv_b - rmean) * scale
    w_folded = w * scale                                    # fold BN scale
    if ksize == 1:
        wk = w_folded.reshape(cin, cout)                    # (K, N)
    else:
        wk = w_folded.reshape(ksize * ksize, cin, cout)     # (9, C, Cout)
    return wk.astype(jnp.bfloat16), bias.reshape(1, cout).astype(jnp.float32)


def make_c3_params(key, in1, out1, n):
    c = in1 // 2
    keys = jax.random.split(key, 3 + 2 * n)
    return {
        "cbs1": make_cbs_params(keys[0], in1, c, 1),
        "cbs2": make_cbs_params(keys[1], in1, c, 1),
        "cbs3": make_cbs_params(keys[2], 2 * c, out1, 1),
        "res": [
            (make_cbs_params(keys[3 + 2 * i], c, c, 1),
             make_cbs_params(keys[4 + 2 * i], c, c, 3))
            for i in range(n)
        ],
    }


# ---------------------------------------------------------------------------
# c3 forward (matches the PyTorch module's dataflow)
# ---------------------------------------------------------------------------
@functools.partial(jax.jit, static_argnums=(2,))
def c3_forward(x_nchw, params, n):
    # NCHW -> NHWC, bf16 activations (f32 accumulation inside the kernels).
    x = jnp.transpose(x_nchw, (0, 2, 3, 1)).astype(jnp.bfloat16)
    nb, H, W, cin = x.shape
    M = nb * H * W
    x2d = x.reshape(M, cin)

    # Fused conv2d_bn_silu_1 + conv2d_bn_silu_2: one pass over the input.
    input2_2d, branch2_2d = dual_conv1x1_bias_silu(
        x2d, params["cbs1"], params["cbs2"])
    c = input2_2d.shape[-1]

    h2d = input2_2d
    for i in range(n):                                    # Sequential(residual)
        p1x1, p3x3 = params["res"][i]
        t2d = conv1x1_bias_silu(h2d, p1x1)
        h2d = conv3x3_bias_silu_res(                      # fused residual add
            t2d.reshape(nb, H, W, c), p3x3, h2d.reshape(nb, H * W, c)
        ).reshape(M, c)

    # Fused: (h + input2), channel concat with branch2, 1x1 conv, BN, SiLU.
    out2d = cbs3_concat_fused(h2d, input2_2d, branch2_2d, params["cbs3"])

    out = out2d.reshape(nb, H, W, -1)
    # NHWC -> NCHW, back to f32 to match the PyTorch module's output dtype.
    return jnp.transpose(out, (0, 3, 1, 2)).astype(jnp.float32)


if __name__ == "__main__":
    key = jax.random.PRNGKey(0)
    k1, k2, k3, k4 = jax.random.split(key, 4)

    # Config 1: tiny shapes (narrow-channel fallback path of the 3x3 kernel).
    B, IN1, OUT1, NB, H, W = 2, 8, 8, 1, 16, 16
    x = jax.random.normal(k1, (B, IN1, H, W), jnp.float32)   # NCHW like PyTorch
    params = make_c3_params(k2, IN1, OUT1, NB)
    y = c3_forward(x, params, NB)
    jax.block_until_ready(y)
    assert y.shape == (B, OUT1, H, W), y.shape

    # Config 2: lane-aligned channel widths (exercises the grouped K=3C path
    # and the fused dual-1x1 / cbs3 kernels at realistic alignment).
    B2, IN2, OUT2, NB2, H2, W2 = 1, 256, 256, 1, 8, 8
    x2 = jax.random.normal(k3, (B2, IN2, H2, W2), jnp.float32)
    params2 = make_c3_params(k4, IN2, OUT2, NB2)
    y2 = c3_forward(x2, params2, NB2)
    jax.block_until_ready(y2)
    assert y2.shape == (B2, OUT2, H2, W2), y2.shape

    print("KERNEL_OK")
</pallas_src>

<mosaic_0001>
module attributes {stable_mosaic.version = 11 : i64} {
  func.func @_dual_mm_bias_silu_kernel(%arg0: i32, %arg1: memref<128x8xbf16, #tpu.memory_space<vmem>>, %arg2: memref<8x4xbf16, #tpu.memory_space<vmem>>, %arg3: memref<1x4xf32, #tpu.memory_space<vmem>>, %arg4: memref<8x4xbf16, #tpu.memory_space<vmem>>, %arg5: memref<1x4xf32, #tpu.memory_space<vmem>>, %arg6: memref<128x4xbf16, #tpu.memory_space<vmem>>, %arg7: memref<128x4xbf16, #tpu.memory_space<vmem>>) attributes {dimension_semantics = [#tpu.dimension_semantics<parallel>], iteration_bounds = array<i64: 4>, scalar_prefetch = 0 : i64, scratch_operands = 0 : i64, tpu.core_type = #tpu.core_type<tc>, window_params = [{transform_indices = @transform_0, window_bounds = array<i64: 128, 8>}, {pipeline_mode = #tpu.pipeline_mode<synchronous>, transform_indices = @transform_1, window_bounds = array<i64: 8, 4>}, {pipeline_mode = #tpu.pipeline_mode<synchronous>, transform_indices = @transform_2, window_bounds = array<i64: 1, 4>}, {pipeline_mode = #tpu.pipeline_mode<synchronous>, transform_indices = @transform_3, window_bounds = array<i64: 8, 4>}, {pipeline_mode = #tpu.pipeline_mode<synchronous>, transform_indices = @transform_4, window_bounds = array<i64: 1, 4>}, {transform_indices = @transform_5, window_bounds = array<i64: 128, 4>}, {transform_indices = @transform_6, window_bounds = array<i64: 128, 4>}]} {
    %c0 = arith.constant 0 : index
    %c0_0 = arith.constant 0 : index
    %0 = vector.load %arg1[%c0, %c0_0] : memref<128x8xbf16, #tpu.memory_space<vmem>>, vector<128x8xbf16>
    %c0_1 = arith.constant 0 : index
    %c0_2 = arith.constant 0 : index
    %1 = vector.load %arg2[%c0_1, %c0_2] : memref<8x4xbf16, #tpu.memory_space<vmem>>, vector<8x4xbf16>
    %cst = arith.constant dense<0.000000e+00> : vector<128x4xf32>
    %2 = tpu.matmul %0, %1, %cst {dimension_numbers = #tpu.dot_dimension_numbers<[1], [0], [0], [1], [0, 0, 1, 1], [], []>} : vector<128x8xbf16>, vector<8x4xbf16>, vector<128x4xf32> -> vector<128x4xf32>
    %c0_3 = arith.constant 0 : index
    %c0_4 = arith.constant 0 : index
    %3 = vector.load %arg3[%c0_3, %c0_4] : memref<1x4xf32, #tpu.memory_space<vmem>>, vector<1x4xf32>
    %4 = vector.broadcast %3 : vector<1x4xf32> to vector<128x4xf32>
    %5 = arith.addf %2, %4 : vector<128x4xf32>
    %6 = arith.negf %5 : vector<128x4xf32>
    %7 = math.exp %6 : vector<128x4xf32>
    %cst_5 = arith.constant 1.000000e+00 : f32
    %8 = vector.broadcast %cst_5 : f32 to vector<128x4xf32>
    %9 = arith.addf %8, %7 : vector<128x4xf32>
    %10 = arith.divf %8, %9 : vector<128x4xf32>
    %11 = arith.mulf %5, %10 : vector<128x4xf32>
    %12 = arith.truncf %11 : vector<128x4xf32> to vector<128x4xbf16>
    %c0_6 = arith.constant 0 : index
    %c0_7 = arith.constant 0 : index
    %13 = vector.load %arg6[%c0_6, %c0_7] : memref<128x4xbf16, #tpu.memory_space<vmem>>, vector<128x4xbf16>
    tpu.vector_store %arg6[%c0_6, %c0_7], %12 {strides = array<i32>} : memref<128x4xbf16, #tpu.memory_space<vmem>>, vector<128x4xbf16>,
    %c0_8 = arith.constant 0 : index
    %c0_9 = arith.constant 0 : index
    %14 = vector.load %arg4[%c0_8, %c0_9] : memref<8x4xbf16, #tpu.memory_space<vmem>>, vector<8x4xbf16>
    %cst_10 = arith.constant dense<0.000000e+00> : vector<128x4xf32>
    %15 = tpu.matmul %0, %14, %cst_10 {dimension_numbers = #tpu.dot_dimension_numbers<[1], [0], [0], [1], [0, 0, 1, 1], [], []>} : vector<128x8xbf16>, vector<8x4xbf16>, vector<128x4xf32> -> vector<128x4xf32>
    %c0_11 = arith.constant 0 : index
    %c0_12 = arith.constant 0 : index
    %16 = vector.load %arg5[%c0_11, %c0_12] : memref<1x4xf32, #tpu.memory_space<vmem>>, vector<1x4xf32>
    %17 = vector.broadcast %16 : vector<1x4xf32> to vector<128x4xf32>
    %18 = arith.addf %15, %17 : vector<128x4xf32>
    %19 = arith.negf %18 : vector<128x4xf32>
    %20 = math.exp %19 : vector<128x4xf32>
    %cst_13 = arith.constant 1.000000e+00 : f32
    %21 = vector.broadcast %cst_13 : f32 to vector<128x4xf32>
    %22 = arith.addf %21, %20 : vector<128x4xf32>
    %23 = arith.divf %21, %22 : vector<128x4xf32>
    %24 = arith.mulf %18, %23 : vector<128x4xf32>
    %25 = arith.truncf %24 : vector<128x4xf32> to vector<128x4xbf16>
    %c0_14 = arith.constant 0 : index
    %c0_15 = arith.constant 0 : index
    %26 = vector.load %arg7[%c0_14, %c0_15] : memref<128x4xbf16, #tpu.memory_space<vmem>>, vector<128x4xbf16>
    tpu.vector_store %arg7[%c0_14, %c0_15], %25 {strides = array<i32>} : memref<128x4xbf16, #tpu.memory_space<vmem>>, vector<128x4xbf16>,
    return
  }
  func.func @transform_0(%arg0: i32) -> (i32, i32) {
    %c0_i32 = arith.constant 0 : i32
    %c0_i32_0 = arith.constant 0 : i32
    return %arg0, %c0_i32 : i32, i32
  }
  func.func @transform_1(%arg0: i32) -> (i32, i32) {
    %c0_i32 = arith.constant 0 : i32
    %c0_i32_0 = arith.constant 0 : i32
    %c0_i32_1 = arith.constant 0 : i32
    return %c0_i32, %c0_i32_0 : i32, i32
  }
  func.func @transform_2(%arg0: i32) -> (i32, i32) {
    %c0_i32 = arith.constant 0 : i32
    %c0_i32_0 = arith.constant 0 : i32
    %c0_i32_1 = arith.constant 0 : i32
    return %c0_i32, %c0_i32_0 : i32, i32
  }
  func.func @transform_3(%arg0: i32) -> (i32, i32) {
    %c0_i32 = arith.constant 0 : i32
    %c0_i32_0 = arith.constant 0 : i32
    %c0_i32_1 = arith.constant 0 : i32
    return %c0_i32, %c0_i32_0 : i32, i32
  }
  func.func @transform_4(%arg0: i32) -> (i32, i32) {
    %c0_i32 = arith.constant 0 : i32
    %c0_i32_0 = arith.constant 0 : i32
    %c0_i32_1 = arith.constant 0 : i32
    return %c0_i32, %c0_i32_0 : i32, i32
  }
  func.func @transform_5(%arg0: i32) -> (i32, i32) {
    %c0_i32 = arith.constant 0 : i32
    %c0_i32_0 = arith.constant 0 : i32
    return %arg0, %c0_i32 : i32, i32
  }
  func.func @transform_6(%arg0: i32) -> (i32, i32) {
    %c0_i32 = arith.constant 0 : i32
    %c0_i32_0 = arith.constant 0 : i32
    return %arg0, %c0_i32 : i32, i32
  }
}

module attributes {stable_mosaic.version = 11 : i64} {
  func.func @_mm_bias_silu_kernel(%arg0: i32, %arg1: memref<128x4xbf16, #tpu.memory_space<vmem>>, %arg2: memref<4x4xbf16, #tpu.memory_space<vmem>>, %arg3: memref<1x4xf32, #tpu.memory_space<vmem>>, %arg4: memref<128x4xbf16, #tpu.memory_space<vmem>>) attributes {dimension_semantics = [#tpu.dimension_semantics<parallel>], iteration_bounds = array<i64: 4>, scalar_prefetch = 0 : i64, scratch_operands = 0 : i64, tpu.core_type = #tpu.core_type<tc>, window_params = [{transform_indices = @transform_0, window_bounds = array<i64: 128, 4>}, {pipeline_mode = #tpu.pipeline_mode<synchronous>, transform_indices = @transform_1, window_bounds = array<i64: 4, 4>}, {pipeline_mode = #tpu.pipeline_mode<synchronous>, transform_indices = @transform_2, window_bounds = array<i64: 1, 4>}, {transform_indices = @transform_3, window_bounds = array<i64: 128, 4>}]} {
    %c0 = arith.constant 0 : index
    %c0_0 = arith.constant 0 : index
    %0 = vector.load %arg1[%c0, %c0_0] : memref<128x4xbf16, #tpu.memory_space<vmem>>, vector<128x4xbf16>
    %c0_1 = arith.constant 0 : index
    %c0_2 = arith.constant 0 : index
    %1 = vector.load %arg2[%c0_1, %c0_2] : memref<4x4xbf16, #tpu.memory_space<vmem>>, vector<4x4xbf16>
    %cst = arith.constant dense<0.000000e+00> : vector<128x4xf32>
    %2 = tpu.matmul %0, %1, %cst {dimension_numbers = #tpu.dot_dimension_numbers<[1], [0], [0], [1], [0, 0, 1, 1], [], []>} : vector<128x4xbf16>, vector<4x4xbf16>, vector<128x4xf32> -> vector<128x4xf32>
    %c0_3 = arith.constant 0 : index
    %c0_4 = arith.constant 0 : index
    %3 = vector.load %arg3[%c0_3, %c0_4] : memref<1x4xf32, #tpu.memory_space<vmem>>, vector<1x4xf32>
    %4 = vector.broadcast %3 : vector<1x4xf32> to vector<128x4xf32>
    %5 = arith.addf %2, %4 : vector<128x4xf32>
    %6 = arith.negf %5 : vector<128x4xf32>
    %7 = math.exp %6 : vector<128x4xf32>
    %cst_5 = arith.constant 1.000000e+00 : f32
    %8 = vector.broadcast %cst_5 : f32 to vector<128x4xf32>
    %9 = arith.addf %8, %7 : vector<128x4xf32>
    %10 = arith.divf %8, %9 : vector<128x4xf32>
    %11 = arith.mulf %5, %10 : vector<128x4xf32>
    %12 = arith.truncf %11 : vector<128x4xf32> to vector<128x4xbf16>
    %c0_6 = arith.constant 0 : index
    %c0_7 = arith.constant 0 : index
    %13 = vector.load %arg4[%c0_6, %c0_7] : memref<128x4xbf16, #tpu.memory_space<vmem>>, vector<128x4xbf16>
    tpu.vector_store %arg4[%c0_6, %c0_7], %12 {strides = array<i32>} : memref<128x4xbf16, #tpu.memory_space<vmem>>, vector<128x4xbf16>,
    return
  }
  func.func @transform_0(%arg0: i32) -> (i32, i32) {
    %c0_i32 = arith.constant 0 : i32
    %c0_i32_0 = arith.constant 0 : i32
    return %arg0, %c0_i32 : i32, i32
  }
  func.func @transform_1(%arg0: i32) -> (i32, i32) {
    %c0_i32 = arith.constant 0 : i32
    %c0_i32_0 = arith.constant 0 : i32
    %c0_i32_1 = arith.constant 0 : i32
    return %c0_i32, %c0_i32_0 : i32, i32
  }
  func.func @transform_2(%arg0: i32) -> (i32, i32) {
    %c0_i32 = arith.constant 0 : i32
    %c0_i32_0 = arith.constant 0 : i32
    %c0_i32_1 = arith.constant 0 : i32
    return %c0_i32, %c0_i32_0 : i32, i32
  }
  func.func @transform_3(%arg0: i32) -> (i32, i32) {
    %c0_i32 = arith.constant 0 : i32
    %c0_i32_0 = arith.constant 0 : i32
    return %arg0, %c0_i32 : i32, i32
  }
}

module attributes {stable_mosaic.version = 11 : i64} {
  func.func @_conv3x3_bias_silu_res_kernel(%arg0: i32, %arg1: i32, %arg2: memref<1x16x16x4xbf16, #tpu.memory_space<vmem>>, %arg3: memref<9x4x4xbf16, #tpu.memory_space<vmem>>, %arg4: memref<1x4xf32, #tpu.memory_space<vmem>>, %arg5: memref<1x128x4xbf16, #tpu.memory_space<vmem>>, %arg6: memref<1x128x4xbf16, #tpu.memory_space<vmem>>, %arg7: memref<10x18x4xbf16, #tpu.memory_space<vmem>>) attributes {dimension_semantics = [#tpu.dimension_semantics<parallel>, #tpu.dimension_semantics<parallel>], iteration_bounds = array<i64: 2, 2>, scalar_prefetch = 0 : i64, scratch_operands = 1 : i64, tpu.core_type = #tpu.core_type<tc>, window_params = [{transform_indices = @transform_0, window_bounds = array<i64: 1, 16, 16, 4>}, {pipeline_mode = #tpu.pipeline_mode<synchronous>, transform_indices = @transform_1, window_bounds = array<i64: 9, 4, 4>}, {pipeline_mode = #tpu.pipeline_mode<synchronous>, transform_indices = @transform_2, window_bounds = array<i64: 1, 4>}, {transform_indices = @transform_3, window_bounds = array<i64: 1, 128, 4>}, {transform_indices = @transform_4, window_bounds = array<i64: 1, 128, 4>}]} {
    %c8_i32 = arith.constant 8 : i32
    %0 = arith.muli %arg1, %c8_i32 : i32
    %1 = tpu.assume_multiple %0, 8 : i32
    %cst = arith.constant 0.000000e+00 : bf16
    %2 = vector.broadcast %cst : bf16 to vector<10x18x4xbf16>
    %c0 = arith.constant 0 : index
    %c0_0 = arith.constant 0 : index
    %c0_1 = arith.constant 0 : index
    %3 = vector.load %arg7[%c0, %c0_0, %c0_1] : memref<10x18x4xbf16, #tpu.memory_space<vmem>>, vector<10x18x4xbf16>
    tpu.vector_store %arg7[%c0, %c0_0, %c0_1], %2 {strides = array<i32>} : memref<10x18x4xbf16, #tpu.memory_space<vmem>>, vector<10x18x4xbf16>,
    %c0_2 = arith.constant 0 : index
    %4 = arith.index_cast %1 : i32 to index
    %c0_3 = arith.constant 0 : index
    %c0_4 = arith.constant 0 : index
    %5 = vector.load %arg2[%c0_2, %4, %c0_3, %c0_4] : memref<1x16x16x4xbf16, #tpu.memory_space<vmem>>, vector<1x8x16x4xbf16>
    %6 = vector.shape_cast %5 : vector<1x8x16x4xbf16> to vector<8x16x4xbf16>
    %c1 = arith.constant 1 : index
    %c1_5 = arith.constant 1 : index
    %c0_6 = arith.constant 0 : index
    %7 = vector.load %arg7[%c1, %c1_5, %c0_6] : memref<10x18x4xbf16, #tpu.memory_space<vmem>>, vector<8x16x4xbf16>
    tpu.vector_store %arg7[%c1, %c1_5, %c0_6], %6 {strides = array<i32>} : memref<10x18x4xbf16, #tpu.memory_space<vmem>>, vector<8x16x4xbf16>,
    %c0_i32 = arith.constant 0 : i32
    %8 = arith.cmpi sgt, %arg1, %c0_i32 : i32
    %9 = arith.extui %8 : i1 to i32
    %c0_i32_7 = arith.constant 0 : i32
    %10 = arith.cmpi ne, %9, %c0_i32_7 : i32
    scf.if %10 {
      %c1_i32_50 = arith.constant 1 : i32
      %88 = arith.subi %1, %c1_i32_50 : i32
      %c0_51 = arith.constant 0 : index
      %89 = arith.index_cast %88 : i32 to index
      %c0_52 = arith.constant 0 : index
      %c0_53 = arith.constant 0 : index
      %90 = vector.load %arg2[%c0_51, %89, %c0_52, %c0_53] : memref<1x16x16x4xbf16, #tpu.memory_space<vmem>>, vector<1x1x16x4xbf16>
      %91 = vector.shape_cast %90 : vector<1x1x16x4xbf16> to vector<1x16x4xbf16>
      %c0_54 = arith.constant 0 : index
      %c1_55 = arith.constant 1 : index
      %c0_56 = arith.constant 0 : index
      %92 = vector.load %arg7[%c0_54, %c1_55, %c0_56] : memref<10x18x4xbf16, #tpu.memory_space<vmem>>, vector<1x16x4xbf16>
      tpu.vector_store %arg7[%c0_54, %c1_55, %c0_56], %91 {strides = array<i32>} : memref<10x18x4xbf16, #tpu.memory_space<vmem>>, vector<1x16x4xbf16>,
    } else {
    }
    %c1_i32 = arith.constant 1 : i32
    %11 = arith.cmpi slt, %arg1, %c1_i32 : i32
    %12 = arith.extui %11 : i1 to i32
    %c0_i32_8 = arith.constant 0 : i32
    %13 = arith.cmpi ne, %12, %c0_i32_8 : i32
    scf.if %13 {
      %c8_i32_50 = arith.constant 8 : i32
      %88 = arith.addi %1, %c8_i32_50 : i32
      %c0_51 = arith.constant 0 : index
      %89 = arith.index_cast %88 : i32 to index
      %c0_52 = arith.constant 0 : index
      %c0_53 = arith.constant 0 : index
      %90 = vector.load %arg2[%c0_51, %89, %c0_52, %c0_53] : memref<1x16x16x4xbf16, #tpu.memory_space<vmem>>, vector<1x1x16x4xbf16>
      %91 = vector.shape_cast %90 : vector<1x1x16x4xbf16> to vector<1x16x4xbf16>
      %c9 = arith.constant 9 : index
      %c1_54 = arith.constant 1 : index
      %c0_55 = arith.constant 0 : index
      %92 = vector.load %arg7[%c9, %c1_54, %c0_55] : memref<10x18x4xbf16, #tpu.memory_space<vmem>>, vector<1x16x4xbf16>
      tpu.vector_store %arg7[%c9, %c1_54, %c0_55], %91 {strides = array<i32>} : memref<10x18x4xbf16, #tpu.memory_space<vmem>>, vector<1x16x4xbf16>,
    } else {
    }
    %c0_9 = arith.constant 0 : index
    %c0_10 = arith.constant 0 : index
    %c0_11 = arith.constant 0 : index
    %14 = vector.load %arg7[%c0_9, %c0_10, %c0_11] : memref<10x18x4xbf16, #tpu.memory_space<vmem>>, vector<10x18x4xbf16>
    %15 = vector.extract_strided_slice %14 {offsets = [0, 0, 0], sizes = [8, 18, 4], strides = [1, 1, 1]} : vector<10x18x4xbf16> to vector<8x18x4xbf16>
    %16 = vector.extract_strided_slice %15 {offsets = [0, 0, 0], sizes = [8, 16, 4], strides = [1, 1, 1]} : vector<8x18x4xbf16> to vector<8x16x4xbf16>
    %17 = vector.shape_cast %16 : vector<8x16x4xbf16> to vector<128x4xbf16>
    %c0_12 = arith.constant 0 : index
    %c0_13 = arith.constant 0 : index
    %c0_14 = arith.constant 0 : index
    %18 = vector.load %arg3[%c0_12, %c0_13, %c0_14] : memref<9x4x4xbf16, #tpu.memory_space<vmem>>, vector<1x4x4xbf16>
    %19 = vector.shape_cast %18 : vector<1x4x4xbf16> to vector<4x4xbf16>
    %cst_15 = arith.constant dense<0.000000e+00> : vector<128x4xf32>
    %20 = tpu.matmul %17, %19, %cst_15 {dimension_numbers = #tpu.dot_dimension_numbers<[1], [0], [0], [1], [0, 0, 1, 1], [], []>} : vector<128x4xbf16>, vector<4x4xbf16>, vector<128x4xf32> -> vector<128x4xf32>
    %21 = vector.extract_strided_slice %15 {offsets = [0, 1, 0], sizes = [8, 16, 4], strides = [1, 1, 1]} : vector<8x18x4xbf16> to vector<8x16x4xbf16>
    %22 = vector.shape_cast %21 : vector<8x16x4xbf16> to vector<128x4xbf16>
    %c1_16 = arith.constant 1 : index
    %c0_17 = arith.constant 0 : index
    %c0_18 = arith.constant 0 : index
    %23 = vector.load %arg3[%c1_16, %c0_17, %c0_18] : memref<9x4x4xbf16, #tpu.memory_space<vmem>>, vector<1x4x4xbf16>
    %24 = vector.shape_cast %23 : vector<1x4x4xbf16> to vector<4x4xbf16>
    %cst_19 = arith.constant dense<0.000000e+00> : vector<128x4xf32>
    %25 = tpu.matmul %22, %24, %cst_19 {dimension_numbers = #tpu.dot_dimension_numbers<[1], [0], [0], [1], [0, 0, 1, 1], [], []>} : vector<128x4xbf16>, vector<4x4xbf16>, vector<128x4xf32> -> vector<128x4xf32>
    %26 = arith.addf %20, %25 : vector<128x4xf32>
    %27 = vector.extract_strided_slice %15 {offsets = [0, 2, 0], sizes = [8, 16, 4], strides = [1, 1, 1]} : vector<8x18x4xbf16> to vector<8x16x4xbf16>
    %28 = vector.shape_cast %27 : vector<8x16x4xbf16> to vector<128x4xbf16>
    %c2 = arith.constant 2 : index
    %c0_20 = arith.constant 0 : index
    %c0_21 = arith.constant 0 : index
    %29 = vector.load %arg3[%c2, %c0_20, %c0_21] : memref<9x4x4xbf16, #tpu.memory_space<vmem>>, vector<1x4x4xbf16>
    %30 = vector.shape_cast %29 : vector<1x4x4xbf16> to vector<4x4xbf16>
    %cst_22 = arith.constant dense<0.000000e+00> : vector<128x4xf32>
    %31 = tpu.matmul %28, %30, %cst_22 {dimension_numbers = #tpu.dot_dimension_numbers<[1], [0], [0], [1], [0, 0, 1, 1], [], []>} : vector<128x4xbf16>, vector<4x4xbf16>, vector<128x4xf32> -> vector<128x4xf32>
    %32 = arith.addf %26, %31 : vector<128x4xf32>
    %33 = vector.extract_strided_slice %14 {offsets = [1, 0, 0], sizes = [8, 18, 4], strides = [1, 1, 1]} : vector<10x18x4xbf16> to vector<8x18x4xbf16>
    %34 = vector.extract_strided_slice %33 {offsets = [0, 0, 0], sizes = [8, 16, 4], strides = [1, 1, 1]} : vector<8x18x4xbf16> to vector<8x16x4xbf16>
    %35 = vector.shape_cast %34 : vector<8x16x4xbf16> to vector<128x4xbf16>
    %c3 = arith.constant 3 : index
    %c0_23 = arith.constant 0 : index
    %c0_24 = arith.constant 0 : index
    %36 = vector.load %arg3[%c3, %c0_23, %c0_24] : memref<9x4x4xbf16, #tpu.memory_space<vmem>>, vector<1x4x4xbf16>
    %37 = vector.shape_cast %36 : vector<1x4x4xbf16> to vector<4x4xbf16>
    %cst_25 = arith.constant dense<0.000000e+00> : vector<128x4xf32>
    %38 = tpu.matmul %35, %37, %cst_25 {dimension_numbers = #tpu.dot_dimension_numbers<[1], [0], [0], [1], [0, 0, 1, 1], [], []>} : vector<128x4xbf16>, vector<4x4xbf16>, vector<128x4xf32> -> vector<128x4xf32>
    %39 = arith.addf %32, %38 : vector<128x4xf32>
    %40 = vector.extract_strided_slice %33 {offsets = [0, 1, 0], sizes = [8, 16, 4], strides = [1, 1, 1]} : vector<8x18x4xbf16> to vector<8x16x4xbf16>
    %41 = vector.shape_cast %40 : vector<8x16x4xbf16> to vector<128x4xbf16>
    %c4 = arith.constant 4 : index
    %c0_26 = arith.constant 0 : index
    %c0_27 = arith.constant 0 : index
    %42 = vector.load %arg3[%c4, %c0_26, %c0_27] : memref<9x4x4xbf16, #tpu.memory_space<vmem>>, vector<1x4x4xbf16>
    %43 = vector.shape_cast %42 : vector<1x4x4xbf16> to vector<4x4xbf16>
    %cst_28 = arith.constant dense<0.000000e+00> : vector<128x4xf32>
    %44 = tpu.matmul %41, %43, %cst_28 {dimension_numbers = #tpu.dot_dimension_numbers<[1], [0], [0], [1], [0, 0, 1, 1], [], []>} : vector<128x4xbf16>, vector<4x4xbf16>, vector<128x4xf32> -> vector<128x4xf32>
    %45 = arith.addf %39, %44 : vector<128x4xf32>
    %46 = vector.extract_strided_slice %33 {offsets = [0, 2, 0], sizes = [8, 16, 4], strides = [1, 1, 1]} : vector<8x18x4xbf16> to vector<8x16x4xbf16>
    %47 = vector.shape_cast %46 : vector<8x16x4xbf16> to vector<128x4xbf16>
    %c5 = arith.constant 5 : index
    %c0_29 = arith.constant 0 : index
    %c0_30 = arith.constant 0 : index
    %48 = vector.load %arg3[%c5, %c0_29, %c0_30] : memref<9x4x4xbf16, #tpu.memory_space<vmem>>, vector<1x4x4xbf16>
    %49 = vector.shape_cast %48 : vector<1x4x4xbf16> to vector<4x4xbf16>
    %cst_31 = arith.constant dense<0.000000e+00> : vector<128x4xf32>
    %50 = tpu.matmul %47, %49, %cst_31 {dimension_numbers = #tpu.dot_dimension_numbers<[1], [0], [0], [1], [0, 0, 1, 1], [], []>} : vector<128x4xbf16>, vector<4x4xbf16>, vector<128x4xf32> -> vector<128x4xf32>
    %51 = arith.addf %45, %50 : vector<128x4xf32>
    %52 = vector.extract_strided_slice %14 {offsets = [2, 0, 0], sizes = [8, 18, 4], strides = [1, 1, 1]} : vector<10x18x4xbf16> to vector<8x18x4xbf16>
    %53 = vector.extract_strided_slice %52 {offsets = [0, 0, 0], sizes = [8, 16, 4], strides = [1, 1, 1]} : vector<8x18x4xbf16> to vector<8x16x4xbf16>
    %54 = vector.shape_cast %53 : vector<8x16x4xbf16> to vector<128x4xbf16>
    %c6 = arith.constant 6 : index
    %c0_32 = arith.constant 0 : index
    %c0_33 = arith.constant 0 : index
    %55 = vector.load %arg3[%c6, %c0_32, %c0_33] : memref<9x4x4xbf16, #tpu.memory_space<vmem>>, vector<1x4x4xbf16>
    %56 = vector.shape_cast %55 : vector<1x4x4xbf16> to vector<4x4xbf16>
    %cst_34 = arith.constant dense<0.000000e+00> : vector<128x4xf32>
    %57 = tpu.matmul %54, %56, %cst_34 {dimension_numbers = #tpu.dot_dimension_numbers<[1], [0], [0], [1], [0, 0, 1, 1], [], []>} : vector<128x4xbf16>, vector<4x4xbf16>, vector<128x4xf32> -> vector<128x4xf32>
    %58 = arith.addf %51, %57 : vector<128x4xf32>
    %59 = vector.extract_strided_slice %52 {offsets = [0, 1, 0], sizes = [8, 16, 4], strides = [1, 1, 1]} : vector<8x18x4xbf16> to vector<8x16x4xbf16>
    %60 = vector.shape_cast %59 : vector<8x16x4xbf16> to vector<128x4xbf16>
    %c7 = arith.constant 7 : index
    %c0_35 = arith.constant 0 : index
    %c0_36 = arith.constant 0 : index
    %61 = vector.load %arg3[%c7, %c0_35, %c0_36] : memref<9x4x4xbf16, #tpu.memory_space<vmem>>, vector<1x4x4xbf16>
    %62 = vector.shape_cast %61 : vector<1x4x4xbf16> to vector<4x4xbf16>
    %cst_37 = arith.constant dense<0.000000e+00> : vector<128x4xf32>
    %63 = tpu.matmul %60, %62, %cst_37 {dimension_numbers = #tpu.dot_dimension_numbers<[1], [0], [0], [1], [0, 0, 1, 1], [], []>} : vector<128x4xbf16>, vector<4x4xbf16>, vector<128x4xf32> -> vector<128x4xf32>
    %64 = arith.addf %58, %63 : vector<128x4xf32>
    %65 = vector.extract_strided_slice %52 {offsets = [0, 2, 0], sizes = [8, 16, 4], strides = [1, 1, 1]} : vector<8x18x4xbf16> to vector<8x16x4xbf16>
    %66 = vector.shape_cast %65 : vector<8x16x4xbf16> to vector<128x4xbf16>
    %c8 = arith.constant 8 : index
    %c0_38 = arith.constant 0 : index
    %c0_39 = arith.constant 0 : index
    %67 = vector.load %arg3[%c8, %c0_38, %c0_39] : memref<9x4x4xbf16, #tpu.memory_space<vmem>>, vector<1x4x4xbf16>
    %68 = vector.shape_cast %67 : vector<1x4x4xbf16> to vector<4x4xbf16>
    %cst_40 = arith.constant dense<0.000000e+00> : vector<128x4xf32>
    %69 = tpu.matmul %66, %68, %cst_40 {dimension_numbers = #tpu.dot_dimension_numbers<[1], [0], [0], [1], [0, 0, 1, 1], [], []>} : vector<128x4xbf16>, vector<4x4xbf16>, vector<128x4xf32> -> vector<128x4xf32>
    %70 = arith.addf %64, %69 : vector<128x4xf32>
    %c0_41 = arith.constant 0 : index
    %c0_42 = arith.constant 0 : index
    %71 = vector.load %arg4[%c0_41, %c0_42] : memref<1x4xf32, #tpu.memory_space<vmem>>, vector<1x4xf32>
    %72 = vector.broadcast %71 : vector<1x4xf32> to vector<128x4xf32>
    %73 = arith.addf %70, %72 : vector<128x4xf32>
    %74 = arith.negf %73 : vector<128x4xf32>
    %75 = math.exp %74 : vector<128x4xf32>
    %cst_43 = arith.constant 1.000000e+00 : f32
    %76 = vector.broadcast %cst_43 : f32 to vector<128x4xf32>
    %77 = arith.addf %76, %75 : vector<128x4xf32>
    %78 = arith.divf %76, %77 : vector<128x4xf32>
    %79 = arith.mulf %73, %78 : vector<128x4xf32>
    %c0_44 = arith.constant 0 : index
    %c0_45 = arith.constant 0 : index
    %c0_46 = arith.constant 0 : index
    %80 = vector.load %arg5[%c0_44, %c0_45, %c0_46] : memref<1x128x4xbf16, #tpu.memory_space<vmem>>, vector<1x128x4xbf16>
    %81 = vector.shape_cast %80 : vector<1x128x4xbf16> to vector<128x4xbf16>
    %82 = arith.extf %81 : vector<128x4xbf16> to vector<128x4xf32>
    %83 = arith.addf %79, %82 : vector<128x4xf32>
    %84 = arith.truncf %83 : vector<128x4xf32> to vector<128x4xbf16>
    %c0_47 = arith.constant 0 : index
    %c0_48 = arith.constant 0 : index
    %c0_49 = arith.constant 0 : index
    %85 = vector.load %arg6[%c0_47, %c0_48, %c0_49] : memref<1x128x4xbf16, #tpu.memory_space<vmem>>, vector<1x128x4xbf16>
    %86 = vector.shape_cast %85 : vector<1x128x4xbf16> to vector<128x4xbf16>
    %87 = vector.shape_cast %84 : vector<128x4xbf16> to vector<1x128x4xbf16>
    tpu.vector_store %arg6[%c0_47, %c0_48, %c0_49], %87 {strides = array<i32>} : memref<1x128x4xbf16, #tpu.memory_space<vmem>>, vector<1x128x4xbf16>,
    return
  }
  func.func @transform_0(%arg0: i32, %arg1: i32) -> (i32, i32, i32, i32) {
    %c0_i32 = arith.constant 0 : i32
    %c0_i32_0 = arith.constant 0 : i32
    %c0_i32_1 = arith.constant 0 : i32
    %c0_i32_2 = arith.constant 0 : i32
    return %arg0, %c0_i32, %c0_i32_0, %c0_i32_1 : i32, i32, i32, i32
  }
  func.func @transform_1(%arg0: i32, %arg1: i32) -> (i32, i32, i32) {
    %c0_i32 = arith.constant 0 : i32
    %c0_i32_0 = arith.constant 0 : i32
    %c0_i32_1 = arith.constant 0 : i32
    %c0_i32_2 = arith.constant 0 : i32
    return %c0_i32, %c0_i32_0, %c0_i32_1 : i32, i32, i32
  }
  func.func @transform_2(%arg0: i32, %arg1: i32) -> (i32, i32) {
    %c0_i32 = arith.constant 0 : i32
    %c0_i32_0 = arith.constant 0 : i32
    %c0_i32_1 = arith.constant 0 : i32
    return %c0_i32, %c0_i32_0 : i32, i32
  }
  func.func @transform_3(%arg0: i32, %arg1: i32) -> (i32, i32, i32) {
    %c0_i32 = arith.constant 0 : i32
    %c0_i32_0 = arith.constant 0 : i32
    return %arg0, %arg1, %c0_i32 : i32, i32, i32
  }
  func.func @transform_4(%arg0: i32, %arg1: i32) -> (i32, i32, i32) {
    %c0_i32 = arith.constant 0 : i32
    %c0_i32_0 = arith.constant 0 : i32
    return %arg0, %arg1, %c0_i32 : i32, i32, i32
  }
}

module attributes {stable_mosaic.version = 11 : i64} {
  func.func @_cbs3_concat_kernel(%arg0: i32, %arg1: memref<128x4xbf16, #tpu.memory_space<vmem>>, %arg2: memref<128x4xbf16, #tpu.memory_space<vmem>>, %arg3: memref<128x4xbf16, #tpu.memory_space<vmem>>, %arg4: memref<4x8xbf16, #tpu.memory_space<vmem>>, %arg5: memref<4x8xbf16, #tpu.memory_space<vmem>>, %arg6: memref<1x8xf32, #tpu.memory_space<vmem>>, %arg7: memref<128x8xbf16, #tpu.memory_space<vmem>>) attributes {dimension_semantics = [#tpu.dimension_semantics<parallel>], iteration_bounds = array<i64: 4>, scalar_prefetch = 0 : i64, scratch_operands = 0 : i64, tpu.core_type = #tpu.core_type<tc>, window_params = [{transform_indices = @transform_0, window_bounds = array<i64: 128, 4>}, {transform_indices = @transform_1, window_bounds = array<i64: 128, 4>}, {transform_indices = @transform_2, window_bounds = array<i64: 128, 4>}, {pipeline_mode = #tpu.pipeline_mode<synchronous>, transform_indices = @transform_3, window_bounds = array<i64: 4, 8>}, {pipeline_mode = #tpu.pipeline_mode<synchronous>, transform_indices = @transform_4, window_bounds = array<i64: 4, 8>}, {pipeline_mode = #tpu.pipeline_mode<synchronous>, transform_indices = @transform_5, window_bounds = array<i64: 1, 8>}, {transform_indices = @transform_6, window_bounds = array<i64: 128, 8>}]} {
    %c0 = arith.constant 0 : index
    %c0_0 = arith.constant 0 : index
    %0 = vector.load %arg1[%c0, %c0_0] : memref<128x4xbf16, #tpu.memory_space<vmem>>, vector<128x4xbf16>
    %c0_1 = arith.constant 0 : index
    %c0_2 = arith.constant 0 : index
    %1 = vector.load %arg4[%c0_1, %c0_2] : memref<4x8xbf16, #tpu.memory_space<vmem>>, vector<4x8xbf16>
    %cst = arith.constant dense<0.000000e+00> : vector<128x8xf32>
    %2 = tpu.matmul %0, %1, %cst {dimension_numbers = #tpu.dot_dimension_numbers<[1], [0], [0], [1], [0, 0, 1, 1], [], []>} : vector<128x4xbf16>, vector<4x8xbf16>, vector<128x8xf32> -> vector<128x8xf32>
    %c0_3 = arith.constant 0 : index
    %c0_4 = arith.constant 0 : index
    %3 = vector.load %arg2[%c0_3, %c0_4] : memref<128x4xbf16, #tpu.memory_space<vmem>>, vector<128x4xbf16>
    %c0_5 = arith.constant 0 : index
    %c0_6 = arith.constant 0 : index
    %4 = vector.load %arg4[%c0_5, %c0_6] : memref<4x8xbf16, #tpu.memory_space<vmem>>, vector<4x8xbf16>
    %cst_7 = arith.constant dense<0.000000e+00> : vector<128x8xf32>
    %5 = tpu.matmul %3, %4, %cst_7 {dimension_numbers = #tpu.dot_dimension_numbers<[1], [0], [0], [1], [0, 0, 1, 1], [], []>} : vector<128x4xbf16>, vector<4x8xbf16>, vector<128x8xf32> -> vector<128x8xf32>
    %6 = arith.addf %2, %5 : vector<128x8xf32>
    %c0_8 = arith.constant 0 : index
    %c0_9 = arith.constant 0 : index
    %7 = vector.load %arg3[%c0_8, %c0_9] : memref<128x4xbf16, #tpu.memory_space<vmem>>, vector<128x4xbf16>
    %c0_10 = arith.constant 0 : index
    %c0_11 = arith.constant 0 : index
    %8 = vector.load %arg5[%c0_10, %c0_11] : memref<4x8xbf16, #tpu.memory_space<vmem>>, vector<4x8xbf16>
    %cst_12 = arith.constant dense<0.000000e+00> : vector<128x8xf32>
    %9 = tpu.matmul %7, %8, %cst_12 {dimension_numbers = #tpu.dot_dimension_numbers<[1], [0], [0], [1], [0, 0, 1, 1], [], []>} : vector<128x4xbf16>, vector<4x8xbf16>, vector<128x8xf32> -> vector<128x8xf32>
    %10 = arith.addf %6, %9 : vector<128x8xf32>
    %c0_13 = arith.constant 0 : index
    %c0_14 = arith.constant 0 : index
    %11 = vector.load %arg6[%c0_13, %c0_14] : memref<1x8xf32, #tpu.memory_space<vmem>>, vector<1x8xf32>
    %12 = vector.broadcast %11 : vector<1x8xf32> to vector<128x8xf32>
    %13 = arith.addf %10, %12 : vector<128x8xf32>
    %14 = arith.negf %13 : vector<128x8xf32>
    %15 = math.exp %14 : vector<128x8xf32>
    %cst_15 = arith.constant 1.000000e+00 : f32
    %16 = vector.broadcast %cst_15 : f32 to vector<128x8xf32>
    %17 = arith.addf %16, %15 : vector<128x8xf32>
    %18 = arith.divf %16, %17 : vector<128x8xf32>
    %19 = arith.mulf %13, %18 : vector<128x8xf32>
    %20 = arith.truncf %19 : vector<128x8xf32> to vector<128x8xbf16>
    %c0_16 = arith.constant 0 : index
    %c0_17 = arith.constant 0 : index
    %21 = vector.load %arg7[%c0_16, %c0_17] : memref<128x8xbf16, #tpu.memory_space<vmem>>, vector<128x8xbf16>
    tpu.vector_store %arg7[%c0_16, %c0_17], %20 {strides = array<i32>} : memref<128x8xbf16, #tpu.memory_space<vmem>>, vector<128x8xbf16>,
    return
  }
  func.func @transform_0(%arg0: i32) -> (i32, i32) {
    %c0_i32 = arith.constant 0 : i32
    %c0_i32_0 = arith.constant 0 : i32
    return %arg0, %c0_i32 : i32, i32
  }
  func.func @transform_1(%arg0: i32) -> (i32, i32) {
    %c0_i32 = arith.constant 0 : i32
    %c0_i32_0 = arith.constant 0 : i32
    return %arg0, %c0_i32 : i32, i32
  }
  func.func @transform_2(%arg0: i32) -> (i32, i32) {
    %c0_i32 = arith.constant 0 : i32
    %c0_i32_0 = arith.constant 0 : i32
    return %arg0, %c0_i32 : i32, i32
  }
  func.func @transform_3(%arg0: i32) -> (i32, i32) {
    %c0_i32 = arith.constant 0 : i32
    %c0_i32_0 = arith.constant 0 : i32
    %c0_i32_1 = arith.constant 0 : i32
    return %c0_i32, %c0_i32_0 : i32, i32
  }
  func.func @transform_4(%arg0: i32) -> (i32, i32) {
    %c0_i32 = arith.constant 0 : i32
    %c0_i32_0 = arith.constant 0 : i32
    %c0_i32_1 = arith.constant 0 : i32
    return %c0_i32, %c0_i32_0 : i32, i32
  }
  func.func @transform_5(%arg0: i32) -> (i32, i32) {
    %c0_i32 = arith.constant 0 : i32
    %c0_i32_0 = arith.constant 0 : i32
    %c0_i32_1 = arith.constant 0 : i32
    return %c0_i32, %c0_i32_0 : i32, i32
  }
  func.func @transform_6(%arg0: i32) -> (i32, i32) {
    %c0_i32 = arith.constant 0 : i32
    %c0_i32_0 = arith.constant 0 : i32
    return %arg0, %c0_i32 : i32, i32
  }
}

</mosaic_0001>

<bundles_post_ra>
// kernel: c3_forward.5
= control target key start
LH: loop header
LB: loop body
LE: loop exit
PB: predicated region body
PF: predicated region fallthrough
CT: control target
= control target key end

     0   :  { %s902_s12 = smov 0   ;;  %s1270_s0 = inlined_call_operand.vmem [shape: bf16[512,4], index: 0, kind: input, shape index: {}]   ;;  %s1271_s1 = inlined_call_operand.vmem [shape: bf16[4,4], index: 1, kind: input, shape index: {}]   ;;  %s1272_s2 = inlined_call_operand.vmem [shape: f32[1,4], index: 2, kind: input, shape index: {}]   ;;  %s1273_s3 = inlined_call_operand.vmem [shape: bf16[512,4], index: 3, kind: output, shape index: {}]  }
   0x1 LB: > { %s723_s13 = sadd.s32 4294967295, %s880_s12   ;;  %p727_p0 = scmp.ge.s32.totalorder %s880_s12, 1  ;;  %s880_s12 = sphi %s902_s12, %s13_s12  }
   0x2   : > { %p138_p1 = scmp.lt.s32.totalorder %s880_s12, 5 }
   0x4   : > { %p139_p2 = pnand %p727_p0, %p138_p1 }
   0x5   : > { %s728_s16 = sshll.u32 (!%p139_p2), %s723_s13, 4 }
   0x6   : > { %142 = sbr.rel (%p139_p2) target bundleno = 237 (0xed), region = 32  ;;  %p163_p3 = scmp.lt.s32.totalorder (!%p139_p2), %s728_s16, 63 }
   0xb   : > { %v191_v0 = vld [vmem:[%s1271_s1] sm:$0x3]  ;;  %vm261_vm0 = vcmask 1041408   ;;  %s1297_s16 = smov (!%p163_p3, %s728_s16), 63  ;;  %vm236_vm1 = vcmask 31744   ;;  %vm650_vm7 = vcmask 27648  }
   0xc   : > { %v263_v1 = vsel %vm261_vm0, %v191_v0, 0  ;;  %s729_s17 = sshll.u32 %s1297_s16, 2  ;;  %v932_v10 = vld [vmem:[%s1272_s2] ss:$0 sm:$0xff] }
   0xd   : > { %272 = vmatpush.bf16.msra.mxu0 %v263_v1  ;;  %798 = vmatpush.bf16.msra.mxu1 %v263_v1  ;;  %s166_s20 = scalar_lea.vmem %s1270_s0, %s729_s17  ;;  %s1048_s25 = scalar_lea.vmem %s1273_s3, %s729_s17 }
   0xe   : > { %799 = vmatpush.bf16.msra.mxu2 %v263_v1  ;;  %800 = vmatpush.bf16.msra.mxu3 %v263_v1  ;;  %v790_v2 = vld [vmem:[%s166_s20] sm:$0xff]  ;;  %v792_v3 = vld [vmem:[%s166_s20 + $0x10] sm:$0xff]  ;;  %v791_v6 = vld [vmem:[%s166_s20 + $0x8] sm:$0xff] }
   0xf   : > { %v794_v4 = vld [vmem:[%s166_s20 + $0x20] sm:$0xff]  ;;  %v796_v5 = vld [vmem:[%s166_s20 + $0x30] sm:$0xff]  ;;  %v793_v7 = vld [vmem:[%s166_s20 + $0x18] sm:$0xff] }
  0x10   : > { %764 = vmatmul.msk.bf16.vlgmr.msra.gmra.mxu0 %vm236_vm1, %v790_v2  ;;  %766 = vmatmul.msk.bf16.vlgmr.msra.gmra.mxu1 %vm236_vm1, %v792_v3  ;;  %v795_v8 = vld [vmem:[%s166_s20 + $0x28] sm:$0xff]  ;;  %v797_v9 = vld [vmem:[%s166_s20 + $0x38] sm:$0xff] }
  0x11   : > { %768 = vmatmul.msk.bf16.vlgmr.msra.gmra.mxu2 %vm236_vm1, %v794_v4  ;;  %770 = vmatmul.msk.bf16.vlgmr.msra.gmra.mxu3 %vm236_vm1, %v796_v5 }
  0x20   : > { %765 = vmatmul.msk.bf16.gmra.mxu0 %vm236_vm1, %v791_v6  ;;  %767 = vmatmul.msk.bf16.gmra.mxu1 %vm236_vm1, %v793_v7 }
  0x21   : > { %769 = vmatmul.msk.bf16.gmra.mxu2 %vm236_vm1, %v795_v8  ;;  %771 = vmatmul.msk.bf16.gmra.mxu3 %vm236_vm1, %v797_v9 }
  0x8d   : > { %v274_v11 = vpop.f32.mrf.mxu0  ;;  %v284_v12 = vpop.f32.mrf.mxu1 }
  0x8e   : > { %v935_v13 = vadd.f32 %v932_v10, %v274_v11  ;;  %v938_v14 = vadd.f32 %v932_v10, %v284_v12 }
  0x90   : > { %v772_v15 = vmul.f32 -1.442695, %v935_v13  ;;  %v776_v16 = vmul.f32 -1.442695, %v938_v14 }
  0x92   : > { %810 = vpow2.f32 %v772_v15 }
  0x93   : > { %812 = vpow2.f32 %v776_v16 }
  0x94   : > { %v294_v17 = vpop.f32.mrf.mxu2  ;;  %v304_v18 = vpop.f32.mrf.mxu3 }
  0x95   : > { %v943_v19 = vadd.f32 %v932_v10, %v294_v17  ;;  %v946_v20 = vadd.f32 %v932_v10, %v304_v18  ;;  %v276_v21 = vpop.f32.mrf.mxu0  ;;  %v286_v22 = vpop.f32.mrf.mxu1 }
  0x96   : > { %v949_v23 = vadd.f32 %v932_v10, %v276_v21  ;;  %v952_v24 = vadd.f32 %v932_v10, %v286_v22 }
  0x97   : > { %v780_v25 = vmul.f32 -1.442695, %v943_v19  ;;  %v784_v26 = vmul.f32 -1.442695, %v946_v20 }
  0x98   : > { %v811_v27 = vpop.eup %810  ;;  %v773_v30 = vmul.f32 -1.442695, %v949_v23  ;;  %v777_v32 = vmul.f32 -1.442695, %v952_v24 }
  0x99   : > { %v813_v28 = vpop.eup %812  ;;  %v956_v29 = vadd.f32 1.0, %v811_v27  ;;  %814 = vpow2.f32 %v780_v25 }
  0x9a   : > { %v959_v31 = vadd.f32 1.0, %v813_v28  ;;  %816 = vpow2.f32 %v784_v26 }
  0x9b   : > { %818 = vrcp.f32 %v956_v29  ;;  %v387_v37 = vand.u32 2147483647, %v956_v29  ;;  %v389_v38 = vand.u32 2147483648, %v956_v29  ;;  %vm383_vm2 = vweird.f32 %v956_v29 }
  0x9c   : > { %820 = vrcp.f32 %v959_v31  ;;  %v296_v33 = vpop.f32.mrf.mxu2  ;;  %v306_v34 = vpop.f32.mrf.mxu3  ;;  %v447_v40 = vand.u32 2147483647, %v959_v31  ;;  %v449_v41 = vand.u32 2147483648, %v959_v31  ;;  %vm443_vm3 = vweird.f32 %v959_v31 }
  0x9d   : > { %822 = vpow2.f32 %v773_v30  ;;  %v965_v35 = vadd.f32 %v932_v10, %v296_v33  ;;  %v279_v36 = vpop.f32.mrf.mxu0  ;;  %v973_v43 = vadd.f32 %v932_v10, %v306_v34  ;;  %v289_v49 = vpop.f32.mrf.mxu1  ;;  %vm985_vm4 = vcmp.eq.f32.partialorder %v387_v37, 8.507059e+37 }
  0x9e   : > { %824 = vpow2.f32 %v777_v32  ;;  %v978_v46 = vadd.f32 %v932_v10, %v279_v36  ;;  %v390_v53 = vor.u32 1.1754944e-38, %v389_v38  ;;  %vm991_vm5 = vcmp.eq.f32.partialorder %v447_v40, 8.507059e+37 }
  0x9f   : > { %v815_v39 = vpop.eup %814  ;;  %v781_v42 = vmul.f32 -1.442695, %v965_v35  ;;  %v450_v57 = vor.u32 1.1754944e-38, %v449_v41  ;;  %v785_v58 = vmul.f32 -1.442695, %v973_v43  ;;  %v1001_v62 = vadd.f32 %v932_v10, %v289_v49 }
  0xa0   : > { %v817_v44 = vpop.eup %816  ;;  %v975_v45 = vadd.f32 1.0, %v815_v39  ;;  %v998_v61 = vmul.f32 -1.442695, %v978_v46 }
  0xa1   : > { %v819_v47 = vpop.eup %818  ;;  %v982_v48 = vadd.f32 1.0, %v817_v44  ;;  %v1014_v11 = vmul.f32 -1.442695, %v1001_v62 }
  0xa2   : > { %v821_v50 = vpop.eup %820  ;;  %v379_v51 = vmul.f32 %v819_v47, %v956_v29  ;;  %826 = vrcp.f32 %v975_v45  ;;  %vm384_vm6 = vweird.f32 %v819_v47  ;;  %v507_v0 = vand.u32 2147483647, %v975_v45 }
  0xa3   : > { %v823_v54 = vpop.eup %822  ;;  %v439_v55 = vmul.f32 %v821_v50, %v959_v31  ;;  %828 = vpow2.f32 %v781_v42  ;;  %v509_v1 = vand.u32 2147483648, %v975_v45  ;;  %v569_v3 = vand.u32 2147483648, %v982_v48  ;;  %vm385_vm10 = vmor %vm383_vm2, %vm384_vm6 }
  0xa4   : > { %v825_v59 = vpop.eup %824  ;;  %v380_v60 = vsub.f32 1.0, %v379_v51  ;;  %830 = vrcp.f32 %v982_v48  ;;  %v1006_v4 = vadd.f32 1.0, %v823_v54  ;;  %vm444_vm8 = vweird.f32 %v821_v50  ;;  %v299_v18 = vpop.f32.mrf.mxu2 }
  0xa5   : > { %v440_v63 = vsub.f32 1.0, %v439_v55  ;;  %v1008_v5 = vadd.f32 1.0, %v825_v59  ;;  %v567_v7 = vand.u32 2147483647, %v982_v48  ;;  %832 = vpow2.f32 %v785_v58  ;;  %vm445_vm13 = vmor %vm443_vm3, %vm444_vm8 }
  0xa6   : > { %v381_v2 = vmul.f32 %v819_v47, %v380_v60  ;;  %vm503_vm9 = vweird.f32 %v975_v45  ;;  %834 = vrcp.f32 %v1006_v4  ;;  %vm1020_vm11 = vcmp.eq.f32.partialorder %v507_v0, 8.507059e+37 }
  0xa7   : > { %v441_v6 = vmul.f32 %v821_v50, %v440_v63  ;;  %vm563_vm12 = vweird.f32 %v982_v48  ;;  %v510_v25 = vor.u32 1.1754944e-38, %v509_v1  ;;  %v570_v26 = vor.u32 1.1754944e-38, %v569_v3 }
  0xa8   : > { %v827_v8 = vpop.eup %826  ;;  %v382_v9 = vadd.f32 %v819_v47, %v381_v2  ;;  %836 = vrcp.f32 %v1008_v5  ;;  %vm1032_vm14 = vcmp.eq.f32.partialorder %v567_v7, 8.507059e+37  ;;  %v402_v34 = vand.u32 2147483647, %v1006_v4 }
  0xa9   : > { %v829_v12 = vpop.eup %828  ;;  %v442_v15 = vadd.f32 %v821_v50, %v441_v6  ;;  %v499_v16 = vmul.f32 %v827_v8, %v975_v45  ;;  %v1041_v36 = vadd.f32 %v932_v10, %v299_v18  ;;  %vm504_vm15 = vweird.f32 %v827_v8 }
  0xaa   : > { %v831_v21 = vpop.eup %830  ;;  %v386_v22 = vsel %vm385_vm10, %v819_v47, %v382_v9  ;;  %vm398_vm0 = vweird.f32 %v1006_v4  ;;  %v404_v42 = vand.u32 2147483648, %v1006_v4  ;;  %v1053_v44 = vadd.f32 1.0, %v829_v12  ;;  %vm505_vm2 = vmor %vm503_vm9, %vm504_vm15 }
  0xab   : > { %v391_v27 = vsel %vm985_vm4, %v390_v53, %v386_v22  ;;  %v446_v28 = vsel %vm445_vm13, %v821_v50, %v442_v15  ;;  %v500_v29 = vsub.f32 1.0, %v499_v16  ;;  %v559_v30 = vmul.f32 %v831_v21, %v982_v48  ;;  %v833_v37 = vpop.eup %832 }
  0xac   : > { %v618_v33 = vmul.f32 %v391_v27, %v935_v13  ;;  %v451_v31 = vsel %vm991_vm5, %v450_v57, %v446_v28  ;;  %v835_v40 = vpop.eup %834  ;;  %vm564_vm1 = vweird.f32 %v831_v21  ;;  %vm1060_vm3 = vcmp.eq.f32.partialorder %v402_v34, 8.507059e+37 }
  0xad   : > { %v622_v38 = vmul.f32 %v451_v31, %v938_v14  ;;  %v501_v39 = vmul.f32 %v827_v8, %v500_v29  ;;  %v560_v13 = vsub.f32 1.0, %v559_v30  ;;  %v394_v51 = vmul.f32 %v835_v40, %v1006_v4  ;;  %vm565_vm5 = vmor %vm563_vm12, %vm564_vm1  ;;  %v281_v29 = vpop.f32.mrf.mxu0  ;;  %v291_v31 = vpop.f32.mrf.mxu1 }
  0xae   : > { %v634_v41 = vpack.c.bf16 %v618_v33, %v618_v33  ;;  %v837_v52 = vpop.eup %836  ;;  %vm458_vm4 = vweird.f32 %v1008_v5  ;;  %838 = vrcp.f32 %v1053_v44  ;;  %v1066_v53 = vadd.f32 1.0, %v833_v37 }
  0xaf   : > { %v638_v47 = vpack.c.bf16 %v622_v38, %v622_v38  ;;  %v502_v49 = vadd.f32 %v827_v8, %v501_v39  ;;  %v561_v50 = vmul.f32 %v831_v21, %v560_v13  ;;  %v395_v56 = vsub.f32 1.0, %v394_v51 }
  0xb0   : > { %651 = vst.msk [vmem:[%s1048_s25] sm:$0xf] %vm650_vm7, %v634_v41  ;;  %v454_v57 = vmul.f32 %v837_v52, %v1008_v5  ;;  %vm399_vm6 = vweird.f32 %v835_v40  ;;  %v462_v58 = vand.u32 2147483647, %v1008_v5  ;;  %v464_v59 = vand.u32 2147483648, %v1008_v5 }
  0xb1   : > { %655 = vst.msk [vmem:[%s1048_s25 + $0x10] sm:$0xf] %vm650_vm7, %v638_v47  ;;  %v506_v54 = vsel %vm505_vm2, %v827_v8, %v502_v49  ;;  %v562_v55 = vadd.f32 %v831_v21, %v561_v50  ;;  %v396_v0 = vmul.f32 %v835_v40, %v395_v56  ;;  %vm459_vm8 = vweird.f32 %v837_v52  ;;  %vm400_vm9 = vmor %vm398_vm0, %vm399_vm6 }
  0xb2   : > { %v511_v45 = vsel %vm1020_vm11, %v510_v25, %v506_v54  ;;  %v455_v1 = vsub.f32 1.0, %v454_v57  ;;  %v522_v3 = vand.u32 2147483647, %v1053_v44  ;;  %840 = vrcp.f32 %v1066_v53  ;;  %vm460_vm12 = vmor %vm458_vm4, %vm459_vm8  ;;  %v301_v54 = vpop.f32.mrf.mxu2 }
  0xb3   : > { %v626_v60 = vmul.f32 %v511_v45, %v943_v19  ;;  %v566_v63 = vsel %vm565_vm5, %v831_v21, %v562_v55  ;;  %v397_v7 = vadd.f32 %v835_v40, %v396_v0  ;;  %v405_v19 = vor.u32 1.1754944e-38, %v404_v42  ;;  %v309_v21 = vpop.f32.mrf.mxu3 }
  0xb4   : > { %v571_v2 = vsel %vm1032_vm14, %v570_v26, %v566_v63  ;;  %v456_v8 = vmul.f32 %v837_v52, %v455_v1  ;;  %v839_v9 = vpop.eup %838  ;;  %vm1087_vm10 = vcmp.eq.f32.partialorder %v462_v58, 8.507059e+37  ;;  %v465_v15 = vor.u32 1.1754944e-38, %v464_v59 }
  0xb5   : > { %v642_v48 = vpack.c.bf16 %v626_v60, %v626_v60  ;;  %v630_v6 = vmul.f32 %v571_v2, %v946_v20  ;;  %vm518_vm11 = vweird.f32 %v1053_v44  ;;  %v401_v20 = vsel %vm400_vm9, %v835_v40, %v397_v7 }
  0xb6   : > { %v457_v17 = vadd.f32 %v837_v52, %v456_v8  ;;  %v514_v18 = vmul.f32 %v839_v9, %v1053_v44  ;;  %v406_v4 = vsel %vm1060_vm3, %v405_v19, %v401_v20  ;;  %vm519_vm13 = vweird.f32 %v839_v9 }
  0xb7   : > { %659 = vst.msk [vmem:[%s1048_s25 + $0x20] sm:$0xf] %vm650_vm7, %v642_v48  ;;  %v646_v16 = vpack.c.bf16 %v630_v6, %v630_v6  ;;  %vm1100_vm14 = vcmp.eq.f32.partialorder %v522_v3, 8.507059e+37  ;;  %v524_v25 = vand.u32 2147483648, %v1053_v44  ;;  %v619_v26 = vmul.f32 %v406_v4, %v949_v23  ;;  %vm520_vm15 = vmor %vm518_vm11, %vm519_vm13 }
  0xb8   : > { %v461_v27 = vsel %vm460_vm12, %v837_v52, %v457_v17  ;;  %v515_v28 = vsub.f32 1.0, %v514_v18  ;;  %842 = vpow2.f32 %v998_v61  ;;  %v841_v30 = vpop.eup %840  ;;  %v782_v32 = vmul.f32 -1.442695, %v1041_v36 }
  0xb9   : > { %663 = vst.msk [vmem:[%s1048_s25 + $0x30] sm:$0xf] %vm650_vm7, %v646_v16  ;;  %v466_v5 = vsel %vm1087_vm10, %v465_v15, %v461_v27  ;;  %844 = vpow2.f32 %v1014_v11  ;;  %v1114_v33 = vadd.f32 %v932_v10, %v309_v21  ;;  %v635_v34 = vpack.c.bf16 %v619_v26, %v619_v26 }
  0xba   : > { %v623_v23 = vmul.f32 %v466_v5, %v952_v24  ;;  %v516_v37 = vmul.f32 %v839_v9, %v515_v28  ;;  %v574_v61 = vmul.f32 %v841_v30, %v1066_v53  ;;  %v525_v38 = vor.u32 1.1754944e-38, %v524_v25 }
  0xbb   : > { %846 = vpow2.f32 %v782_v32  ;;  %v786_v39 = vmul.f32 -1.442695, %v1114_v33  ;;  %v1120_v13 = vadd.f32 %v932_v10, %v281_v29  ;;  %652 = vst.msk [vmem:[%s1048_s25 + $0x4] sm:$0xf] %vm650_vm7, %v635_v34  ;;  %v1125_v42 = vadd.f32 %v932_v10, %v291_v31  ;;  %v311_v59 = vpop.f32.mrf.mxu3 }
  0xbc   : > { %v639_v11 = vpack.c.bf16 %v623_v23, %v623_v23  ;;  %v517_v40 = vadd.f32 %v839_v9, %v516_v37  ;;  %v575_v41 = vsub.f32 1.0, %v574_v61  ;;  %v582_v24 = vand.u32 2147483647, %v1066_v53 }
  0xbd   : > { %v584_v47 = vand.u32 2147483648, %v1066_v53  ;;  %848 = vpow2.f32 %v786_v39  ;;  %v775_v49 = vmul.f32 -1.442695, %v1120_v13  ;;  %vm579_vm0 = vweird.f32 %v841_v30 }
  0xbe   : > { %v843_v50 = vpop.eup %842  ;;  %656 = vst.msk [vmem:[%s1048_s25 + $0x14] sm:$0xf] %vm650_vm7, %v639_v11  ;;  %v521_v51 = vsel %vm520_vm15, %v839_v9, %v517_v40  ;;  %v576_v52 = vmul.f32 %v841_v30, %v575_v41  ;;  %v779_v14 = vmul.f32 -1.442695, %v1125_v42  ;;  %vm578_vm1 = vweird.f32 %v1066_v53 }
  0xbf   : > { %v845_v55 = vpop.eup %844  ;;  %v526_v44 = vsel %vm1100_vm14, %v525_v38, %v521_v51  ;;  %v1139_v56 = vadd.f32 1.0, %v843_v50  ;;  %850 = vpow2.f32 %v775_v49  ;;  %vm580_vm2 = vmor %vm578_vm1, %vm579_vm0  ;;  %v585_v63 = vor.u32 1.1754944e-38, %v584_v47 }
  0xc0   : > { %v627_v57 = vmul.f32 %v526_v44, %v965_v35  ;;  %v577_v45 = vadd.f32 %v841_v30, %v576_v52  ;;  %v1142_v58 = vadd.f32 1.0, %v845_v55  ;;  %852 = vpow2.f32 %v779_v14 }
  0xc1   : > { %v847_v60 = vpop.eup %846  ;;  %854 = vrcp.f32 %v1139_v56  ;;  %v1146_v0 = vadd.f32 %v932_v10, %v301_v54  ;;  %vm583_vm3 = vcmp.eq.f32.partialorder %v582_v24, 8.507059e+37  ;;  %v417_v3 = vand.u32 2147483647, %v1139_v56 }
  0xc2   : > { %v643_v53 = vpack.c.bf16 %v627_v57, %v627_v57  ;;  %v581_v1 = vsel %vm580_vm2, %v841_v30, %v577_v45  ;;  %856 = vrcp.f32 %v1142_v58  ;;  %v1151_v48 = vadd.f32 %v932_v10, %v311_v59 }
  0xc3   : > { %v849_v35 = vpop.eup %848  ;;  %v586_v2 = vsel %vm583_vm3, %v585_v63, %v581_v1  ;;  %v419_v7 = vand.u32 2147483648, %v1139_v56  ;;  %v1157_v8 = vadd.f32 1.0, %v847_v60  ;;  %v477_v12 = vand.u32 2147483647, %v1142_v58 }
  0xc4   : > { %660 = vst.msk [vmem:[%s1048_s25 + $0x24] sm:$0xf] %vm650_vm7, %v643_v53  ;;  %v631_v6 = vmul.f32 %v586_v2, %v973_v43  ;;  %v1159_v9 = vadd.f32 1.0, %v849_v35  ;;  %v479_v15 = vand.u32 2147483648, %v1142_v58  ;;  %v783_v16 = vmul.f32 -1.442695, %v1146_v0 }
  0xc5   : > { %v851_v19 = vpop.eup %850  ;;  %858 = vrcp.f32 %v1157_v8  ;;  %vm413_vm4 = vweird.f32 %v1139_v56  ;;  %v787_v43 = vmul.f32 -1.442695, %v1151_v48  ;;  %vm1171_vm5 = vcmp.eq.f32.partialorder %v417_v3, 8.507059e+37 }
  0xc6   : > { %v853_v10 = vpop.eup %852  ;;  %v647_v20 = vpack.c.bf16 %v631_v6, %v631_v6  ;;  %860 = vrcp.f32 %v1159_v9  ;;  %v420_v22 = vor.u32 1.1754944e-38, %v419_v7  ;;  %vm473_vm6 = vweird.f32 %v1142_v58 }
  0xc7   : > { %v855_v17 = vpop.eup %854  ;;  %vm1177_vm8 = vcmp.eq.f32.partialorder %v477_v12, 8.507059e+37  ;;  %v480_v27 = vor.u32 1.1754944e-38, %v479_v15  ;;  %862 = vpow2.f32 %v783_v16  ;;  %v537_v29 = vand.u32 2147483647, %v1157_v8 }
  0xc8   : > { %v857_v18 = vpop.eup %856  ;;  %664 = vst.msk [vmem:[%s1048_s25 + $0x34] sm:$0xf] %vm650_vm7, %v647_v20  ;;  %v409_v21 = vmul.f32 %v855_v17, %v1139_v56  ;;  %v539_v30 = vand.u32 2147483648, %v1157_v8  ;;  %v1183_v5 = vadd.f32 1.0, %v851_v19  ;;  %vm414_vm9 = vweird.f32 %v855_v17 }
  0xc9   : > { %v469_v25 = vmul.f32 %v857_v18, %v1142_v58  ;;  %v1185_v31 = vadd.f32 1.0, %v853_v10  ;;  %864 = vpow2.f32 %v787_v43  ;;  %v597_v37 = vand.u32 2147483647, %v1159_v9  ;;  %vm415_vm14 = vmor %vm413_vm4, %vm414_vm9 }
  0xca   : > { %v410_v28 = vsub.f32 1.0, %v409_v21  ;;  %v599_v61 = vand.u32 2147483648, %v1159_v9  ;;  %866 = vrcp.f32 %v1183_v5  ;;  %vm474_vm10 = vweird.f32 %v857_v18 }
  0xcb   : > { %v470_v32 = vsub.f32 1.0, %v469_v25  ;;  %v859_v34 = vpop.eup %858  ;;  %vm533_vm11 = vweird.f32 %v1157_v8  ;;  %vm1192_vm12 = vcmp.eq.f32.partialorder %v537_v29, 8.507059e+37  ;;  %vm593_vm13 = vweird.f32 %v1159_v9  ;;  %vm475_vm15 = vmor %vm473_vm6, %vm474_vm10 }
  0xcc   : > { %v411_v23 = vmul.f32 %v855_v17, %v410_v28  ;;  %v861_v38 = vpop.eup %860  ;;  %v529_v11 = vmul.f32 %v859_v34, %v1157_v8  ;;  %v540_v51 = vor.u32 1.1754944e-38, %v539_v30  ;;  %868 = vrcp.f32 %v1185_v31 }
  0xcd   : > { %v471_v39 = vmul.f32 %v857_v18, %v470_v32  ;;  %v589_v24 = vmul.f32 %v861_v38, %v1159_v9  ;;  %v863_v47 = vpop.eup %862  ;;  %vm1204_vm0 = vcmp.eq.f32.partialorder %v597_v37, 8.507059e+37  ;;  %v600_v55 = vor.u32 1.1754944e-38, %v599_v61 }
  0xce   : > { %v412_v40 = vadd.f32 %v855_v17, %v411_v23  ;;  %v530_v50 = vsub.f32 1.0, %v529_v11  ;;  %vm534_vm1 = vweird.f32 %v859_v34  ;;  %vm594_vm2 = vweird.f32 %v861_v38 }
  0xcf   : > { %v472_v49 = vadd.f32 %v857_v18, %v471_v39  ;;  %v590_v14 = vsub.f32 1.0, %v589_v24  ;;  %v865_v44 = vpop.eup %864  ;;  %v432_v2 = vand.u32 2147483647, %v1183_v5  ;;  %vm535_vm3 = vmor %vm533_vm11, %vm534_vm1  ;;  %v1219_v7 = vadd.f32 1.0, %v863_v47 }
  0xd0   : > { %v416_v52 = vsel %vm415_vm14, %v855_v17, %v412_v40  ;;  %v531_v45 = vmul.f32 %v859_v34, %v530_v50  ;;  %v867_v59 = vpop.eup %866  ;;  %vm595_vm4 = vmor %vm593_vm13, %vm594_vm2  ;;  %v1223_v16 = vadd.f32 1.0, %v865_v44  ;;  %vm428_vm6 = vweird.f32 %v1183_v5 }
  0xd1   : > { %v421_v56 = vsel %vm1171_vm5, %v420_v22, %v416_v52  ;;  %v476_v57 = vsel %vm475_vm15, %v857_v18, %v472_v49  ;;  %v591_v63 = vmul.f32 %v861_v38, %v590_v14  ;;  %v424_v35 = vmul.f32 %v867_v59, %v1183_v5 }
  0xd2   : > { %v620_v60 = vmul.f32 %v421_v56, %v978_v46  ;;  %v481_v58 = vsel %vm1177_vm8, %v480_v27, %v476_v57  ;;  %v532_v1 = vadd.f32 %v859_v34, %v531_v45  ;;  %v434_v46 = vand.u32 2147483648, %v1183_v5  ;;  %v869_v19 = vpop.eup %868 }
  0xd3   : > { %v624_v53 = vmul.f32 %v481_v58, %v1001_v62  ;;  %v592_v6 = vadd.f32 %v861_v38, %v591_v63  ;;  %v425_v62 = vsub.f32 1.0, %v424_v35  ;;  %vm429_vm5 = vweird.f32 %v867_v59 }
  0xd4   : > { %v636_v3 = vpack.c.bf16 %v620_v60, %v620_v60  ;;  %v536_v15 = vsel %vm535_vm3, %v859_v34, %v532_v1  ;;  %v484_v20 = vmul.f32 %v869_v19, %v1185_v31  ;;  %870 = vrcp.f32 %v1219_v7  ;;  %vm430_vm8 = vmor %vm428_vm6, %vm429_vm5 }
  0xd5   : > { %v640_v12 = vpack.c.bf16 %v624_v53, %v624_v53  ;;  %v541_v8 = vsel %vm1192_vm12, %v540_v51, %v536_v15  ;;  %v596_v10 = vsel %vm595_vm4, %v861_v38, %v592_v6  ;;  %v426_v43 = vmul.f32 %v867_v59, %v425_v62 }
  0xd6   : > { %653 = vst.msk [vmem:[%s1048_s25 + $0x8] sm:$0xf] %vm650_vm7, %v636_v3  ;;  %v628_v17 = vmul.f32 %v541_v8, %v1041_v36  ;;  %v601_v9 = vsel %vm1204_vm0, %v600_v55, %v596_v10  ;;  %v435_v21 = vor.u32 1.1754944e-38, %v434_v46  ;;  %v485_v4 = vsub.f32 1.0, %v484_v20 }
  0xd7   : > { %657 = vst.msk [vmem:[%s1048_s25 + $0x18] sm:$0xf] %vm650_vm7, %v640_v12  ;;  %v632_v18 = vmul.f32 %v601_v9, %v1114_v33  ;;  %v427_v25 = vadd.f32 %v867_v59, %v426_v43  ;;  %v494_v26 = vand.u32 2147483648, %v1185_v31  ;;  %872 = vrcp.f32 %v1223_v16 }
  0xd8   : > { %v644_v22 = vpack.c.bf16 %v628_v17, %v628_v17  ;;  %v486_v27 = vmul.f32 %v869_v19, %v485_v4  ;;  %vm489_vm9 = vweird.f32 %v869_v19  ;;  %v492_v28 = vand.u32 2147483647, %v1185_v31 }
  0xd9   : > { %v648_v36 = vpack.c.bf16 %v632_v18, %v632_v18  ;;  %v431_v33 = vsel %vm430_vm8, %v867_v59, %v427_v25  ;;  %vm433_vm10 = vcmp.eq.f32.partialorder %v432_v2, 8.507059e+37  ;;  %vm488_vm11 = vweird.f32 %v1185_v31 }
  0xda   : > { %661 = vst.msk [vmem:[%s1048_s25 + $0x28] sm:$0xf] %vm650_vm7, %v644_v22  ;;  %v436_v29 = vsel %vm433_vm10, %v435_v21, %v431_v33  ;;  %v487_v30 = vadd.f32 %v869_v19, %v486_v27  ;;  %v871_v5 = vpop.eup %870  ;;  %vm490_vm12 = vmor %vm488_vm11, %vm489_vm9  ;;  %v495_v34 = vor.u32 1.1754944e-38, %v494_v26  ;;  %vm493_vm13 = vcmp.eq.f32.partialorder %v492_v28, 8.507059e+37 }
  0xdb   : > { %665 = vst.msk [vmem:[%s1048_s25 + $0x38] sm:$0xf] %vm650_vm7, %v648_v36  ;;  %v621_v32 = vmul.f32 %v436_v29, %v1120_v13  ;;  %v544_v37 = vmul.f32 %v871_v5, %v1219_v7  ;;  %v552_v31 = vand.u32 2147483647, %v1219_v7  ;;  %v554_v13 = vand.u32 2147483648, %v1219_v7 }
  0xdc   : > { %v491_v23 = vsel %vm490_vm12, %v869_v19, %v487_v30  ;;  %vm549_vm14 = vweird.f32 %v871_v5  ;;  %vm548_vm15 = vweird.f32 %v1219_v7  ;;  %v614_v50 = vand.u32 2147483648, %v1223_v16 }
  0xdd   : > { %v873_v61 = vpop.eup %872  ;;  %v637_v38 = vpack.c.bf16 %v621_v32, %v621_v32  ;;  %v496_v39 = vsel %vm493_vm13, %v495_v34, %v491_v23  ;;  %v545_v40 = vsub.f32 1.0, %v544_v37  ;;  %v612_v52 = vand.u32 2147483647, %v1223_v16  ;;  %vm550_vm1 = vmor %vm548_vm15, %vm549_vm14 }
  0xde   : > { %v625_v11 = vmul.f32 %v496_v39, %v1125_v42  ;;  %v604_v41 = vmul.f32 %v873_v61, %v1223_v16  ;;  %vm609_vm0 = vweird.f32 %v873_v61  ;;  %v555_v14 = vor.u32 1.1754944e-38, %v554_v13 }
  0xdf   : > { %654 = vst.msk [vmem:[%s1048_s25 + $0xc] sm:$0xf] %vm650_vm7, %v637_v38  ;;  %v546_v47 = vmul.f32 %v871_v5, %v545_v40  ;;  %vm553_vm2 = vcmp.eq.f32.partialorder %v552_v31, 8.507059e+37  ;;  %vm608_vm3 = vweird.f32 %v1223_v16  ;;  %v615_v56 = vor.u32 1.1754944e-38, %v614_v50 }
  0xe0   : > { %v641_v24 = vpack.c.bf16 %v625_v11, %v625_v11  ;;  %v605_v49 = vsub.f32 1.0, %v604_v41  ;;  %vm610_vm4 = vmor %vm608_vm3, %vm609_vm0  ;;  %vm613_vm5 = vcmp.eq.f32.partialorder %v612_v52, 8.507059e+37 }
  0xe1   : > { %v547_v42 = vadd.f32 %v871_v5, %v546_v47 }
  0xe2   : > { %658 = vst.msk [vmem:[%s1048_s25 + $0x1c] sm:$0xf] %vm650_vm7, %v641_v24  ;;  %v606_v51 = vmul.f32 %v873_v61, %v605_v49 }
  0xe3   : > { %v551_v54 = vsel %vm550_vm1, %v871_v5, %v547_v42 }
  0xe4   : > { %v607_v55 = vadd.f32 %v873_v61, %v606_v51  ;;  %v556_v44 = vsel %vm553_vm2, %v555_v14, %v551_v54 }
  0xe5   : > { %v629_v57 = vmul.f32 %v556_v44, %v1146_v0 }
  0xe6   : > { %v611_v45 = vsel %vm610_vm4, %v873_v61, %v607_v55 }
  0xe7   : > { %v616_v59 = vsel %vm613_vm5, %v615_v56, %v611_v45  ;;  %v645_v60 = vpack.c.bf16 %v629_v57, %v629_v57 }
  0xe8   : > { %v633_v58 = vmul.f32 %v616_v59, %v1151_v48 }
  0xe9   : > { %662 = vst.msk [vmem:[%s1048_s25 + $0x2c] sm:$0xf] %vm650_vm7, %v645_v60 }
  0xea   : > { %v649_v63 = vpack.c.bf16 %v633_v58, %v633_v58 }
  0xec   : > { %666 = vst.msk [vmem:[%s1048_s25 + $0x3c] sm:$0xf] %vm650_vm7, %v649_v63 }
  0xed PF: > { %s13_s12 = sadd.s32 1, %s880_s12  }
  0xee   : > { %p10_p4 = scmp.ge.s32.totalorder %s13_s12, 6  }
  0xf0   :  { %12 = sbr.rel (!%p10_p4) target bundleno = 1 (0x1), region = 62 }

// kernel: c3_forward.4
= control target key start
LH: loop header
LB: loop body
LE: loop exit
PB: predicated region body
PF: predicated region fallthrough
CT: control target
= control target key end

     0   :  { %s1547_s21 = smov 0   ;;  %s2251_s0 = inlined_call_operand.vmem [shape: bf16[512,8], index: 0, kind: input, shape index: {}]   ;;  %s2252_s1 = inlined_call_operand.vmem [shape: bf16[8,4], index: 1, kind: input, shape index: {}]   ;;  %s2253_s2 = inlined_call_operand.vmem [shape: f32[1,4], index: 2, kind: input, shape index: {}]   ;;  %s2254_s3 = inlined_call_operand.vmem [shape: bf16[8,4], index: 3, kind: input, shape index: {}]   ;;  %s2255_s4 = inlined_call_operand.vmem [shape: f32[1,4], index: 4, kind: input, shape index: {}]   ;;  %s2256_s5 = inlined_call_operand.vmem [shape: bf16[512,4], index: 5, kind: output, shape index: {0}]   ;;  %s2257_s6 = inlined_call_operand.vmem [shape: bf16[512,4], index: 6, kind: output, shape index: {1}]  }
   0x1 LB: > { %s1261_s22 = sadd.s32 4294967295, %s1510_s21   ;;  %p1265_p0 = scmp.ge.s32.totalorder %s1510_s21, 1  ;;  %s1510_s21 = sphi %s1547_s21, %s17_s21  }
   0x2   : > { %p216_p1 = scmp.lt.s32.totalorder %s1510_s21, 5 }
   0x4   : > { %p217_p2 = pnand %p1265_p0, %p216_p1 }
   0x5   : > { %s1266_s27 = sshll.u32 (!%p217_p2), %s1261_s22, 4 }
   0x6   : > { %220 = sbr.rel (%p217_p2) target bundleno = 319 (0x13f), region = 40  ;;  %p252_p3 = scmp.lt.s32.totalorder (!%p217_p2), %s1266_s27, 63 }
   0xb   : > { %v286_v0 = vld [vmem:[%s2252_s1] sm:$0xf]  ;;  %vm356_vm0 = vcmask 1043456   ;;  %s2301_s27 = smov (!%p252_p3, %s1266_s27), 63  ;;  %vm331_vm1 = vcmask 64512   ;;  %vm745_vm6 = vcmask 27648  }
   0xc   : > { %v762_v1 = vld [vmem:[%s2254_s3] sm:$0xf]  ;;  %v358_v2 = vsel %vm356_vm0, %v286_v0, 0  ;;  %s1561_s28 = sshll.u32 %s2301_s27, 2 }
   0xd   : > { %v768_v3 = vsel %vm356_vm0, %v762_v1, 0  ;;  %367 = vmatpush.bf16.msra.mxu0 %v358_v2  ;;  %1362 = vmatpush.bf16.msra.mxu2 %v358_v2  ;;  %s255_s7 = scalar_lea.vmem %s2251_s0, %s1561_s28  ;;  %v1586_v12 = vld [vmem:[%s2253_s2] ss:$0 sm:$0xff]  ;;  %s1707_s14 = scalar_lea.vmem %s2256_s5, %s1561_s28 }
   0xe   : > { %777 = vmatpush.bf16.msra.mxu1 %v768_v3  ;;  %1363 = vmatpush.bf16.msra.mxu3 %v768_v3  ;;  %v1354_v4 = vld [vmem:[%s255_s7] sm:$0xff]  ;;  %v1355_v6 = vld [vmem:[%s255_s7 + $0x8] sm:$0xff]  ;;  %v1356_v8 = vld [vmem:[%s255_s7 + $0x10] sm:$0xff]  ;;  %s1719_s17 = scalar_lea.vmem %s2257_s6, %s1561_s28 }
   0xf   : > { %v1358_v5 = vld [vmem:[%s255_s7 + $0x20] sm:$0xff]  ;;  %v1359_v7 = vld [vmem:[%s255_s7 + $0x28] sm:$0xff]  ;;  %v1360_v9 = vld [vmem:[%s255_s7 + $0x30] sm:$0xff] }
  0x10   : > { %1304 = vmatmul.msk.bf16.vlgmr.msra.gmra.mxu0 %vm331_vm1, %v1354_v4  ;;  %1308 = vmatmul.msk.bf16.vlgmr.msra.gmra.mxu2 %vm331_vm1, %v1358_v5  ;;  %v1357_v10 = vld [vmem:[%s255_s7 + $0x18] sm:$0xff]  ;;  %v1591_v13 = vld [vmem:[%s2255_s4] ss:$0 sm:$0xff] }
  0x11   : > { %1328 = vmatmul.msk.bf16.vlgmr.msra.gmra.mxu1 %vm331_vm1, %v1354_v4  ;;  %1332 = vmatmul.msk.bf16.vlgmr.msra.gmra.mxu3 %vm331_vm1, %v1358_v5  ;;  %v1361_v11 = vld [vmem:[%s255_s7 + $0x38] sm:$0xff] }
  0x20   : > { %1305 = vmatmul.msk.bf16.gmra.mxu0 %vm331_vm1, %v1355_v6  ;;  %1309 = vmatmul.msk.bf16.gmra.mxu2 %vm331_vm1, %v1359_v7 }
  0x21   : > { %1329 = vmatmul.msk.bf16.gmra.mxu1 %vm331_vm1, %v1355_v6  ;;  %1333 = vmatmul.msk.bf16.gmra.mxu3 %vm331_vm1, %v1359_v7 }
  0x30   : > { %1306 = vmatmul.msk.bf16.gmra.mxu0 %vm331_vm1, %v1356_v8  ;;  %1310 = vmatmul.msk.bf16.gmra.mxu2 %vm331_vm1, %v1360_v9 }
  0x31   : > { %1330 = vmatmul.msk.bf16.gmra.mxu1 %vm331_vm1, %v1356_v8  ;;  %1334 = vmatmul.msk.bf16.gmra.mxu3 %vm331_vm1, %v1360_v9 }
  0x40   : > { %1307 = vmatmul.msk.bf16.gmra.mxu0 %vm331_vm1, %v1357_v10  ;;  %1311 = vmatmul.msk.bf16.gmra.mxu2 %vm331_vm1, %v1361_v11 }
  0x41   : > { %1331 = vmatmul.msk.bf16.gmra.mxu1 %vm331_vm1, %v1357_v10  ;;  %1335 = vmatmul.msk.bf16.gmra.mxu3 %vm331_vm1, %v1361_v11 }
  0x8d   : > { %v369_v14 = vpop.f32.mrf.mxu0 }
  0x8e   : > { %v1594_v15 = vadd.f32 %v1586_v12, %v369_v14  ;;  %v779_v16 = vpop.f32.mrf.mxu1 }
  0x8f   : > { %v1597_v17 = vadd.f32 %v1591_v13, %v779_v16 }
  0x90   : > { %v1312_v18 = vmul.f32 -1.442695, %v1594_v15 }
  0x91   : > { %v1336_v19 = vmul.f32 -1.442695, %v1597_v17 }
  0x92   : > { %1374 = vpow2.f32 %v1312_v18 }
  0x93   : > { %1376 = vpow2.f32 %v1336_v19  ;;  %v389_v20 = vpop.f32.mrf.mxu2 }
  0x94   : > { %v1602_v21 = vadd.f32 %v1586_v12, %v389_v20  ;;  %v799_v22 = vpop.f32.mrf.mxu3 }
  0x95   : > { %v1605_v23 = vadd.f32 %v1591_v13, %v799_v22  ;;  %v371_v24 = vpop.f32.mrf.mxu0 }
  0x96   : > { %v1320_v25 = vmul.f32 -1.442695, %v1602_v21  ;;  %v1609_v26 = vadd.f32 %v1586_v12, %v371_v24  ;;  %v781_v27 = vpop.f32.mrf.mxu1 }
  0x97   : > { %v1344_v28 = vmul.f32 -1.442695, %v1605_v23  ;;  %v1613_v29 = vadd.f32 %v1591_v13, %v781_v27 }
  0x98   : > { %v1375_v30 = vpop.eup %1374  ;;  %1378 = vpow2.f32 %v1320_v25  ;;  %v1313_v31 = vmul.f32 -1.442695, %v1609_v26 }
  0x99   : > { %v1377_v32 = vpop.eup %1376  ;;  %v1616_v33 = vadd.f32 1.0, %v1375_v30  ;;  %1380 = vpow2.f32 %v1344_v28  ;;  %v1337_v34 = vmul.f32 -1.442695, %v1613_v29 }
  0x9a   : > { %v1619_v35 = vadd.f32 1.0, %v1377_v32  ;;  %1382 = vpow2.f32 %v1313_v31 }
  0x9b   : > { %1384 = vrcp.f32 %v1616_v33  ;;  %v391_v36 = vpop.f32.mrf.mxu2  ;;  %v482_v39 = vand.u32 2147483647, %v1616_v33  ;;  %v484_v40 = vand.u32 2147483648, %v1616_v33  ;;  %vm478_vm2 = vweird.f32 %v1616_v33 }
  0x9c   : > { %1386 = vrcp.f32 %v1619_v35  ;;  %v801_v37 = vpop.f32.mrf.mxu3  ;;  %v894_v41 = vand.u32 2147483648, %v1619_v35  ;;  %v892_v44 = vand.u32 2147483647, %v1619_v35  ;;  %v1630_v46 = vadd.f32 %v1586_v12, %v391_v36 }
  0x9d   : > { %1388 = vpow2.f32 %v1337_v34  ;;  %v374_v42 = vpop.f32.mrf.mxu0  ;;  %v1635_v49 = vadd.f32 %v1591_v13, %v801_v37  ;;  %vm888_vm3 = vweird.f32 %v1619_v35  ;;  %vm1644_vm4 = vcmp.eq.f32.partialorder %v482_v39, 8.507059e+37 }
  0x9e   : > { %v1379_v38 = vpop.eup %1378  ;;  %v784_v50 = vpop.f32.mrf.mxu1  ;;  %v1641_v52 = vadd.f32 %v1586_v12, %v374_v42  ;;  %v485_v56 = vor.u32 1.1754944e-38, %v484_v40  ;;  %v895_v57 = vor.u32 1.1754944e-38, %v894_v41  ;;  %vm1650_vm5 = vcmp.eq.f32.partialorder %v892_v44, 8.507059e+37 }
  0x9f   : > { %v1381_v43 = vpop.eup %1380  ;;  %v1627_v45 = vadd.f32 1.0, %v1379_v38  ;;  %v1321_v62 = vmul.f32 -1.442695, %v1630_v46  ;;  %v1657_v63 = vadd.f32 %v1591_v13, %v784_v50  ;;  %v1663_v3 = vmul.f32 -1.442695, %v1635_v49 }
  0xa0   : > { %v1383_v47 = vpop.eup %1382  ;;  %v1632_v48 = vadd.f32 1.0, %v1381_v43  ;;  %v1669_v7 = vmul.f32 -1.442695, %v1641_v52 }
  0xa1   : > { %v1385_v51 = vpop.eup %1384  ;;  %1390 = vrcp.f32 %v1627_v45  ;;  %v604_v61 = vand.u32 2147483648, %v1627_v45  ;;  %v602_v1 = vand.u32 2147483647, %v1627_v45  ;;  %v1660_v2 = vadd.f32 1.0, %v1383_v47 }
  0xa2   : > { %v1387_v53 = vpop.eup %1386  ;;  %v474_v54 = vmul.f32 %v1385_v51, %v1616_v33  ;;  %1392 = vrcp.f32 %v1632_v48  ;;  %v1012_v5 = vand.u32 2147483647, %v1632_v48  ;;  %vm479_vm7 = vweird.f32 %v1385_v51 }
  0xa3   : > { %v1389_v58 = vpop.eup %1388  ;;  %v884_v59 = vmul.f32 %v1387_v53, %v1619_v35  ;;  %vm598_vm8 = vweird.f32 %v1627_v45  ;;  %v1014_v9 = vand.u32 2147483648, %v1632_v48  ;;  %1394 = vrcp.f32 %v1660_v2  ;;  %vm480_vm12 = vmor %vm478_vm2, %vm479_vm7 }
  0xa4   : > { %v475_v0 = vsub.f32 1.0, %v474_v54  ;;  %v1666_v6 = vadd.f32 1.0, %v1389_v58  ;;  %vm889_vm9 = vweird.f32 %v1387_v53  ;;  %v605_v14 = vor.u32 1.1754944e-38, %v604_v61 }
  0xa5   : > { %v885_v4 = vsub.f32 1.0, %v884_v59  ;;  %vm1008_vm10 = vweird.f32 %v1632_v48  ;;  %1396 = vpow2.f32 %v1321_v62  ;;  %vm1676_vm11 = vcmp.eq.f32.partialorder %v602_v1, 8.507059e+37  ;;  %vm890_vm14 = vmor %vm888_vm3, %vm889_vm9 }
  0xa6   : > { %v476_v8 = vmul.f32 %v1385_v51, %v475_v0  ;;  %1398 = vrcp.f32 %v1666_v6  ;;  %v1682_v22 = vmul.f32 -1.442695, %v1657_v63  ;;  %vm1688_vm13 = vcmp.eq.f32.partialorder %v1012_v5, 8.507059e+37  ;;  %v394_v0 = vpop.f32.mrf.mxu2 }
  0xa7   : > { %v1391_v10 = vpop.eup %1390  ;;  %v886_v11 = vmul.f32 %v1387_v53, %v885_v4  ;;  %v497_v28 = vand.u32 2147483647, %v1660_v2  ;;  %v1015_v32 = vor.u32 1.1754944e-38, %v1014_v9  ;;  %v499_v33 = vand.u32 2147483648, %v1660_v2 }
  0xa8   : > { %v1393_v16 = vpop.eup %1392  ;;  %v477_v18 = vadd.f32 %v1385_v51, %v476_v8  ;;  %v594_v19 = vmul.f32 %v1391_v10, %v1627_v45  ;;  %vm599_vm15 = vweird.f32 %v1391_v10  ;;  %vm493_vm0 = vweird.f32 %v1660_v2 }
  0xa9   : > { %v887_v24 = vadd.f32 %v1387_v53, %v886_v11  ;;  %v1004_v25 = vmul.f32 %v1393_v16, %v1632_v48  ;;  %v1395_v38 = vpop.eup %1394  ;;  %vm1009_vm1 = vweird.f32 %v1393_v16  ;;  %vm1711_vm2 = vcmp.eq.f32.partialorder %v497_v28, 8.507059e+37  ;;  %vm600_vm3 = vmor %vm598_vm8, %vm599_vm15 }
  0xaa   : > { %v481_v30 = vsel %vm480_vm12, %v1385_v51, %v477_v18  ;;  %v595_v31 = vsub.f32 1.0, %v594_v19  ;;  %v489_v44 = vmul.f32 %v1395_v38, %v1660_v2  ;;  %v907_v54 = vand.u32 2147483647, %v1666_v6 }
  0xab   : > { %v486_v34 = vsel %vm1644_vm4, %v485_v56, %v481_v30  ;;  %v891_v36 = vsel %vm890_vm14, %v1387_v53, %v887_v24  ;;  %v1005_v37 = vsub.f32 1.0, %v1004_v25  ;;  %v1397_v41 = vpop.eup %1396  ;;  %v500_v53 = vor.u32 1.1754944e-38, %v499_v33  ;;  %vm1010_vm4 = vmor %vm1008_vm10, %vm1009_vm1 }
  0xac   : > { %v713_v39 = vmul.f32 %v486_v34, %v1594_v15  ;;  %v896_v35 = vsel %vm1650_vm5, %v895_v57, %v891_v36  ;;  %v596_v40 = vmul.f32 %v1391_v10, %v595_v31  ;;  %v1399_v15 = vpop.eup %1398  ;;  %v490_v56 = vsub.f32 1.0, %v489_v44 }
  0xad   : > { %v1123_v42 = vmul.f32 %v896_v35, %v1597_v17  ;;  %v1006_v43 = vmul.f32 %v1393_v16, %v1005_v37  ;;  %v899_v57 = vmul.f32 %v1399_v15, %v1666_v6  ;;  %vm494_vm5 = vweird.f32 %v1395_v38 }
  0xae   : > { %v729_v50 = vpack.c.bf16 %v713_v39, %v713_v39  ;;  %v597_v51 = vadd.f32 %v1391_v10, %v596_v40  ;;  %v1731_v59 = vadd.f32 1.0, %v1397_v41  ;;  %1400 = vpow2.f32 %v1663_v3  ;;  %vm495_vm8 = vmor %vm493_vm0, %vm494_vm5  ;;  %v786_v39 = vpop.f32.mrf.mxu1 }
  0xaf   : > { %v1139_v17 = vpack.c.bf16 %v1123_v42, %v1123_v42  ;;  %v1007_v55 = vadd.f32 %v1393_v16, %v1006_v43  ;;  %v491_v61 = vmul.f32 %v1395_v38, %v490_v56  ;;  %v900_v62 = vsub.f32 1.0, %v899_v57 }
  0xb0   : > { %746 = vst.msk [vmem:[%s1707_s14] sm:$0xf] %vm745_vm6, %v729_v50  ;;  %v601_v58 = vsel %vm600_vm3, %v1391_v10, %v597_v51  ;;  %v909_v4 = vand.u32 2147483648, %v1666_v6  ;;  %1402 = vrcp.f32 %v1731_v59  ;;  %vm904_vm7 = vweird.f32 %v1399_v15  ;;  %v804_v10 = vpop.f32.mrf.mxu3 }
  0xb1   : > { %1155 = vst.msk [vmem:[%s1719_s17] sm:$0xf] %vm745_vm6, %v1139_v17  ;;  %v606_v45 = vsel %vm1676_vm11, %v605_v14, %v601_v58  ;;  %v1011_v60 = vsel %vm1010_vm4, %v1393_v16, %v1007_v55  ;;  %v492_v5 = vadd.f32 %v1395_v38, %v491_v61  ;;  %v901_v8 = vmul.f32 %v1399_v15, %v900_v62  ;;  %v376_v16 = vpop.f32.mrf.mxu0 }
  0xb2   : > { %v721_v1 = vmul.f32 %v606_v45, %v1602_v21  ;;  %v1016_v48 = vsel %vm1688_vm13, %v1015_v32, %v1011_v60  ;;  %vm903_vm9 = vweird.f32 %v1666_v6  ;;  %1404 = vpow2.f32 %v1669_v7 }
  0xb3   : > { %v1131_v3 = vmul.f32 %v1016_v48, %v1605_v23  ;;  %v1750_v21 = vadd.f32 %v1586_v12, %v394_v0  ;;  %v496_v23 = vsel %vm495_vm8, %v1395_v38, %v492_v5  ;;  %v902_v14 = vadd.f32 %v1399_v15, %v901_v8  ;;  %vm905_vm11 = vmor %vm903_vm9, %vm904_vm7 }
  0xb4   : > { %v737_v9 = vpack.c.bf16 %v721_v1, %v721_v1  ;;  %vm908_vm10 = vcmp.eq.f32.partialorder %v907_v54, 8.507059e+37  ;;  %v1401_v18 = vpop.eup %1400  ;;  %v501_v2 = vsel %vm1711_vm2, %v500_v53, %v496_v23  ;;  %v910_v6 = vor.u32 1.1754944e-38, %v909_v4 }
  0xb5   : > { %v1147_v11 = vpack.c.bf16 %v1131_v3, %v1131_v3  ;;  %1406 = vpow2.f32 %v1682_v22  ;;  %v1322_v7 = vmul.f32 -1.442695, %v1750_v21  ;;  %v714_v19 = vmul.f32 %v501_v2, %v1609_v26 }
  0xb6   : > { %754 = vst.msk [vmem:[%s1707_s14 + $0x20] sm:$0xf] %vm745_vm6, %v737_v9  ;;  %v906_v20 = vsel %vm905_vm11, %v1399_v15, %v902_v14  ;;  %v1762_v24 = vadd.f32 1.0, %v1401_v18  ;;  %v1765_v25 = vadd.f32 %v1591_v13, %v804_v10  ;;  %v1403_v27 = vpop.eup %1402  ;;  %v1768_v30 = vadd.f32 %v1586_v12, %v376_v16 }
  0xb7   : > { %1163 = vst.msk [vmem:[%s1719_s17 + $0x20] sm:$0xf] %vm745_vm6, %v1147_v11  ;;  %v911_v28 = vsel %vm908_vm10, %v910_v6, %v906_v20  ;;  %1408 = vpow2.f32 %v1322_v7  ;;  %v730_v22 = vpack.c.bf16 %v714_v19, %v714_v19  ;;  %v609_v32 = vmul.f32 %v1403_v27, %v1731_v59 }
  0xb8   : > { %v1124_v31 = vmul.f32 %v911_v28, %v1613_v29  ;;  %v1405_v33 = vpop.eup %1404  ;;  %v617_v26 = vand.u32 2147483647, %v1731_v59  ;;  %1410 = vrcp.f32 %v1762_v24  ;;  %v1346_v38 = vmul.f32 -1.442695, %v1765_v25 }
  0xb9   : > { %747 = vst.msk [vmem:[%s1707_s14 + $0x4] sm:$0xf] %vm745_vm6, %v730_v22  ;;  %v610_v36 = vsub.f32 1.0, %v609_v32  ;;  %v1776_v37 = vadd.f32 1.0, %v1405_v33  ;;  %vm614_vm12 = vweird.f32 %v1403_v27  ;;  %v619_v29 = vand.u32 2147483648, %v1731_v59 }
  0xba   : > { %v1140_v34 = vpack.c.bf16 %v1124_v31, %v1124_v31  ;;  %v1315_v40 = vmul.f32 -1.442695, %v1768_v30  ;;  %v1027_v42 = vand.u32 2147483647, %v1762_v24  ;;  %v1029_v43 = vand.u32 2147483648, %v1762_v24 }
  0xbb   : > { %v1407_v35 = vpop.eup %1406  ;;  %v611_v41 = vmul.f32 %v1403_v27, %v610_v36  ;;  %1412 = vrcp.f32 %v1776_v37  ;;  %vm613_vm13 = vweird.f32 %v1731_v59  ;;  %v1790_v15 = vadd.f32 %v1591_v13, %v786_v39  ;;  %v396_v59 = vpop.f32.mrf.mxu2 }
  0xbc   : > { %1156 = vst.msk [vmem:[%s1719_s17 + $0x4] sm:$0xf] %vm745_vm6, %v1140_v34  ;;  %v1787_v47 = vadd.f32 1.0, %v1407_v35  ;;  %1414 = vpow2.f32 %v1346_v38  ;;  %vm618_vm14 = vcmp.eq.f32.partialorder %v617_v26, 8.507059e+37  ;;  %vm615_vm15 = vmor %vm613_vm13, %vm614_vm12  ;;  %v620_v54 = vor.u32 1.1754944e-38, %v619_v29 }
  0xbd   : > { %v1409_v44 = vpop.eup %1408  ;;  %v612_v50 = vadd.f32 %v1403_v27, %v611_v41  ;;  %1416 = vpow2.f32 %v1315_v40  ;;  %vm1023_vm0 = vweird.f32 %v1762_v24  ;;  %v512_v17 = vand.u32 2147483647, %v1776_v37 }
  0xbe   : > { %v1792_v51 = vadd.f32 1.0, %v1409_v44  ;;  %v1411_v53 = vpop.eup %1410  ;;  %1418 = vrcp.f32 %v1787_v47  ;;  %vm1799_vm1 = vcmp.eq.f32.partialorder %v1027_v42, 8.507059e+37  ;;  %v1030_v58 = vor.u32 1.1754944e-38, %v1029_v43  ;;  %v806_v42 = vpop.f32.mrf.mxu3 }
  0xbf   : > { %v616_v55 = vsel %vm615_vm15, %v1403_v27, %v612_v50  ;;  %v1019_v56 = vmul.f32 %v1411_v53, %v1762_v24  ;;  %v514_v60 = vand.u32 2147483648, %v1776_v37  ;;  %v1339_v61 = vmul.f32 -1.442695, %v1790_v15 }
  0xc0   : > { %v621_v45 = vsel %vm618_vm14, %v620_v54, %v616_v55  ;;  %1420 = vrcp.f32 %v1792_v51  ;;  %vm508_vm2 = vweird.f32 %v1776_v37  ;;  %v922_v48 = vand.u32 2147483647, %v1787_v47 }
  0xc1   : > { %v1413_v62 = vpop.eup %1412  ;;  %v722_v0 = vmul.f32 %v621_v45, %v1630_v46  ;;  %v1020_v1 = vsub.f32 1.0, %v1019_v56  ;;  %vm1024_vm3 = vweird.f32 %v1411_v53  ;;  %vm1810_vm4 = vcmp.eq.f32.partialorder %v512_v17, 8.507059e+37 }
  0xc2   : > { %v1415_v4 = vpop.eup %1414  ;;  %v504_v3 = vmul.f32 %v1413_v62, %v1776_v37  ;;  %v1815_v8 = vadd.f32 %v1586_v12, %v396_v59  ;;  %v924_v11 = vand.u32 2147483648, %v1787_v47  ;;  %v515_v18 = vor.u32 1.1754944e-38, %v514_v60  ;;  %vm1025_vm8 = vmor %vm1023_vm0, %vm1024_vm3  ;;  %v379_v60 = vpop.f32.mrf.mxu0 }
  0xc3   : > { %v1417_v9 = vpop.eup %1416  ;;  %v738_v10 = vpack.c.bf16 %v722_v0, %v722_v0  ;;  %v1021_v46 = vmul.f32 %v1411_v53, %v1020_v1  ;;  %v1818_v23 = vadd.f32 1.0, %v1415_v4  ;;  %vm918_vm5 = vweird.f32 %v1787_v47  ;;  %v789_v4 = vpop.f32.mrf.mxu1 }
  0xc4   : > { %v1419_v14 = vpop.eup %1418  ;;  %v505_v16 = vsub.f32 1.0, %v504_v3  ;;  %1422 = vpow2.f32 %v1339_v61  ;;  %vm1824_vm7 = vcmp.eq.f32.partialorder %v922_v48, 8.507059e+37  ;;  %v1829_v19 = vadd.f32 1.0, %v1417_v9 }
  0xc5   : > { %755 = vst.msk [vmem:[%s1707_s14 + $0x24] sm:$0xf] %vm745_vm6, %v738_v10  ;;  %v1022_v2 = vadd.f32 %v1411_v53, %v1021_v46  ;;  %v914_v6 = vmul.f32 %v1419_v14, %v1787_v47  ;;  %1424 = vrcp.f32 %v1818_v23  ;;  %vm509_vm9 = vweird.f32 %v1413_v62 }
  0xc6   : > { %v1421_v20 = vpop.eup %1420  ;;  %v506_v27 = vmul.f32 %v1413_v62, %v505_v16  ;;  %vm628_vm10 = vweird.f32 %v1792_v51  ;;  %v632_v28 = vand.u32 2147483647, %v1792_v51  ;;  %v925_v32 = vor.u32 1.1754944e-38, %v924_v11  ;;  %vm510_vm12 = vmor %vm508_vm2, %vm509_vm9 }
  0xc7   : > { %v1026_v22 = vsel %vm1025_vm8, %v1411_v53, %v1022_v2  ;;  %v915_v31 = vsub.f32 1.0, %v914_v6  ;;  %v624_v33 = vmul.f32 %v1421_v20, %v1792_v51  ;;  %vm919_vm11 = vweird.f32 %v1419_v14  ;;  %v399_v6 = vpop.f32.mrf.mxu2 }
  0xc8   : > { %v1031_v26 = vsel %vm1799_vm1, %v1030_v58, %v1026_v22  ;;  %v507_v34 = vadd.f32 %v1413_v62, %v506_v27  ;;  %v634_v36 = vand.u32 2147483648, %v1792_v51  ;;  %1426 = vrcp.f32 %v1829_v19  ;;  %vm920_vm15 = vmor %vm918_vm5, %vm919_vm11  ;;  %v809_v22 = vpop.f32.mrf.mxu3 }
  0xc9   : > { %v1132_v24 = vmul.f32 %v1031_v26, %v1635_v49  ;;  %v916_v38 = vmul.f32 %v1419_v14, %v915_v31  ;;  %v625_v39 = vsub.f32 1.0, %v624_v33  ;;  %vm629_vm13 = vweird.f32 %v1421_v20 }
  0xca   : > { %v1423_v35 = vpop.eup %1422  ;;  %v511_v29 = vsel %vm510_vm12, %v1413_v62, %v507_v34  ;;  %vm1844_vm14 = vcmp.eq.f32.partialorder %v632_v28, 8.507059e+37  ;;  %v1323_v41 = vmul.f32 -1.442695, %v1815_v8  ;;  %v635_v54 = vor.u32 1.1754944e-38, %v634_v36  ;;  %vm630_vm0 = vmor %vm628_vm10, %vm629_vm13  ;;  %v381_v40 = vpop.f32.mrf.mxu0 }
  0xcb   : > { %v1425_v43 = vpop.eup %1424  ;;  %v1148_v49 = vpack.c.bf16 %v1132_v24, %v1132_v24  ;;  %v516_v37 = vsel %vm1810_vm4, %v515_v18, %v511_v29  ;;  %v917_v44 = vadd.f32 %v1419_v14, %v916_v38  ;;  %v626_v50 = vmul.f32 %v1421_v20, %v625_v39 }
  0xcc   : > { %v715_v53 = vmul.f32 %v516_v37, %v1641_v52  ;;  %v1034_v17 = vmul.f32 %v1425_v43, %v1818_v23  ;;  %v1042_v55 = vand.u32 2147483647, %v1818_v23  ;;  %v1044_v58 = vand.u32 2147483648, %v1818_v23 }
  0xcd   : > { %1164 = vst.msk [vmem:[%s1719_s17 + $0x24] sm:$0xf] %vm745_vm6, %v1148_v49  ;;  %v921_v56 = vsel %vm920_vm15, %v1419_v14, %v917_v44  ;;  %v627_v57 = vadd.f32 %v1421_v20, %v626_v50  ;;  %v1860_v59 = vadd.f32 1.0, %v1423_v35  ;;  %1428 = vpow2.f32 %v1323_v41  ;;  %v791_v44 = vpop.f32.mrf.mxu1 }
  0xce   : > { %v731_v45 = vpack.c.bf16 %v715_v53, %v715_v53  ;;  %v926_v52 = vsel %vm1824_vm7, %v925_v32, %v921_v56  ;;  %v1035_v47 = vsub.f32 1.0, %v1034_v17  ;;  %v1427_v61 = vpop.eup %1426  ;;  %vm1038_vm1 = vweird.f32 %v1818_v23 }
  0xcf   : > { %v1125_v62 = vmul.f32 %v926_v52, %v1657_v63  ;;  %v631_v0 = vsel %vm630_vm0, %v1421_v20, %v627_v57  ;;  %1430 = vrcp.f32 %v1860_v59  ;;  %vm1039_vm2 = vweird.f32 %v1425_v43 }
  0xd0   : > { %748 = vst.msk [vmem:[%s1707_s14 + $0x8] sm:$0xf] %vm745_vm6, %v731_v45  ;;  %v636_v1 = vsel %vm1844_vm14, %v635_v54, %v631_v0  ;;  %v1036_v48 = vmul.f32 %v1425_v43, %v1035_v47  ;;  %v519_v51 = vmul.f32 %v1427_v61, %v1829_v19  ;;  %vm1876_vm3 = vcmp.eq.f32.partialorder %v1042_v55, 8.507059e+37  ;;  %vm1040_vm4 = vmor %vm1038_vm1, %vm1039_vm2 }
  0xd1   : > { %v1141_v3 = vpack.c.bf16 %v1125_v62, %v1125_v62  ;;  %v723_v5 = vmul.f32 %v636_v1, %v1750_v21  ;;  %v1045_v9 = vor.u32 1.1754944e-38, %v1044_v58  ;;  %v1881_v11 = vadd.f32 %v1591_v13, %v806_v42 }
  0xd2   : > { %v1037_v10 = vadd.f32 %v1425_v43, %v1036_v48  ;;  %v520_v46 = vsub.f32 1.0, %v519_v51  ;;  %v1884_v14 = vadd.f32 %v1586_v12, %v379_v60  ;;  %v527_v21 = vand.u32 2147483647, %v1829_v19  ;;  %v401_v60 = vpop.f32.mrf.mxu2 }
  0xd3   : > { %1157 = vst.msk [vmem:[%s1719_s17 + $0x8] sm:$0xf] %vm745_vm6, %v1141_v3  ;;  %v739_v16 = vpack.c.bf16 %v723_v5, %v723_v5  ;;  %v529_v18 = vand.u32 2147483648, %v1829_v19  ;;  %v1893_v2 = vadd.f32 %v1591_v13, %v789_v4  ;;  %v1429_v7 = vpop.eup %1428  ;;  %vm524_vm5 = vweird.f32 %v1427_v61 }
  0xd4   : > { %v1041_v20 = vsel %vm1040_vm4, %v1425_v43, %v1037_v10  ;;  %v521_v27 = vmul.f32 %v1427_v61, %v520_v46  ;;  %v1347_v28 = vmul.f32 -1.442695, %v1881_v11  ;;  %vm523_vm7 = vweird.f32 %v1829_v19 }
  0xd5   : > { %v1431_v31 = vpop.eup %1430  ;;  %756 = vst.msk [vmem:[%s1707_s14 + $0x28] sm:$0xf] %vm745_vm6, %v739_v16  ;;  %v1046_v23 = vsel %vm1876_vm3, %v1045_v9, %v1041_v20  ;;  %v1901_v32 = vadd.f32 1.0, %v1429_v7  ;;  %v1316_v33 = vmul.f32 -1.442695, %v1884_v14  ;;  %v1907_v24 = vadd.f32 %v1586_v12, %v399_v6  ;;  %vm525_vm8 = vmor %vm523_vm7, %vm524_vm5 }
  0xd6   : > { %v1133_v26 = vmul.f32 %v1046_v23, %v1765_v25  ;;  %v522_v34 = vadd.f32 %v1427_v61, %v521_v27  ;;  %v929_v36 = vmul.f32 %v1431_v31, %v1860_v59  ;;  %vm528_vm9 = vcmp.eq.f32.partialorder %v527_v21, 8.507059e+37 }
  0xd7   : > { %v530_v38 = vor.u32 1.1754944e-38, %v529_v18  ;;  %1432 = vrcp.f32 %v1901_v32  ;;  %v1340_v19 = vmul.f32 -1.442695, %v1893_v2  ;;  %v937_v41 = vand.u32 2147483647, %v1860_v59 }
  0xd8   : > { %v1149_v39 = vpack.c.bf16 %v1133_v26, %v1133_v26  ;;  %v526_v35 = vsel %vm525_vm8, %v1427_v61, %v522_v34  ;;  %v930_v29 = vsub.f32 1.0, %v929_v36  ;;  %1434 = vpow2.f32 %v1347_v28  ;;  %v811_v61 = vpop.f32.mrf.mxu3 }
  0xd9   : > { %v531_v25 = vsel %vm528_vm9, %v530_v38, %v526_v35  ;;  %v939_v42 = vand.u32 2147483648, %v1860_v59  ;;  %1436 = vpow2.f32 %v1316_v33  ;;  %vm934_vm10 = vweird.f32 %v1431_v31 }
  0xda   : > { %1165 = vst.msk [vmem:[%s1719_s17 + $0x28] sm:$0xf] %vm745_vm6, %v1149_v39  ;;  %v716_v43 = vmul.f32 %v531_v25, %v1768_v30  ;;  %v931_v49 = vmul.f32 %v1431_v31, %v930_v29  ;;  %v1324_v37 = vmul.f32 -1.442695, %v1907_v24  ;;  %1438 = vpow2.f32 %v1340_v19 }
  0xdb   : > { %v1918_v50 = vadd.f32 %v1591_v13, %v809_v22  ;;  %v1921_v53 = vadd.f32 %v1586_v12, %v381_v40  ;;  %vm933_vm11 = vweird.f32 %v1860_v59  ;;  %v940_v30 = vor.u32 1.1754944e-38, %v939_v42 }
  0xdc   : > { %v732_v54 = vpack.c.bf16 %v716_v43, %v716_v43  ;;  %v932_v17 = vadd.f32 %v1431_v31, %v931_v49  ;;  %1440 = vpow2.f32 %v1324_v37  ;;  %vm935_vm12 = vmor %vm933_vm11, %vm934_vm10  ;;  %v1927_v58 = vadd.f32 %v1591_v13, %v791_v44 }
  0xdd   : > { %v1433_v55 = vpop.eup %1432  ;;  %v1348_v56 = vmul.f32 -1.442695, %v1918_v50  ;;  %v1317_v57 = vmul.f32 -1.442695, %v1921_v53  ;;  %vm938_vm13 = vcmp.eq.f32.partialorder %v937_v41, 8.507059e+37  ;;  %v649_v1 = vand.u32 2147483648, %v1901_v32 }
  0xde   : > { %v1435_v45 = vpop.eup %1434  ;;  %749 = vst.msk [vmem:[%s1707_s14 + $0xc] sm:$0xf] %vm745_vm6, %v732_v54  ;;  %v936_v52 = vsel %vm935_vm12, %v1431_v31, %v932_v17  ;;  %v639_v47 = vmul.f32 %v1433_v55, %v1901_v32  ;;  %v647_v59 = vand.u32 2147483647, %v1901_v32  ;;  %v1341_v63 = vmul.f32 -1.442695, %v1927_v58 }
  0xdf   : > { %v1437_v62 = vpop.eup %1436  ;;  %v941_v0 = vsel %vm938_vm13, %v940_v30, %v936_v52  ;;  %v1934_v48 = vadd.f32 1.0, %v1435_v45  ;;  %1442 = vpow2.f32 %v1348_v56  ;;  %v1942_v9 = vadd.f32 %v1586_v12, %v401_v60 }
  0xe0   : > { %v1126_v51 = vmul.f32 %v941_v0, %v1790_v15  ;;  %v640_v4 = vsub.f32 1.0, %v639_v47  ;;  %v1937_v3 = vadd.f32 1.0, %v1437_v62  ;;  %1444 = vpow2.f32 %v1317_v57  ;;  %v1439_v5 = vpop.eup %1438  ;;  %v384_v15 = vpop.f32.mrf.mxu0 }
  0xe1   : > { %1446 = vrcp.f32 %v1934_v48  ;;  %v1945_v10 = vadd.f32 %v1591_v13, %v811_v61  ;;  %vm644_vm14 = vweird.f32 %v1433_v55  ;;  %vm643_vm15 = vweird.f32 %v1901_v32 }
  0xe2   : > { %v1441_v46 = vpop.eup %1440  ;;  %v1142_v16 = vpack.c.bf16 %v1126_v51, %v1126_v51  ;;  %v641_v21 = vmul.f32 %v1433_v55, %v640_v4  ;;  %1448 = vrcp.f32 %v1937_v3  ;;  %v650_v18 = vor.u32 1.1754944e-38, %v649_v1  ;;  %vm645_vm0 = vmor %vm643_vm15, %vm644_vm14 }
  0xe3   : > { %v1057_v6 = vand.u32 2147483647, %v1934_v48  ;;  %v1059_v7 = vand.u32 2147483648, %v1934_v48  ;;  %v544_v13 = vand.u32 2147483648, %v1937_v3  ;;  %v1954_v27 = vadd.f32 1.0, %v1439_v5 }
  0xe4   : > { %1158 = vst.msk [vmem:[%s1719_s17 + $0xc] sm:$0xf] %vm745_vm6, %v1142_v16  ;;  %v642_v20 = vadd.f32 %v1433_v55, %v641_v21  ;;  %v1956_v28 = vadd.f32 1.0, %v1441_v46  ;;  %v542_v31 = vand.u32 2147483647, %v1937_v3  ;;  %1450 = vpow2.f32 %v1341_v63 }
  0xe5   : > { %v1443_v22 = vpop.eup %1442  ;;  %v1325_v23 = vmul.f32 -1.442695, %v1942_v9  ;;  %v1961_v32 = vadd.f32 %v1586_v12, %v384_v15  ;;  %vm648_vm1 = vcmp.eq.f32.partialorder %v647_v59, 8.507059e+37  ;;  %1452 = vrcp.f32 %v1954_v27 }
  0xe6   : > { %v1445_v33 = vpop.eup %1444  ;;  %v646_v26 = vsel %vm645_vm0, %v1433_v55, %v642_v20  ;;  %v1965_v34 = vmul.f32 -1.442695, %v1945_v10  ;;  %vm1053_vm2 = vweird.f32 %v1934_v48  ;;  %vm538_vm3 = vweird.f32 %v1937_v3 }
  0xe7   : > { %v1447_v36 = vpop.eup %1446  ;;  %v651_v38 = vsel %vm648_vm1, %v650_v18, %v646_v26  ;;  %1454 = vrcp.f32 %v1956_v28  ;;  %vm1972_vm4 = vcmp.eq.f32.partialorder %v1057_v6, 8.507059e+37  ;;  %v1060_v29 = vor.u32 1.1754944e-38, %v1059_v7 }
  0xe8   : > { %v1449_v19 = vpop.eup %1448  ;;  %v724_v12 = vmul.f32 %v651_v38, %v1815_v8  ;;  %v1049_v39 = vmul.f32 %v1447_v36, %v1934_v48  ;;  %v545_v40 = vor.u32 1.1754944e-38, %v544_v13  ;;  %vm1977_vm5 = vcmp.eq.f32.partialorder %v542_v31, 8.507059e+37 }
  0xe9   : > { %v534_v25 = vmul.f32 %v1449_v19, %v1937_v3  ;;  %v952_v42 = vand.u32 2147483647, %v1954_v27  ;;  %1456 = vpow2.f32 %v1325_v23  ;;  %v1983_v8 = vmul.f32 -1.442695, %v1961_v32 }
  0xea   : > { %v740_v43 = vpack.c.bf16 %v724_v12, %v724_v12  ;;  %v1050_v49 = vsub.f32 1.0, %v1049_v39  ;;  %v954_v37 = vand.u32 2147483648, %v1954_v27  ;;  %v1986_v44 = vadd.f32 1.0, %v1443_v22  ;;  %v1451_v54 = vpop.eup %1450 }
  0xeb   : > { %v535_v17 = vsub.f32 1.0, %v534_v25  ;;  %vm948_vm7 = vweird.f32 %v1954_v27  ;;  %v662_v55 = vand.u32 2147483647, %v1956_v28  ;;  %v1990_v30 = vadd.f32 1.0, %v1445_v33  ;;  %v1453_v56 = vpop.eup %1452 }
  0xec   : > { %757 = vst.msk [vmem:[%s1707_s14 + $0x2c] sm:$0xf] %vm745_vm6, %v740_v43  ;;  %v1051_v57 = vmul.f32 %v1447_v36, %v1050_v49  ;;  %vm1054_vm8 = vweird.f32 %v1447_v36  ;;  %v664_v45 = vand.u32 2147483648, %v1956_v28  ;;  %1458 = vrcp.f32 %v1986_v44 }
  0xed   : > { %v1455_v52 = vpop.eup %1454  ;;  %v536_v47 = vmul.f32 %v1449_v19, %v535_v17  ;;  %vm539_vm9 = vweird.f32 %v1449_v19  ;;  %v944_v59 = vmul.f32 %v1453_v56, %v1954_v27  ;;  %vm658_vm10 = vweird.f32 %v1956_v28  ;;  %vm1055_vm12 = vmor %vm1053_vm2, %vm1054_vm8 }
  0xee   : > { %v1052_v60 = vadd.f32 %v1447_v36, %v1051_v57  ;;  %vm1998_vm11 = vcmp.eq.f32.partialorder %v952_v42, 8.507059e+37  ;;  %v955_v62 = vor.u32 1.1754944e-38, %v954_v37  ;;  %v654_v0 = vmul.f32 %v1455_v52, %v1956_v28  ;;  %vm540_vm14 = vmor %vm538_vm3, %vm539_vm9 }
  0xef   : > { %v1457_v1 = vpop.eup %1456  ;;  %v537_v51 = vadd.f32 %v1449_v19, %v536_v47  ;;  %v945_v4 = vsub.f32 1.0, %v944_v59  ;;  %vm2005_vm13 = vcmp.eq.f32.partialorder %v662_v55, 8.507059e+37  ;;  %1460 = vrcp.f32 %v1990_v30 }
  0xf0   : > { %v1056_v63 = vsel %vm1055_vm12, %v1447_v36, %v1052_v60  ;;  %v655_v46 = vsub.f32 1.0, %v654_v0  ;;  %v665_v16 = vor.u32 1.1754944e-38, %v664_v45  ;;  %v2012_v21 = vadd.f32 1.0, %v1451_v54  ;;  %v814_v60 = vpop.f32.mrf.mxu3 }
  0xf1   : > { %v1061_v48 = vsel %vm1972_vm4, %v1060_v29, %v1056_v63  ;;  %v541_v15 = vsel %vm540_vm14, %v1449_v19, %v537_v51  ;;  %v946_v18 = vmul.f32 %v1453_v56, %v945_v4  ;;  %vm949_vm15 = vweird.f32 %v1453_v56  ;;  %v794_v29 = vpop.f32.mrf.mxu1  ;;  %v2072_v51 = vld [vmem:[%s2255_s4] ss:$0 sm:$0xff] }
  0xf2   : > { %v1459_v6 = vpop.eup %1458  ;;  %v1134_v7 = vmul.f32 %v1061_v48, %v1881_v11  ;;  %v546_v20 = vsel %vm1977_vm5, %v545_v40, %v541_v15  ;;  %v656_v13 = vmul.f32 %v1455_v52, %v655_v46  ;;  %vm659_vm0 = vweird.f32 %v1455_v52  ;;  %vm950_vm2 = vmor %vm948_vm7, %vm949_vm15 }
  0xf3   : > { %v717_v3 = vmul.f32 %v546_v20, %v1884_v14  ;;  %v947_v22 = vadd.f32 %v1453_v56, %v946_v18  ;;  %v1064_v31 = vmul.f32 %v1459_v6, %v1986_v44  ;;  %vm1068_vm1 = vweird.f32 %v1986_v44  ;;  %vm660_vm3 = vmor %vm658_vm10, %vm659_vm0 }
  0xf4   : > { %v1150_v23 = vpack.c.bf16 %v1134_v7, %v1134_v7  ;;  %v657_v33 = vadd.f32 %v1455_v52, %v656_v13  ;;  %v1072_v11 = vand.u32 2147483647, %v1986_v44  ;;  %v1074_v26 = vand.u32 2147483648, %v1986_v44  ;;  %v386_v7 = vpop.f32.mrf.mxu0 }
  0xf5   : > { %v1461_v36 = vpop.eup %1460  ;;  %v733_v38 = vpack.c.bf16 %v717_v3, %v717_v3  ;;  %v951_v19 = vsel %vm950_vm2, %v1453_v56, %v947_v22  ;;  %v1065_v14 = vsub.f32 1.0, %v1064_v31  ;;  %1462 = vrcp.f32 %v2012_v21 }
  0xf6   : > { %1166 = vst.msk [vmem:[%s1719_s17 + $0x2c] sm:$0xf] %vm745_vm6, %v1150_v23  ;;  %v956_v27 = vsel %vm1998_vm11, %v955_v62, %v951_v19  ;;  %v661_v12 = vsel %vm660_vm3, %v1455_v52, %v657_v33  ;;  %v549_v39 = vmul.f32 %v1461_v36, %v1990_v30  ;;  %v557_v35 = vand.u32 2147483647, %v1990_v30 }
  0xf7   : > { %750 = vst.msk [vmem:[%s1707_s14 + $0x10] sm:$0xf] %vm745_vm6, %v733_v38  ;;  %v1127_v40 = vmul.f32 %v956_v27, %v1893_v2  ;;  %v666_v28 = vsel %vm2005_vm13, %v665_v16, %v661_v12  ;;  %v1066_v25 = vmul.f32 %v1459_v6, %v1065_v14  ;;  %vm1069_vm4 = vweird.f32 %v1459_v6 }
  0xf8   : > { %v725_v41 = vmul.f32 %v666_v28, %v1907_v24  ;;  %vm2041_vm5 = vcmp.eq.f32.partialorder %v1072_v11, 8.507059e+37  ;;  %v550_v43 = vsub.f32 1.0, %v549_v39  ;;  %v559_v49 = vand.u32 2147483648, %v1990_v30  ;;  %vm1070_vm7 = vmor %vm1068_vm1, %vm1069_vm4  ;;  %v816_v45 = vpop.f32.mrf.mxu3 }
  0xf9   : > { %v1143_v37 = vpack.c.bf16 %v1127_v40, %v1127_v40  ;;  %v1067_v54 = vadd.f32 %v1459_v6, %v1066_v25  ;;  %v2046_v17 = vadd.f32 1.0, %v1457_v1  ;;  %1464 = vpow2.f32 %v1965_v34  ;;  %v404_v34 = vpop.f32.mrf.mxu2  ;;  %v796_v20 = vpop.f32.mrf.mxu1 }
  0xfa   : > { %v741_v2 = vpack.c.bf16 %v725_v41, %v725_v41  ;;  %v1075_v55 = vor.u32 1.1754944e-38, %v1074_v26  ;;  %v551_v24 = vmul.f32 %v1461_v36, %v550_v43  ;;  %vm554_vm8 = vweird.f32 %v1461_v36 }
  0xfb   : > { %v1463_v56 = vpop.eup %1462  ;;  %1159 = vst.msk [vmem:[%s1719_s17 + $0x10] sm:$0xf] %vm745_vm6, %v1143_v37  ;;  %v1071_v57 = vsel %vm1070_vm7, %v1459_v6, %v1067_v54  ;;  %vm553_vm9 = vweird.f32 %v1990_v30  ;;  %vm2054_vm10 = vcmp.eq.f32.partialorder %v557_v35, 8.507059e+37  ;;  %1466 = vrcp.f32 %v2046_v17 }
  0xfc   : > { %758 = vst.msk [vmem:[%s1707_s14 + $0x30] sm:$0xf] %vm745_vm6, %v741_v2  ;;  %v1076_v44 = vsel %vm2041_vm5, %v1075_v55, %v1071_v57  ;;  %v552_v52 = vadd.f32 %v1461_v36, %v551_v24  ;;  %v560_v47 = vor.u32 1.1754944e-38, %v559_v49  ;;  %v959_v59 = vmul.f32 %v1463_v56, %v2012_v21  ;;  %vm555_vm11 = vmor %vm553_vm9, %vm554_vm8 }
  0xfd   : > { %v1135_v61 = vmul.f32 %v1076_v44, %v1918_v50  ;;  %v967_v30 = vand.u32 2147483647, %v2012_v21  ;;  %v969_v62 = vand.u32 2147483648, %v2012_v21  ;;  %1468 = vpow2.f32 %v1983_v8  ;;  %v1503_v50 = vld [vmem:[%s2253_s2] ss:$0 sm:$0xff] }
  0xfe   : > { %v556_v0 = vsel %vm555_vm11, %v1461_v36, %v552_v52  ;;  %v960_v1 = vsub.f32 1.0, %v959_v59  ;;  %v2075_v4 = vadd.f32 %v2072_v51, %v794_v29  ;;  %v2080_v5 = vadd.f32 %v1503_v50, %v404_v34 }
  0xff   : > { %v1465_v63 = vpop.eup %1464  ;;  %v1151_v46 = vpack.c.bf16 %v1135_v61, %v1135_v61  ;;  %v561_v8 = vsel %vm2054_vm10, %v560_v47, %v556_v0  ;;  %vm964_vm12 = vweird.f32 %v1463_v56  ;;  %v2085_v16 = vadd.f32 %v2072_v51, %v814_v60 }
 0x100   : > { %v718_v48 = vmul.f32 %v561_v8, %v1921_v53  ;;  %v961_v15 = vmul.f32 %v1463_v56, %v960_v1  ;;  %v2088_v18 = vadd.f32 1.0, %v1465_v63  ;;  %v1342_v6 = vmul.f32 -1.442695, %v2075_v4 }
 0x101   : > { %v1467_v13 = vpop.eup %1466  ;;  %1167 = vst.msk [vmem:[%s1719_s17 + $0x30] sm:$0xf] %vm745_vm6, %v1151_v46  ;;  %vm963_vm13 = vweird.f32 %v2012_v21  ;;  %vm2094_vm14 = vcmp.eq.f32.partialorder %v967_v30, 8.507059e+37  ;;  %v1326_v22 = vmul.f32 -1.442695, %v2080_v5  ;;  %v970_v23 = vor.u32 1.1754944e-38, %v969_v62  ;;  %v406_v42 = vpop.f32.mrf.mxu2 }
 0x102   : > { %v734_v53 = vpack.c.bf16 %v718_v48, %v718_v48  ;;  %v962_v31 = vadd.f32 %v1463_v56, %v961_v15  ;;  %v669_v33 = vmul.f32 %v1467_v13, %v2046_v17  ;;  %vm965_vm15 = vmor %vm963_vm13, %vm964_vm12  ;;  %1470 = vrcp.f32 %v2088_v18 }
 0x103   : > { %v1469_v11 = vpop.eup %1468  ;;  %v1350_v26 = vmul.f32 -1.442695, %v2085_v16  ;;  %v2103_v36 = vadd.f32 %v1503_v50, %v386_v7  ;;  %v2106_v21 = vadd.f32 %v2072_v51, %v796_v20  ;;  %1472 = vpow2.f32 %v1342_v6 }
 0x104   : > { %751 = vst.msk [vmem:[%s1707_s14 + $0x14] sm:$0xf] %vm745_vm6, %v734_v53  ;;  %v966_v38 = vsel %vm965_vm15, %v1463_v56, %v962_v31  ;;  %v670_v19 = vsub.f32 1.0, %v669_v33  ;;  %v2110_v14 = vadd.f32 1.0, %v1469_v11  ;;  %v677_v12 = vand.u32 2147483647, %v2046_v17 }
 0x105   : > { %v971_v27 = vsel %vm2094_vm14, %v970_v23, %v966_v38  ;;  %v679_v39 = vand.u32 2147483648, %v2046_v17  ;;  %1474 = vpow2.f32 %v1326_v22  ;;  %vm674_vm0 = vweird.f32 %v1467_v13 }
 0x106   : > { %v1128_v35 = vmul.f32 %v971_v27, %v1927_v58  ;;  %v671_v29 = vmul.f32 %v1467_v13, %v670_v19  ;;  %1476 = vrcp.f32 %v2110_v14  ;;  %vm673_vm1 = vweird.f32 %v2046_v17 }
 0x107   : > { %v1319_v40 = vmul.f32 -1.442695, %v2103_v36  ;;  %1478 = vpow2.f32 %v1350_v26  ;;  %v1343_v41 = vmul.f32 -1.442695, %v2106_v21  ;;  %vm675_vm2 = vmor %vm673_vm1, %vm674_vm0  ;;  %v680_v49 = vor.u32 1.1754944e-38, %v679_v39 }
 0x108   : > { %v1144_v28 = vpack.c.bf16 %v1128_v35, %v1128_v35  ;;  %v672_v25 = vadd.f32 %v1467_v13, %v671_v29  ;;  %v1471_v43 = vpop.eup %1470  ;;  %vm678_vm3 = vcmp.eq.f32.partialorder %v677_v12, 8.507059e+37  ;;  %v1087_v17 = vand.u32 2147483647, %v2088_v18 }
 0x109   : > { %1480 = vpow2.f32 %v1319_v40  ;;  %v1473_v58 = vpop.eup %1472  ;;  %v1079_v54 = vmul.f32 %v1471_v43, %v2088_v18  ;;  %v1089_v24 = vand.u32 2147483648, %v2088_v18  ;;  %v2128_v57 = vadd.f32 %v1503_v50, %v406_v42 }
 0x10a   : > { %1160 = vst.msk [vmem:[%s1719_s17 + $0x14] sm:$0xf] %vm745_vm6, %v1144_v28  ;;  %v676_v37 = vsel %vm675_vm2, %v1467_v13, %v672_v25  ;;  %v2126_v56 = vadd.f32 1.0, %v1473_v58  ;;  %1482 = vpow2.f32 %v1343_v41  ;;  %v572_v60 = vand.u32 2147483647, %v2110_v14 }
 0x10b   : > { %v1475_v2 = vpop.eup %1474  ;;  %v681_v55 = vsel %vm678_vm3, %v680_v49, %v676_v37  ;;  %v1080_v52 = vsub.f32 1.0, %v1079_v54  ;;  %v574_v61 = vand.u32 2147483648, %v2110_v14  ;;  %vm1084_vm4 = vweird.f32 %v1471_v43 }
 0x10c   : > { %v1477_v34 = vpop.eup %1476  ;;  %v726_v44 = vmul.f32 %v681_v55, %v1942_v9  ;;  %v2131_v47 = vadd.f32 1.0, %v1475_v2  ;;  %1484 = vrcp.f32 %v2126_v56  ;;  %v2138_v1 = vadd.f32 %v2072_v51, %v816_v45 }
 0x10d   : > { %v564_v59 = vmul.f32 %v1477_v34, %v2110_v14  ;;  %v1479_v30 = vpop.eup %1478  ;;  %v1081_v0 = vmul.f32 %v1471_v43, %v1080_v52  ;;  %vm1083_vm5 = vweird.f32 %v2088_v18  ;;  %vm2141_vm7 = vcmp.eq.f32.partialorder %v1087_v17, 8.507059e+37 }
 0x10e   : > { %v742_v62 = vpack.c.bf16 %v726_v44, %v726_v44  ;;  %1486 = vrcp.f32 %v2131_v47  ;;  %v1090_v8 = vor.u32 1.1754944e-38, %v1089_v24  ;;  %vm568_vm8 = vweird.f32 %v2110_v14  ;;  %vm1085_vm9 = vmor %vm1083_vm5, %vm1084_vm4 }
 0x10f   : > { %v1481_v9 = vpop.eup %1480  ;;  %v565_v63 = vsub.f32 1.0, %v564_v59  ;;  %v1082_v46 = vadd.f32 %v1471_v43, %v1081_v0  ;;  %v1327_v48 = vmul.f32 -1.442695, %v2128_v57  ;;  %vm569_vm10 = vweird.f32 %v1477_v34 }
 0x110   : > { %759 = vst.msk [vmem:[%s1707_s14 + $0x34] sm:$0xf] %vm745_vm6, %v742_v62  ;;  %v2150_v15 = vadd.f32 1.0, %v1479_v30  ;;  %v2152_v18 = vadd.f32 1.0, %v1481_v9  ;;  %v1483_v6 = vpop.eup %1482  ;;  %vm2154_vm11 = vcmp.eq.f32.partialorder %v572_v60, 8.507059e+37  ;;  %v575_v13 = vor.u32 1.1754944e-38, %v574_v61  ;;  %vm570_vm12 = vmor %vm568_vm8, %vm569_vm10 }
 0x111   : > { %v566_v51 = vmul.f32 %v1477_v34, %v565_v63  ;;  %v1086_v7 = vsel %vm1085_vm9, %v1471_v43, %v1082_v46  ;;  %v2159_v3 = vmul.f32 -1.442695, %v2138_v1  ;;  %v982_v23 = vand.u32 2147483647, %v2126_v56 }
 0x112   : > { %v1485_v22 = vpop.eup %1484  ;;  %v1091_v53 = vsel %vm2141_vm7, %v1090_v8, %v1086_v7  ;;  %1488 = vrcp.f32 %v2150_v15  ;;  %v984_v26 = vand.u32 2147483648, %v2126_v56  ;;  %v692_v27 = vand.u32 2147483647, %v2131_v47 }
 0x113   : > { %v567_v31 = vadd.f32 %v1477_v34, %v566_v51  ;;  %v1136_v33 = vmul.f32 %v1091_v53, %v1945_v10  ;;  %v974_v11 = vmul.f32 %v1485_v22, %v2126_v56  ;;  %1490 = vpow2.f32 %v1327_v48 }
 0x114   : > { %v1487_v38 = vpop.eup %1486  ;;  %1492 = vrcp.f32 %v2152_v18  ;;  %v2172_v12 = vadd.f32 1.0, %v1483_v6  ;;  %vm978_vm13 = vweird.f32 %v2126_v56  ;;  %vm688_vm14 = vweird.f32 %v2131_v47 }
 0x115   : > { %v571_v19 = vsel %vm570_vm12, %v1477_v34, %v567_v31  ;;  %v1152_v39 = vpack.c.bf16 %v1136_v33, %v1136_v33  ;;  %v975_v14 = vsub.f32 1.0, %v974_v11  ;;  %v684_v35 = vmul.f32 %v1487_v38, %v2131_v47 }
 0x116   : > { %v576_v10 = vsel %vm2154_vm11, %v575_v13, %v571_v19  ;;  %v694_v40 = vand.u32 2147483648, %v2131_v47  ;;  %vm979_vm15 = vweird.f32 %v1485_v22  ;;  %vm2183_vm0 = vcmp.eq.f32.partialorder %v982_v23, 8.507059e+37 }
 0x117   : > { %v719_v29 = vmul.f32 %v576_v10, %v1961_v32  ;;  %1168 = vst.msk [vmem:[%s1719_s17 + $0x34] sm:$0xf] %vm745_vm6, %v1152_v39  ;;  %v976_v28 = vmul.f32 %v1485_v22, %v975_v14  ;;  %v685_v41 = vsub.f32 1.0, %v684_v35  ;;  %v985_v49 = vor.u32 1.1754944e-38, %v984_v26  ;;  %vm980_vm3 = vmor %vm978_vm13, %vm979_vm15 }
 0x118   : > { %v1489_v42 = vpop.eup %1488  ;;  %vm2187_vm1 = vcmp.eq.f32.partialorder %v692_v27, 8.507059e+37  ;;  %1494 = vrcp.f32 %v2172_v12  ;;  %vm689_vm2 = vweird.f32 %v1487_v38  ;;  %v695_v55 = vor.u32 1.1754944e-38, %v694_v40 }
 0x119   : > { %v735_v43 = vpack.c.bf16 %v719_v29, %v719_v29  ;;  %v1491_v58 = vpop.eup %1490  ;;  %v977_v37 = vadd.f32 %v1485_v22, %v976_v28  ;;  %v686_v54 = vmul.f32 %v1487_v38, %v685_v41  ;;  %v1094_v17 = vmul.f32 %v1489_v42, %v2150_v15  ;;  %vm690_vm5 = vmor %vm688_vm14, %vm689_vm2 }
 0x11a   : > { %v1493_v2 = vpop.eup %1492  ;;  %vm1098_vm4 = vweird.f32 %v2150_v15  ;;  %v1102_v24 = vand.u32 2147483647, %v2150_v15  ;;  %v1104_v45 = vand.u32 2147483648, %v2150_v15  ;;  %vm1099_vm7 = vweird.f32 %v1489_v42 }
 0x11b   : > { %752 = vst.msk [vmem:[%s1707_s14 + $0x18] sm:$0xf] %vm745_vm6, %v735_v43  ;;  %v981_v34 = vsel %vm980_vm3, %v1485_v22, %v977_v37  ;;  %v687_v44 = vadd.f32 %v1487_v38, %v686_v54  ;;  %v1095_v52 = vsub.f32 1.0, %v1094_v17  ;;  %v579_v59 = vmul.f32 %v1493_v2, %v2152_v18  ;;  %vm1100_vm9 = vmor %vm1098_vm4, %vm1099_vm7 }
 0x11c   : > { %v986_v60 = vsel %vm2183_vm0, %v985_v49, %v981_v34  ;;  %v587_v56 = vand.u32 2147483647, %v2152_v18  ;;  %v2207_v61 = vadd.f32 1.0, %v1491_v58  ;;  %vm584_vm8 = vweird.f32 %v1493_v2 }
 0x11d   : > { %v1129_v30 = vmul.f32 %v986_v60, %v2075_v4  ;;  %v691_v62 = vsel %vm690_vm5, %v1487_v38, %v687_v44  ;;  %v1096_v0 = vmul.f32 %v1489_v42, %v1095_v52  ;;  %v580_v9 = vsub.f32 1.0, %v579_v59 }
 0x11e   : > { %v1495_v50 = vpop.eup %1494  ;;  %v696_v63 = vsel %vm2187_vm1, %v695_v55, %v691_v62  ;;  %v589_v46 = vand.u32 2147483648, %v2152_v18  ;;  %1496 = vrcp.f32 %v2207_v61  ;;  %vm1103_vm10 = vcmp.eq.f32.partialorder %v1102_v24, 8.507059e+37 }
 0x11f   : > { %v1145_v47 = vpack.c.bf16 %v1129_v30, %v1129_v30  ;;  %v727_v8 = vmul.f32 %v696_v63, %v2080_v5  ;;  %v1097_v48 = vadd.f32 %v1489_v42, %v1096_v0  ;;  %v581_v51 = vmul.f32 %v1493_v2, %v580_v9 }
 0x120   : > { %v1105_v4 = vor.u32 1.1754944e-38, %v1104_v45  ;;  %vm583_vm11 = vweird.f32 %v2152_v18  ;;  %v989_v6 = vmul.f32 %v1495_v50, %v2172_v12  ;;  %1498 = vpow2.f32 %v2159_v3 }
 0x121   : > { %1161 = vst.msk [vmem:[%s1719_s17 + $0x18] sm:$0xf] %vm745_vm6, %v1145_v47  ;;  %v743_v7 = vpack.c.bf16 %v727_v8, %v727_v8  ;;  %v1101_v20 = vsel %vm1100_vm9, %v1489_v42, %v1097_v48  ;;  %v582_v13 = vadd.f32 %v1493_v2, %v581_v51  ;;  %vm585_vm12 = vmor %vm583_vm11, %vm584_vm8  ;;  %v590_v22 = vor.u32 1.1754944e-38, %v589_v46 }
 0x122   : > { %v1106_v5 = vsel %vm1103_vm10, %v1105_v4, %v1101_v20  ;;  %v990_v53 = vsub.f32 1.0, %v989_v6  ;;  %vm588_vm13 = vcmp.eq.f32.partialorder %v587_v56, 8.507059e+37  ;;  %v999_v31 = vand.u32 2147483648, %v2172_v12 }
 0x123   : > { %760 = vst.msk [vmem:[%s1707_s14 + $0x38] sm:$0xf] %vm745_vm6, %v743_v7  ;;  %v1137_v15 = vmul.f32 %v1106_v5, %v2085_v16  ;;  %v586_v18 = vsel %vm585_vm12, %v1493_v2, %v582_v13  ;;  %vm994_vm14 = vweird.f32 %v1495_v50  ;;  %v997_v3 = vand.u32 2147483647, %v2172_v12 }
 0x124   : > { %v1497_v23 = vpop.eup %1496  ;;  %v591_v33 = vsel %vm588_vm13, %v590_v22, %v586_v18  ;;  %v991_v11 = vmul.f32 %v1495_v50, %v990_v53  ;;  %vm993_vm15 = vweird.f32 %v2172_v12  ;;  %v1000_v10 = vor.u32 1.1754944e-38, %v999_v31 }
 0x125   : > { %v1153_v26 = vpack.c.bf16 %v1137_v15, %v1137_v15  ;;  %v720_v38 = vmul.f32 %v591_v33, %v2103_v36  ;;  %v699_v19 = vmul.f32 %v1497_v23, %v2207_v61  ;;  %vm995_vm0 = vmor %vm993_vm15, %vm994_vm14  ;;  %vm998_vm1 = vcmp.eq.f32.partialorder %v997_v3, 8.507059e+37 }
 0x126   : > { %v992_v27 = vadd.f32 %v1495_v50, %v991_v11  ;;  %v1499_v16 = vpop.eup %1498  ;;  %v709_v29 = vand.u32 2147483648, %v2207_v61  ;;  %vm704_vm2 = vweird.f32 %v1497_v23  ;;  %v707_v12 = vand.u32 2147483647, %v2207_v61 }
 0x127   : > { %1169 = vst.msk [vmem:[%s1719_s17 + $0x38] sm:$0xf] %vm745_vm6, %v1153_v26  ;;  %v736_v39 = vpack.c.bf16 %v720_v38, %v720_v38  ;;  %v700_v14 = vsub.f32 1.0, %v699_v19  ;;  %v882_v40 = vadd.f32 1.0, %v1499_v16  ;;  %vm703_vm3 = vweird.f32 %v2207_v61 }
 0x128   : > { %v996_v35 = vsel %vm995_vm0, %v1495_v50, %v992_v27  ;;  %vm705_vm4 = vmor %vm703_vm3, %vm704_vm2  ;;  %v710_v43 = vor.u32 1.1754944e-38, %v709_v29  ;;  %vm708_vm5 = vcmp.eq.f32.partialorder %v707_v12, 8.507059e+37 }
 0x129   : > { %753 = vst.msk [vmem:[%s1707_s14 + $0x1c] sm:$0xf] %vm745_vm6, %v736_v39  ;;  %v1001_v36 = vsel %vm998_vm1, %v1000_v10, %v996_v35  ;;  %v701_v28 = vmul.f32 %v1497_v23, %v700_v14  ;;  %1500 = vrcp.f32 %v882_v40  ;;  %v1119_v2 = vand.u32 2147483648, %v882_v40 }
 0x12a   : > { %v1130_v25 = vmul.f32 %v1001_v36, %v2106_v21  ;;  %v1117_v24 = vand.u32 2147483647, %v882_v40  ;;  %vm1113_vm8 = vweird.f32 %v882_v40 }
 0x12b   : > { %v702_v41 = vadd.f32 %v1497_v23, %v701_v28  ;;  %v1120_v34 = vor.u32 1.1754944e-38, %v1119_v2 }
 0x12c   : > { %v1146_v42 = vpack.c.bf16 %v1130_v25, %v1130_v25  ;;  %vm1118_vm10 = vcmp.eq.f32.partialorder %v1117_v24, 8.507059e+37 }
 0x12d   : > { %v706_v49 = vsel %vm705_vm4, %v1497_v23, %v702_v41 }
 0x12e   : > { %1162 = vst.msk [vmem:[%s1719_s17 + $0x1c] sm:$0xf] %vm745_vm6, %v1146_v42  ;;  %v711_v32 = vsel %vm708_vm5, %v710_v43, %v706_v49 }
 0x12f   : > { %v728_v58 = vmul.f32 %v711_v32, %v2128_v57  ;;  %v1501_v37 = vpop.eup %1500 }
 0x130   : > { %v1109_v17 = vmul.f32 %v1501_v37, %v882_v40  ;;  %vm1114_vm7 = vweird.f32 %v1501_v37 }
 0x131   : > { %v744_v54 = vpack.c.bf16 %v728_v58, %v728_v58  ;;  %vm1115_vm9 = vmor %vm1113_vm8, %vm1114_vm7 }
 0x132   : > { %v1110_v21 = vsub.f32 1.0, %v1109_v17 }
 0x133   : > { %761 = vst.msk [vmem:[%s1707_s14 + $0x3c] sm:$0xf] %vm745_vm6, %v744_v54 }
 0x134   : > { %v1111_v55 = vmul.f32 %v1501_v37, %v1110_v21 }
 0x136   : > { %v1112_v45 = vadd.f32 %v1501_v37, %v1111_v55 }
 0x138   : > { %v1116_v44 = vsel %vm1115_vm9, %v1501_v37, %v1112_v45 }
 0x139   : > { %v1121_v52 = vsel %vm1118_vm10, %v1120_v34, %v1116_v44 }
 0x13a   : > { %v1138_v57 = vmul.f32 %v1121_v52, %v2138_v1 }
 0x13c   : > { %v1154_v59 = vpack.c.bf16 %v1138_v57, %v1138_v57 }
 0x13e   : > { %1170 = vst.msk [vmem:[%s1719_s17 + $0x3c] sm:$0xf] %vm745_vm6, %v1154_v59 }
 0x13f PF: > { %s17_s21 = sadd.s32 1, %s1510_s21  }
 0x140   : > { %p14_p4 = scmp.ge.s32.totalorder %s17_s21, 6  }
 0x142   :  { %16 = sbr.rel (!%p14_p4) target bundleno = 1 (0x1), region = 82 }

// kernel: c3_forward.7
= control target key start
LH: loop header
LB: loop body
LE: loop exit
PB: predicated region body
PF: predicated region fallthrough
CT: control target
= control target key end

     0   :  { %s1460_s21 = smov 0   ;;  %s1770_s0 = inlined_call_operand.vmem [shape: bf16[512,4], index: 0, kind: input, shape index: {}]   ;;  %s1771_s1 = inlined_call_operand.vmem [shape: bf16[512,4], index: 1, kind: input, shape index: {}]   ;;  %s1772_s2 = inlined_call_operand.vmem [shape: bf16[512,4], index: 2, kind: input, shape index: {}]   ;;  %s1773_s3 = inlined_call_operand.vmem [shape: bf16[4,8], index: 3, kind: input, shape index: {}]   ;;  %s1774_s4 = inlined_call_operand.vmem [shape: bf16[4,8], index: 4, kind: input, shape index: {}]   ;;  %s1775_s5 = inlined_call_operand.vmem [shape: f32[1,8], index: 5, kind: input, shape index: {}]   ;;  %s1776_s6 = inlined_call_operand.vmem [shape: bf16[512,8], index: 6, kind: output, shape index: {}]  }
   0x1 LB: > { %s1166_s22 = sadd.s32 4294967295, %s1423_s21   ;;  %p1170_p0 = scmp.ge.s32.totalorder %s1423_s21, 1  ;;  %s1423_s21 = sphi %s1460_s21, %s16_s21  }
   0x2   : > { %p235_p1 = scmp.lt.s32.totalorder %s1423_s21, 5 }
   0x4   : > { %p236_p2 = pnand %p1170_p0, %p235_p1 }
   0x5   : > { %s1171_s27 = sshll.u32 (!%p236_p2), %s1166_s22, 4 }
   0x6   : > { %239 = sbr.rel (%p236_p2) target bundleno = 281 (0x119), region = 44  ;;  %p276_p3 = scmp.lt.s32.totalorder (!%p236_p2), %s1171_s27, 63 }
   0xb   : > { %v316_v0 = vld [vmem:[%s1773_s3] sm:$0x3]  ;;  %vm398_vm0 = vcmask 1041408   ;;  %s1784_s27 = smov (!%p276_p3, %s1171_s27), 63  ;;  %vm373_vm1 = vcmask 31744   ;;  %vm1069_vm6 = vcmask 60416  }
   0xc   : > { %v580_v1 = vld [vmem:[%s1774_s4] sm:$0x3]  ;;  %v400_v2 = vsel %vm398_vm0, %v316_v0, 0  ;;  %s1474_s28 = sshll.u32 %s1784_s27, 2 }
   0xd   : > { %v646_v3 = vsel %vm398_vm0, %v580_v1, 0  ;;  %409 = vmatpush.bf16.msra.mxu0 %v400_v2  ;;  %1341 = vmatpush.bf16.msra.mxu3 %v400_v2  ;;  %s1480_s7 = scalar_lea.vmem %s1771_s1, %s1474_s28  ;;  %s1486_s10 = scalar_lea.vmem %s1770_s0, %s1474_s28  ;;  %v1547_v32 = vld [vmem:[%s1775_s5] ss:$0 sm:$0xff] }
   0xe   : > { %522 = vmatpush.bf16.msra.mxu1 %v400_v2  ;;  %655 = vmatpush.bf16.msra.mxu2 %v646_v3  ;;  %v1325_v4 = vld [vmem:[%s1480_s7] sm:$0xff]  ;;  %v1331_v5 = vld [vmem:[%s1480_s7 + $0x30] sm:$0xff]  ;;  %s1495_s13 = scalar_lea.vmem %s1772_s2, %s1474_s28  ;;  %v1326_v8 = vld [vmem:[%s1480_s7 + $0x8] sm:$0xff]  ;;  %s1577_s18 = scalar_lea.vmem %s1776_s6, %s1474_s28 }
   0xf   : > { %v1317_v6 = vld [vmem:[%s1486_s10] sm:$0xff]  ;;  %v1332_v9 = vld [vmem:[%s1480_s7 + $0x38] sm:$0xff]  ;;  %v1318_v10 = vld [vmem:[%s1486_s10 + $0x8] sm:$0xff] }
  0x10   : > { %v1333_v7 = vld [vmem:[%s1495_s13] sm:$0xff]  ;;  %1211 = vmatmul.msk.bf16.vlgmr.msra.gmra.mxu0 %vm373_vm1, %v1325_v4  ;;  %1217 = vmatmul.msk.bf16.vlgmr.msra.gmra.mxu3 %vm373_vm1, %v1331_v5  ;;  %v1334_v11 = vld [vmem:[%s1495_s13 + $0x8] sm:$0xff]  ;;  %v1327_v12 = vld [vmem:[%s1480_s7 + $0x10] sm:$0xff] }
  0x11   : > { %1342 = vmatpush.bf16.msrb.mxu3 %v400_v2  ;;  %1251 = vmatmul.msk.bf16.vlgmr.msra.gmra.mxu1 %vm373_vm1, %v1317_v6  ;;  %v1323_v13 = vld [vmem:[%s1486_s10 + $0x30] sm:$0xff]  ;;  %v1328_v16 = vld [vmem:[%s1480_s7 + $0x18] sm:$0xff]  ;;  %v1329_v20 = vld [vmem:[%s1480_s7 + $0x20] sm:$0xff] }
  0x12   : > { %1291 = vmatmul.msk.bf16.vlgmr.msra.gmra.mxu2 %vm373_vm1, %v1333_v7  ;;  %v1319_v14 = vld [vmem:[%s1486_s10 + $0x10] sm:$0xff]  ;;  %v1324_v17 = vld [vmem:[%s1486_s10 + $0x38] sm:$0xff]  ;;  %v1321_v22 = vld [vmem:[%s1486_s10 + $0x20] sm:$0xff] }
  0x13   : > { %v1335_v15 = vld [vmem:[%s1495_s13 + $0x10] sm:$0xff]  ;;  %v1320_v18 = vld [vmem:[%s1486_s10 + $0x18] sm:$0xff]  ;;  %v1337_v23 = vld [vmem:[%s1495_s13 + $0x20] sm:$0xff] }
  0x14   : > { %v1336_v19 = vld [vmem:[%s1495_s13 + $0x18] sm:$0xff]  ;;  %v1339_v21 = vld [vmem:[%s1495_s13 + $0x30] sm:$0xff]  ;;  %v1330_v24 = vld [vmem:[%s1480_s7 + $0x28] sm:$0xff] }
  0x15   : > { %1343 = vmatpush.bf16.msra.mxu3 %v646_v3  ;;  %v1340_v25 = vld [vmem:[%s1495_s13 + $0x38] sm:$0xff]  ;;  %v1322_v26 = vld [vmem:[%s1486_s10 + $0x28] sm:$0xff] }
  0x16   : > { %v1338_v27 = vld [vmem:[%s1495_s13 + $0x28] sm:$0xff] }
  0x20   : > { %1212 = vmatmul.msk.bf16.gmra.mxu0 %vm373_vm1, %v1326_v8  ;;  %1218 = vmatmul.msk.bf16.gmra.mxu3 %vm373_vm1, %v1332_v9 }
  0x21   : > { %1252 = vmatmul.msk.bf16.gmra.mxu1 %vm373_vm1, %v1318_v10 }
  0x22   : > { %1292 = vmatmul.msk.bf16.gmra.mxu2 %vm373_vm1, %v1334_v11 }
  0x30   : > { %1213 = vmatmul.msk.bf16.gmra.mxu0 %vm373_vm1, %v1327_v12  ;;  %1257 = vmatmul.msk.bf16.vlgmr.msrb.gmra.mxu3 %vm373_vm1, %v1323_v13 }
  0x31   : > { %1253 = vmatmul.msk.bf16.gmra.mxu1 %vm373_vm1, %v1319_v14 }
  0x32   : > { %1293 = vmatmul.msk.bf16.gmra.mxu2 %vm373_vm1, %v1335_v15 }
  0x40   : > { %1214 = vmatmul.msk.bf16.gmra.mxu0 %vm373_vm1, %v1328_v16  ;;  %1258 = vmatmul.msk.bf16.gmra.mxu3 %vm373_vm1, %v1324_v17 }
  0x41   : > { %1254 = vmatmul.msk.bf16.gmra.mxu1 %vm373_vm1, %v1320_v18 }
  0x42   : > { %1294 = vmatmul.msk.bf16.gmra.mxu2 %vm373_vm1, %v1336_v19 }
  0x50   : > { %1215 = vmatmul.msk.bf16.gmra.mxu0 %vm373_vm1, %v1329_v20  ;;  %1297 = vmatmul.msk.bf16.vlgmr.msra.gmra.mxu3 %vm373_vm1, %v1339_v21 }
  0x51   : > { %1255 = vmatmul.msk.bf16.gmra.mxu1 %vm373_vm1, %v1321_v22 }
  0x52   : > { %1295 = vmatmul.msk.bf16.gmra.mxu2 %vm373_vm1, %v1337_v23 }
  0x60   : > { %1216 = vmatmul.msk.bf16.gmra.mxu0 %vm373_vm1, %v1330_v24  ;;  %1298 = vmatmul.msk.bf16.gmra.mxu3 %vm373_vm1, %v1340_v25 }
  0x61   : > { %1256 = vmatmul.msk.bf16.gmra.mxu1 %vm373_vm1, %v1322_v26 }
  0x62   : > { %1296 = vmatmul.msk.bf16.gmra.mxu2 %vm373_vm1, %v1338_v27 }
  0x8d   : > { %v411_v28 = vpop.f32.mrf.mxu0 }
  0x8e   : > { %v524_v29 = vpop.f32.mrf.mxu1 }
  0x8f   : > { %v525_v30 = vadd.f32 %v524_v29, %v411_v28 }
  0x93   : > { %v1542_v31 = vpop.f32.mrf.mxu3 }
  0x95   : > { %v657_v33 = vpop.f32.mrf.mxu2  ;;  %v413_v35 = vpop.f32.mrf.mxu0 }
  0x96   : > { %v697_v34 = vadd.f32 %v657_v33, %v525_v30  ;;  %v526_v36 = vpop.f32.mrf.mxu1 }
  0x97   : > { %v527_v39 = vadd.f32 %v526_v36, %v413_v35 }
  0x98   : > { %v717_v37 = vadd.f32 %v1547_v32, %v697_v34 }
  0x9a   : > { %v1299_v38 = vmul.f32 -1.442695, %v717_v37 }
  0x9b   : > { %v1550_v40 = vpop.f32.mrf.mxu3 }
  0x9c   : > { %1353 = vpow2.f32 %v1299_v38 }
  0x9d   : > { %v659_v41 = vpop.f32.mrf.mxu2  ;;  %v416_v43 = vpop.f32.mrf.mxu0 }
  0x9e   : > { %v698_v42 = vadd.f32 %v659_v41, %v527_v39  ;;  %v529_v44 = vpop.f32.mrf.mxu1 }
  0x9f   : > { %v530_v48 = vadd.f32 %v529_v44, %v416_v43 }
  0xa0   : > { %v1553_v45 = vadd.f32 %v1547_v32, %v698_v42 }
  0xa2   : > { %v1354_v46 = vpop.eup %1353  ;;  %v1300_v47 = vmul.f32 -1.442695, %v1553_v45 }
  0xa3   : > { %v781_v49 = vadd.f32 1.0, %v1354_v46  ;;  %v1556_v50 = vpop.f32.mrf.mxu3 }
  0xa4   : > { %1355 = vpow2.f32 %v1300_v47 }
  0xa5   : > { %1357 = vrcp.f32 %v781_v49  ;;  %v662_v51 = vpop.f32.mrf.mxu2  ;;  %v418_v53 = vpop.f32.mrf.mxu0  ;;  %v808_v3 = vand.u32 2147483648, %v781_v49  ;;  %v806_v6 = vand.u32 2147483647, %v781_v49  ;;  %vm802_vm3 = vweird.f32 %v781_v49 }
  0xa6   : > { %v699_v52 = vadd.f32 %v662_v51, %v530_v48  ;;  %v531_v54 = vpop.f32.mrf.mxu1 }
  0xa7   : > { %v532_v61 = vadd.f32 %v531_v54, %v418_v53  ;;  %v809_v12 = vor.u32 1.1754944e-38, %v808_v3  ;;  %vm807_vm5 = vcmp.eq.f32.partialorder %v806_v6, 8.507059e+37 }
  0xa8   : > { %v1559_v55 = vadd.f32 %v1547_v32, %v699_v52 }
  0xaa   : > { %v1356_v56 = vpop.eup %1355  ;;  %v1301_v57 = vmul.f32 -1.442695, %v1559_v55 }
  0xab   : > { %v1358_v58 = vpop.eup %1357  ;;  %v782_v59 = vadd.f32 1.0, %v1356_v56  ;;  %v1562_v62 = vpop.f32.mrf.mxu3 }
  0xac   : > { %v798_v60 = vmul.f32 %v1358_v58, %v781_v49  ;;  %1359 = vpow2.f32 %v1301_v57  ;;  %vm803_vm2 = vweird.f32 %v1358_v58 }
  0xad   : > { %1361 = vrcp.f32 %v782_v59  ;;  %v664_v63 = vpop.f32.mrf.mxu2  ;;  %v421_v2 = vpop.f32.mrf.mxu0  ;;  %vm804_vm4 = vmor %vm802_vm3, %vm803_vm2  ;;  %v823_v23 = vand.u32 2147483648, %v782_v59  ;;  %v821_v28 = vand.u32 2147483647, %v782_v59  ;;  %vm817_vm8 = vweird.f32 %v782_v59 }
  0xae   : > { %v799_v0 = vsub.f32 1.0, %v798_v60  ;;  %v700_v1 = vadd.f32 %v664_v63, %v532_v61  ;;  %v534_v4 = vpop.f32.mrf.mxu1 }
  0xaf   : > { %v535_v14 = vadd.f32 %v534_v4, %v421_v2  ;;  %v824_v35 = vor.u32 1.1754944e-38, %v823_v23  ;;  %vm822_vm10 = vcmp.eq.f32.partialorder %v821_v28, 8.507059e+37 }
  0xb0   : > { %v800_v5 = vmul.f32 %v1358_v58, %v799_v0  ;;  %v1565_v7 = vadd.f32 %v1547_v32, %v700_v1 }
  0xb2   : > { %v1360_v8 = vpop.eup %1359  ;;  %v801_v9 = vadd.f32 %v1358_v58, %v800_v5  ;;  %v1302_v10 = vmul.f32 -1.442695, %v1565_v7 }
  0xb3   : > { %v1362_v11 = vpop.eup %1361  ;;  %v1568_v13 = vadd.f32 1.0, %v1360_v8  ;;  %v1570_v17 = vpop.f32.mrf.mxu3 }
  0xb4   : > { %v805_v15 = vsel %vm804_vm4, %v1358_v58, %v801_v9  ;;  %v813_v16 = vmul.f32 %v1362_v11, %v782_v59  ;;  %1363 = vpow2.f32 %v1302_v10  ;;  %vm818_vm7 = vweird.f32 %v1362_v11 }
  0xb5   : > { %v810_v18 = vsel %vm807_vm5, %v809_v12, %v805_v15  ;;  %1365 = vrcp.f32 %v1568_v13  ;;  %v667_v19 = vpop.f32.mrf.mxu2  ;;  %v423_v22 = vpop.f32.mrf.mxu0  ;;  %vm819_vm9 = vmor %vm817_vm8, %vm818_vm7  ;;  %v838_v49 = vand.u32 2147483648, %v1568_v13  ;;  %v836_v56 = vand.u32 2147483647, %v1568_v13 }
  0xb6   : > { %v1037_v20 = vmul.f32 %v810_v18, %v717_v37  ;;  %v814_v21 = vsub.f32 1.0, %v813_v16  ;;  %v701_v24 = vadd.f32 %v667_v19, %v535_v14  ;;  %v536_v25 = vpop.f32.mrf.mxu1  ;;  %vm832_vm12 = vweird.f32 %v1568_v13 }
  0xb7   : > { %v537_v43 = vadd.f32 %v536_v25, %v423_v22  ;;  %v839_v60 = vor.u32 1.1754944e-38, %v838_v49  ;;  %vm837_vm14 = vcmp.eq.f32.partialorder %v836_v56, 8.507059e+37 }
  0xb8   : > { %v1053_v26 = vpack.c.bf16 %v1037_v20, %v1037_v20  ;;  %v815_v27 = vmul.f32 %v1362_v11, %v814_v21  ;;  %v1580_v29 = vadd.f32 %v1547_v32, %v701_v24 }
  0xba   : > { %v1364_v30 = vpop.eup %1363  ;;  %1070 = vst.msk [vmem:[%s1577_s18] sm:$0xf] %vm1069_vm6, %v1053_v26  ;;  %v816_v33 = vadd.f32 %v1362_v11, %v815_v27  ;;  %v1303_v37 = vmul.f32 -1.442695, %v1580_v29 }
  0xbb   : > { %v1366_v34 = vpop.eup %1365  ;;  %v784_v36 = vadd.f32 1.0, %v1364_v30  ;;  %v1586_v41 = vpop.f32.mrf.mxu3 }
  0xbc   : > { %v820_v38 = vsel %vm819_vm9, %v1362_v11, %v816_v33  ;;  %v828_v39 = vmul.f32 %v1366_v34, %v1568_v13  ;;  %vm833_vm11 = vweird.f32 %v1366_v34 }
  0xbd   : > { %v825_v42 = vsel %vm822_vm10, %v824_v35, %v820_v38  ;;  %1367 = vrcp.f32 %v784_v36  ;;  %v669_v44 = vpop.f32.mrf.mxu2  ;;  %v426_v48 = vpop.f32.mrf.mxu0  ;;  %vm834_vm13 = vmor %vm832_vm12, %vm833_vm11  ;;  %v851_v11 = vand.u32 2147483647, %v784_v36  ;;  %v853_v12 = vand.u32 2147483648, %v784_v36 }
  0xbe   : > { %v1038_v46 = vmul.f32 %v825_v42, %v1553_v45  ;;  %v829_v47 = vsub.f32 1.0, %v828_v39  ;;  %1369 = vpow2.f32 %v1303_v37  ;;  %v702_v51 = vadd.f32 %v669_v44, %v537_v43  ;;  %v539_v52 = vpop.f32.mrf.mxu1 }
  0xbf   : > { %v540_v45 = vadd.f32 %v539_v52, %v426_v48  ;;  %vm847_vm0 = vweird.f32 %v784_v36  ;;  %v854_v20 = vor.u32 1.1754944e-38, %v853_v12  ;;  %vm852_vm2 = vcmp.eq.f32.partialorder %v851_v11, 8.507059e+37 }
  0xc0   : > { %v1054_v53 = vpack.c.bf16 %v1038_v46, %v1038_v46  ;;  %v830_v54 = vmul.f32 %v1366_v34, %v829_v47  ;;  %v1592_v57 = vadd.f32 %v1547_v32, %v702_v51  ;;  %v555_v52 = vadd.f32 %v1570_v17, %v1542_v31 }
  0xc2   : > { %1071 = vst.msk [vmem:[%s1577_s18 + $0x4] sm:$0xf] %vm1069_vm6, %v1054_v53  ;;  %v831_v58 = vadd.f32 %v1366_v34, %v830_v54  ;;  %v1304_v61 = vmul.f32 -1.442695, %v1592_v57 }
  0xc3   : > { %v1368_v59 = vpop.eup %1367  ;;  %v1598_v2 = vpop.f32.mrf.mxu3 }
  0xc4   : > { %v1370_v63 = vpop.eup %1369  ;;  %v835_v0 = vsel %vm834_vm13, %v1366_v34, %v831_v58  ;;  %v843_v1 = vmul.f32 %v1368_v59, %v784_v36  ;;  %1371 = vpow2.f32 %v1304_v61  ;;  %vm848_vm15 = vweird.f32 %v1368_v59 }
  0xc5   : > { %v840_v3 = vsel %vm837_vm14, %v839_v60, %v835_v0  ;;  %v785_v4 = vadd.f32 1.0, %v1370_v63  ;;  %v672_v5 = vpop.f32.mrf.mxu2  ;;  %v428_v10 = vpop.f32.mrf.mxu0  ;;  %vm849_vm1 = vmor %vm847_vm0, %vm848_vm15 }
  0xc6   : > { %v1039_v6 = vmul.f32 %v840_v3, %v1559_v55  ;;  %v844_v8 = vsub.f32 1.0, %v843_v1  ;;  %v703_v9 = vadd.f32 %v672_v5, %v540_v45  ;;  %v541_v13 = vpop.f32.mrf.mxu1 }
  0xc7   : > { %1373 = vrcp.f32 %v785_v4  ;;  %v542_v26 = vadd.f32 %v541_v13, %v428_v10  ;;  %v868_v38 = vand.u32 2147483648, %v785_v4  ;;  %v866_v44 = vand.u32 2147483647, %v785_v4 }
  0xc8   : > { %v1055_v14 = vpack.c.bf16 %v1039_v6, %v1039_v6  ;;  %v845_v15 = vmul.f32 %v1368_v59, %v844_v8  ;;  %v1602_v16 = vadd.f32 %v1547_v32, %v703_v9  ;;  %vm862_vm4 = vweird.f32 %v785_v4 }
  0xc9   : > { %v869_v53 = vor.u32 1.1754944e-38, %v868_v38  ;;  %vm867_vm7 = vcmp.eq.f32.partialorder %v866_v44, 8.507059e+37  ;;  %v557_v8 = vadd.f32 %v1586_v41, %v1550_v40 }
  0xca   : > { %1072 = vst.msk [vmem:[%s1577_s18 + $0x8] sm:$0xf] %vm1069_vm6, %v1055_v14  ;;  %v846_v18 = vadd.f32 %v1368_v59, %v845_v15  ;;  %v1305_v19 = vmul.f32 -1.442695, %v1602_v16  ;;  %v1372_v55 = vpop.eup %1371 }
  0xcb   : > { %v786_v22 = vadd.f32 1.0, %v1372_v55  ;;  %v1607_v23 = vpop.f32.mrf.mxu3 }
  0xcc   : > { %v850_v21 = vsel %vm849_vm1, %v1368_v59, %v846_v18  ;;  %1375 = vpow2.f32 %v1305_v19 }
  0xcd   : > { %v1374_v24 = vpop.eup %1373  ;;  %v855_v25 = vsel %vm852_vm2, %v854_v20, %v850_v21  ;;  %v674_v27 = vpop.f32.mrf.mxu2  ;;  %1377 = vrcp.f32 %v786_v22  ;;  %v881_v0 = vand.u32 2147483647, %v786_v22  ;;  %v883_v1 = vand.u32 2147483648, %v786_v22 }
  0xce   : > { %v1040_v28 = vmul.f32 %v855_v25, %v1565_v7  ;;  %v858_v30 = vmul.f32 %v1374_v24, %v785_v4  ;;  %v704_v33 = vadd.f32 %v674_v27, %v542_v26  ;;  %v431_v34 = vpop.f32.mrf.mxu0  ;;  %v544_v35 = vpop.f32.mrf.mxu1  ;;  %vm863_vm3 = vweird.f32 %v1374_v24 }
  0xcf   : > { %v545_v47 = vadd.f32 %v544_v35, %v431_v34  ;;  %vm864_vm5 = vmor %vm862_vm4, %vm863_vm3  ;;  %vm877_vm9 = vweird.f32 %v786_v22  ;;  %vm882_vm11 = vcmp.eq.f32.partialorder %v881_v0, 8.507059e+37  ;;  %v884_v13 = vor.u32 1.1754944e-38, %v883_v1 }
  0xd0   : > { %v1056_v36 = vpack.c.bf16 %v1040_v28, %v1040_v28  ;;  %v859_v37 = vsub.f32 1.0, %v858_v30  ;;  %v1611_v39 = vadd.f32 %v1547_v32, %v704_v33 }
  0xd2   : > { %v1376_v42 = vpop.eup %1375  ;;  %1073 = vst.msk [vmem:[%s1577_s18 + $0xc] sm:$0xf] %vm1069_vm6, %v1056_v36  ;;  %v860_v43 = vmul.f32 %v1374_v24, %v859_v37  ;;  %v1306_v7 = vmul.f32 -1.442695, %v1611_v39  ;;  %v560_v37 = vadd.f32 %v1598_v2, %v1556_v50 }
  0xd3   : > { %v1615_v46 = vadd.f32 1.0, %v1376_v42  ;;  %v1378_v48 = vpop.eup %1377  ;;  %v687_v51 = vpop.f32.mrf.mxu3 }
  0xd4   : > { %v861_v49 = vadd.f32 %v1374_v24, %v860_v43  ;;  %v873_v54 = vmul.f32 %v1378_v48, %v786_v22  ;;  %v709_v61 = vadd.f32 %v687_v51, %v555_v52  ;;  %vm878_vm8 = vweird.f32 %v1378_v48 }
  0xd5   : > { %1379 = vrcp.f32 %v1615_v46  ;;  %v677_v56 = vpop.f32.mrf.mxu2  ;;  %vm879_vm10 = vmor %vm877_vm9, %vm878_vm8  ;;  %v896_v25 = vand.u32 2147483647, %v1615_v46  ;;  %v898_v26 = vand.u32 2147483648, %v1615_v46  ;;  %vm892_vm13 = vweird.f32 %v1615_v46 }
  0xd6   : > { %v865_v58 = vsel %vm864_vm5, %v1374_v24, %v861_v49  ;;  %1381 = vpow2.f32 %v1306_v7  ;;  %v874_v59 = vsub.f32 1.0, %v873_v54  ;;  %v705_v60 = vadd.f32 %v677_v56, %v545_v47  ;;  %v433_v4 = vpop.f32.mrf.mxu0  ;;  %v546_v5 = vpop.f32.mrf.mxu1 }
  0xd7   : > { %v870_v45 = vsel %vm867_vm7, %v869_v53, %v865_v58  ;;  %v1626_v17 = vadd.f32 %v1547_v32, %v709_v61  ;;  %v547_v15 = vadd.f32 %v546_v5, %v433_v4  ;;  %vm897_vm15 = vcmp.eq.f32.partialorder %v896_v25, 8.507059e+37 }
  0xd8   : > { %v1041_v63 = vmul.f32 %v870_v45, %v1580_v29  ;;  %v875_v3 = vmul.f32 %v1378_v48, %v874_v59  ;;  %v1623_v31 = vadd.f32 %v1547_v32, %v705_v60  ;;  %v899_v38 = vor.u32 1.1754944e-38, %v898_v26 }
  0xd9   : > { %v1311_v11 = vmul.f32 -1.442695, %v1626_v17  ;;  %v1666_v60 = vadd.f32 %v1607_v23, %v1562_v62 }
  0xda   : > { %v1057_v6 = vpack.c.bf16 %v1041_v63, %v1041_v63  ;;  %v876_v10 = vadd.f32 %v1378_v48, %v875_v3  ;;  %v1307_v29 = vmul.f32 -1.442695, %v1623_v31 }
  0xdb   : > { %v1380_v9 = vpop.eup %1379  ;;  %v689_v18 = vpop.f32.mrf.mxu3 }
  0xdc   : > { %v1382_v12 = vpop.eup %1381  ;;  %1074 = vst.msk [vmem:[%s1577_s18 + $0x10] sm:$0xf] %vm1069_vm6, %v1057_v6  ;;  %v888_v14 = vmul.f32 %v1380_v9, %v1615_v46  ;;  %v880_v19 = vsel %vm879_vm10, %v1378_v48, %v876_v10  ;;  %1383 = vpow2.f32 %v1307_v29  ;;  %v710_v41 = vadd.f32 %v689_v18, %v557_v8 }
  0xdd   : > { %v1635_v55 = vadd.f32 1.0, %v1382_v12  ;;  %v679_v40 = vpop.f32.mrf.mxu2  ;;  %v885_v20 = vsel %vm882_vm11, %v884_v13, %v880_v19  ;;  %1385 = vpow2.f32 %v1311_v11  ;;  %vm893_vm12 = vweird.f32 %v1380_v9 }
  0xde   : > { %v889_v21 = vsub.f32 1.0, %v888_v14  ;;  %v706_v22 = vadd.f32 %v679_v40, %v547_v15  ;;  %v1042_v24 = vmul.f32 %v885_v20, %v1592_v57  ;;  %v1645_v30 = vadd.f32 %v1547_v32, %v710_v41  ;;  %vm894_vm14 = vmor %vm892_vm13, %vm893_vm12  ;;  %v436_v42 = vpop.f32.mrf.mxu0  ;;  %v549_v43 = vpop.f32.mrf.mxu1 }
  0xdf   : > { %1387 = vrcp.f32 %v1635_v55  ;;  %v911_v47 = vand.u32 2147483647, %v1635_v55  ;;  %v550_v50 = vadd.f32 %v549_v43, %v436_v42  ;;  %v913_v58 = vand.u32 2147483648, %v1635_v55 }
  0xe0   : > { %v890_v27 = vmul.f32 %v1380_v9, %v889_v21  ;;  %v1642_v28 = vadd.f32 %v1547_v32, %v706_v22  ;;  %v1058_v33 = vpack.c.bf16 %v1042_v24, %v1042_v24  ;;  %v1312_v35 = vmul.f32 -1.442695, %v1645_v30 }
  0xe1   : > { %vm907_vm0 = vweird.f32 %v1635_v55  ;;  %vm1669_vm1 = vcmp.eq.f32.partialorder %v911_v47, 8.507059e+37  ;;  %v914_v62 = vor.u32 1.1754944e-38, %v913_v58 }
  0xe2   : > { %v891_v34 = vadd.f32 %v1380_v9, %v890_v27  ;;  %v1308_v57 = vmul.f32 -1.442695, %v1642_v28  ;;  %v1384_v36 = vpop.eup %1383  ;;  %1075 = vst.msk [vmem:[%s1577_s18 + $0x14] sm:$0xf] %vm1069_vm6, %v1058_v33 }
  0xe3   : > { %v1386_v44 = vpop.eup %1385  ;;  %v1655_v46 = vadd.f32 1.0, %v1384_v36  ;;  %v692_v48 = vpop.f32.mrf.mxu3 }
  0xe4   : > { %v895_v7 = vsel %vm894_vm14, %v1380_v9, %v891_v34  ;;  %1389 = vpow2.f32 %v1308_v57  ;;  %v1657_v52 = vadd.f32 1.0, %v1386_v44  ;;  %v711_v56 = vadd.f32 %v692_v48, %v560_v37 }
  0xe5   : > { %v1388_v49 = vpop.eup %1387  ;;  %v900_v51 = vsel %vm897_vm15, %v899_v38, %v895_v7  ;;  %1391 = vpow2.f32 %v1312_v35  ;;  %v682_v54 = vpop.f32.mrf.mxu2  ;;  %v926_v61 = vand.u32 2147483647, %v1655_v46  ;;  %vm922_vm3 = vweird.f32 %v1655_v46 }
  0xe6   : > { %v1043_v2 = vmul.f32 %v900_v51, %v1602_v16  ;;  %v903_v53 = vmul.f32 %v1388_v49, %v1635_v55  ;;  %1393 = vrcp.f32 %v1655_v46  ;;  %vm908_vm2 = vweird.f32 %v1388_v49  ;;  %v438_v14 = vpop.f32.mrf.mxu0  ;;  %v551_v15 = vpop.f32.mrf.mxu1 }
  0xe7   : > { %1395 = vrcp.f32 %v1657_v52  ;;  %v707_v1 = vadd.f32 %v682_v54, %v550_v50  ;;  %v1677_v3 = vadd.f32 %v1547_v32, %v711_v56  ;;  %v928_v23 = vand.u32 2147483648, %v1655_v46  ;;  %vm909_vm5 = vmor %vm907_vm0, %vm908_vm2 }
  0xe8   : > { %v1059_v45 = vpack.c.bf16 %v1043_v2, %v1043_v2  ;;  %v904_v59 = vsub.f32 1.0, %v903_v53  ;;  %vm982_vm4 = vweird.f32 %v1657_v52  ;;  %v986_v9 = vand.u32 2147483647, %v1657_v52 }
  0xe9   : > { %vm1690_vm7 = vcmp.eq.f32.partialorder %v926_v61, 8.507059e+37  ;;  %v988_v13 = vand.u32 2147483648, %v1657_v52  ;;  %v1698_v40 = vadd.f32 %v1547_v32, %v707_v1  ;;  %v1313_v55 = vmul.f32 -1.442695, %v1677_v3 }
  0xea   : > { %v1390_v63 = vpop.eup %1389  ;;  %1076 = vst.msk [vmem:[%s1577_s18 + $0x18] sm:$0xf] %vm1069_vm6, %v1059_v45  ;;  %v905_v0 = vmul.f32 %v1388_v49, %v904_v59  ;;  %v929_v21 = vor.u32 1.1754944e-38, %v928_v23  ;;  %vm1705_vm8 = vcmp.eq.f32.partialorder %v986_v9, 8.507059e+37  ;;  %v552_v26 = vadd.f32 %v551_v15, %v438_v14 }
  0xeb   : > { %v1392_v4 = vpop.eup %1391  ;;  %v1681_v5 = vadd.f32 1.0, %v1390_v63  ;;  %v989_v34 = vor.u32 1.1754944e-38, %v988_v13  ;;  %v1309_v36 = vmul.f32 -1.442695, %v1698_v40 }
  0xec   : > { %v1394_v6 = vpop.eup %1393  ;;  %v906_v8 = vadd.f32 %v1388_v49, %v905_v0  ;;  %v1685_v10 = vadd.f32 1.0, %v1392_v4 }
  0xed   : > { %v1396_v29 = vpop.eup %1395  ;;  %v918_v11 = vmul.f32 %v1394_v6, %v1655_v46  ;;  %1397 = vrcp.f32 %v1681_v5  ;;  %v684_v27 = vpop.f32.mrf.mxu2  ;;  %vm923_vm9 = vweird.f32 %v1394_v6  ;;  %vm937_vm11 = vweird.f32 %v1681_v5 }
  0xee   : > { %v910_v18 = vsel %vm909_vm5, %v1388_v49, %v906_v8  ;;  %v978_v19 = vmul.f32 %v1396_v29, %v1657_v52  ;;  %1399 = vrcp.f32 %v1685_v10  ;;  %vm983_vm10 = vweird.f32 %v1396_v29  ;;  %vm924_vm12 = vmor %vm922_vm3, %vm923_vm9 }
  0xef   : > { %v915_v41 = vsel %vm1669_vm1, %v914_v62, %v910_v18  ;;  %v919_v20 = vsub.f32 1.0, %v918_v11  ;;  %1401 = vpow2.f32 %v1313_v55  ;;  %v941_v42 = vand.u32 2147483647, %v1681_v5  ;;  %vm984_vm13 = vmor %vm982_vm4, %vm983_vm10 }
  0xf0   : > { %v1044_v22 = vmul.f32 %v915_v41, %v1611_v39  ;;  %v979_v24 = vsub.f32 1.0, %v978_v19  ;;  %v694_v39 = vpop.f32.mrf.mxu3  ;;  %v943_v43 = vand.u32 2147483648, %v1681_v5  ;;  %v708_v44 = vadd.f32 %v684_v27, %v552_v26 }
  0xf1   : > { %v920_v33 = vmul.f32 %v1394_v6, %v919_v20  ;;  %v1001_v48 = vand.u32 2147483647, %v1685_v10  ;;  %1403 = vpow2.f32 %v1309_v36  ;;  %v1003_v50 = vand.u32 2147483648, %v1685_v10 }
  0xf2   : > { %v1060_v57 = vpack.c.bf16 %v1044_v22, %v1044_v22  ;;  %v980_v35 = vmul.f32 %v1396_v29, %v979_v24  ;;  %v1725_v2 = vadd.f32 %v1547_v32, %v708_v44  ;;  %v712_v46 = vadd.f32 %v694_v39, %v1666_v60 }
  0xf3   : > { %v1398_v37 = vpop.eup %1397  ;;  %v921_v38 = vadd.f32 %v1394_v6, %v920_v33  ;;  %vm942_vm1 = vcmp.eq.f32.partialorder %v941_v42, 8.507059e+37  ;;  %vm997_vm2 = vweird.f32 %v1685_v10  ;;  %v1004_v12 = vor.u32 1.1754944e-38, %v1003_v50 }
  0xf4   : > { %1077 = vst.msk [vmem:[%s1577_s18 + $0x1c] sm:$0xf] %vm1069_vm6, %v1060_v57  ;;  %v981_v7 = vadd.f32 %v1396_v29, %v980_v35  ;;  %v933_v47 = vmul.f32 %v1398_v37, %v1681_v5  ;;  %v1400_v49 = vpop.eup %1399  ;;  %vm938_vm14 = vweird.f32 %v1398_v37  ;;  %v1310_v59 = vmul.f32 -1.442695, %v1725_v2 }
  0xf5   : > { %v925_v51 = vsel %vm924_vm12, %v1394_v6, %v921_v38  ;;  %v993_v58 = vmul.f32 %v1400_v49, %v1685_v10  ;;  %v1402_v16 = vpop.eup %1401  ;;  %v1737_v0 = vadd.f32 %v1547_v32, %v712_v46  ;;  %vm998_vm15 = vweird.f32 %v1400_v49  ;;  %vm939_vm0 = vmor %vm937_vm11, %vm938_vm14 }
  0xf6   : > { %v930_v53 = vsel %vm1690_vm7, %v929_v21, %v925_v51  ;;  %v985_v54 = vsel %vm984_vm13, %v1396_v29, %v981_v7  ;;  %v934_v56 = vsub.f32 1.0, %v933_v47  ;;  %v795_v4 = vadd.f32 1.0, %v1402_v16  ;;  %vm999_vm3 = vmor %vm997_vm2, %vm998_vm15 }
  0xf7   : > { %v1045_v45 = vmul.f32 %v930_v53, %v1623_v31  ;;  %v990_v52 = vsel %vm1705_vm8, %v989_v34, %v985_v54  ;;  %v994_v63 = vsub.f32 1.0, %v993_v58  ;;  %1405 = vpow2.f32 %v1310_v59  ;;  %v1404_v31 = vpop.eup %1403 }
  0xf8   : > { %v1049_v61 = vmul.f32 %v990_v52, %v1626_v17  ;;  %v935_v60 = vmul.f32 %v1398_v37, %v934_v56  ;;  %v1314_v8 = vmul.f32 -1.442695, %v1737_v0  ;;  %v944_v32 = vor.u32 1.1754944e-38, %v943_v43 }
  0xf9   : > { %v1061_v1 = vpack.c.bf16 %v1045_v45, %v1045_v45  ;;  %v995_v6 = vmul.f32 %v1400_v49, %v994_v63  ;;  %v791_v17 = vadd.f32 1.0, %v1404_v31  ;;  %1407 = vrcp.f32 %v795_v4 }
  0xfa   : > { %v1065_v62 = vpack.c.bf16 %v1049_v61, %v1049_v61  ;;  %v936_v23 = vadd.f32 %v1398_v37, %v935_v60  ;;  %1409 = vpow2.f32 %v1314_v8  ;;  %vm1002_vm4 = vcmp.eq.f32.partialorder %v1001_v48, 8.507059e+37 }
  0xfb   : > { %1078 = vst.msk [vmem:[%s1577_s18 + $0x20] sm:$0xf] %vm1069_vm6, %v1061_v1  ;;  %v996_v29 = vadd.f32 %v1400_v49, %v995_v6  ;;  %1411 = vrcp.f32 %v791_v17  ;;  %v1018_v26 = vand.u32 2147483648, %v795_v4  ;;  %v958_v34 = vand.u32 2147483648, %v791_v17 }
  0xfc   : > { %1082 = vst.msk [vmem:[%s1577_s18 + $0x30] sm:$0xf] %vm1069_vm6, %v1065_v62  ;;  %v940_v9 = vsel %vm939_vm0, %v1398_v37, %v936_v23  ;;  %vm1012_vm7 = vweird.f32 %v795_v4  ;;  %v956_v36 = vand.u32 2147483647, %v791_v17  ;;  %vm952_vm10 = vweird.f32 %v791_v17 }
  0xfd   : > { %v945_v11 = vsel %vm942_vm1, %v944_v32, %v940_v9  ;;  %v1000_v13 = vsel %vm999_vm3, %v1400_v49, %v996_v29  ;;  %v1406_v14 = vpop.eup %1405  ;;  %v1019_v37 = vor.u32 1.1754944e-38, %v1018_v26  ;;  %v959_v7 = vor.u32 1.1754944e-38, %v958_v34 }
  0xfe   : > { %v1046_v5 = vmul.f32 %v945_v11, %v1642_v28  ;;  %v1005_v15 = vsel %vm1002_vm4, %v1004_v12, %v1000_v13  ;;  %v792_v55 = vadd.f32 1.0, %v1406_v14  ;;  %vm957_vm13 = vcmp.eq.f32.partialorder %v956_v36, 8.507059e+37 }
  0xff   : > { %v1050_v19 = vmul.f32 %v1005_v15, %v1645_v30  ;;  %v1408_v41 = vpop.eup %1407  ;;  %v1016_v30 = vand.u32 2147483647, %v795_v4 }
 0x100   : > { %v1062_v18 = vpack.c.bf16 %v1046_v5, %v1046_v5  ;;  %v1410_v10 = vpop.eup %1409  ;;  %v1008_v21 = vmul.f32 %v1408_v41, %v795_v4  ;;  %1413 = vrcp.f32 %v792_v55  ;;  %vm1013_vm5 = vweird.f32 %v1408_v41 }
 0x101   : > { %v1066_v20 = vpack.c.bf16 %v1050_v19, %v1050_v19  ;;  %v1412_v22 = vpop.eup %1411  ;;  %v796_v24 = vadd.f32 1.0, %v1410_v10  ;;  %vm1014_vm9 = vmor %vm1012_vm7, %vm1013_vm5  ;;  %vm1017_vm11 = vcmp.eq.f32.partialorder %v1016_v30, 8.507059e+37  ;;  %v973_v49 = vand.u32 2147483648, %v792_v55 }
 0x102   : > { %1079 = vst.msk [vmem:[%s1577_s18 + $0x24] sm:$0xf] %vm1069_vm6, %v1062_v18  ;;  %v948_v28 = vmul.f32 %v1412_v22, %v791_v17  ;;  %v1009_v25 = vsub.f32 1.0, %v1008_v21  ;;  %vm953_vm8 = vweird.f32 %v1412_v22  ;;  %v971_v56 = vand.u32 2147483647, %v792_v55 }
 0x103   : > { %1083 = vst.msk [vmem:[%s1577_s18 + $0x34] sm:$0xf] %vm1069_vm6, %v1066_v20  ;;  %1415 = vrcp.f32 %v796_v24  ;;  %vm954_vm12 = vmor %vm952_vm10, %vm953_vm8  ;;  %vm967_vm15 = vweird.f32 %v792_v55  ;;  %v974_v16 = vor.u32 1.1754944e-38, %v973_v49  ;;  %v1033_v61 = vand.u32 2147483648, %v796_v24 }
 0x104   : > { %v949_v27 = vsub.f32 1.0, %v948_v28  ;;  %v1010_v33 = vmul.f32 %v1408_v41, %v1009_v25  ;;  %vm972_vm2 = vcmp.eq.f32.partialorder %v971_v56, 8.507059e+37  ;;  %vm1027_vm3 = vweird.f32 %v796_v24 }
 0x105   : > { %v1034_v62 = vor.u32 1.1754944e-38, %v1033_v61 }
 0x106   : > { %v1414_v57 = vpop.eup %1413  ;;  %v950_v35 = vmul.f32 %v1412_v22, %v949_v27  ;;  %v1011_v39 = vadd.f32 %v1408_v41, %v1010_v33 }
 0x107   : > { %v963_v38 = vmul.f32 %v1414_v57, %v792_v55  ;;  %vm968_vm14 = vweird.f32 %v1414_v57 }
 0x108   : > { %v951_v42 = vadd.f32 %v1412_v22, %v950_v35  ;;  %v1015_v43 = vsel %vm1014_vm9, %v1408_v41, %v1011_v39  ;;  %vm969_vm0 = vmor %vm967_vm15, %vm968_vm14 }
 0x109   : > { %v1416_v44 = vpop.eup %1415  ;;  %v1020_v47 = vsel %vm1017_vm11, %v1019_v37, %v1015_v43  ;;  %v964_v48 = vsub.f32 1.0, %v963_v38 }
 0x10a   : > { %v955_v51 = vsel %vm954_vm12, %v1412_v22, %v951_v42  ;;  %v1051_v50 = vmul.f32 %v1020_v47, %v1677_v3  ;;  %v1023_v46 = vmul.f32 %v1416_v44, %v796_v24  ;;  %vm1028_vm1 = vweird.f32 %v1416_v44 }
 0x10b   : > { %v960_v53 = vsel %vm957_vm13, %v959_v7, %v955_v51  ;;  %v965_v54 = vmul.f32 %v1414_v57, %v964_v48  ;;  %v1031_v3 = vand.u32 2147483647, %v796_v24  ;;  %vm1029_vm4 = vmor %vm1027_vm3, %vm1028_vm1 }
 0x10c   : > { %v1047_v58 = vmul.f32 %v960_v53, %v1698_v40  ;;  %v1067_v45 = vpack.c.bf16 %v1051_v50, %v1051_v50  ;;  %v1024_v52 = vsub.f32 1.0, %v1023_v46 }
 0x10d   : > { %v966_v59 = vadd.f32 %v1414_v57, %v965_v54  ;;  %vm1032_vm5 = vcmp.eq.f32.partialorder %v1031_v3, 8.507059e+37 }
 0x10e   : > { %v1063_v60 = vpack.c.bf16 %v1047_v58, %v1047_v58  ;;  %1084 = vst.msk [vmem:[%s1577_s18 + $0x38] sm:$0xf] %vm1069_vm6, %v1067_v45  ;;  %v1025_v63 = vmul.f32 %v1416_v44, %v1024_v52 }
 0x10f   : > { %v970_v1 = vsel %vm969_vm0, %v1414_v57, %v966_v59 }
 0x110   : > { %1080 = vst.msk [vmem:[%s1577_s18 + $0x28] sm:$0xf] %vm1069_vm6, %v1063_v60  ;;  %v975_v40 = vsel %vm972_vm2, %v974_v16, %v970_v1  ;;  %v1026_v4 = vadd.f32 %v1416_v44, %v1025_v63 }
 0x111   : > { %v1048_v31 = vmul.f32 %v975_v40, %v1725_v2 }
 0x112   : > { %v1030_v23 = vsel %vm1029_vm4, %v1416_v44, %v1026_v4 }
 0x113   : > { %v1064_v6 = vpack.c.bf16 %v1048_v31, %v1048_v31  ;;  %v1035_v8 = vsel %vm1032_vm5, %v1034_v62, %v1030_v23 }
 0x114   : > { %v1052_v32 = vmul.f32 %v1035_v8, %v1737_v0 }
 0x115   : > { %1081 = vst.msk [vmem:[%s1577_s18 + $0x2c] sm:$0xf] %vm1069_vm6, %v1064_v6 }
 0x116   : > { %v1068_v17 = vpack.c.bf16 %v1052_v32, %v1052_v32 }
 0x118   : > { %1085 = vst.msk [vmem:[%s1577_s18 + $0x3c] sm:$0xf] %vm1069_vm6, %v1068_v17 }
 0x119 PF: > { %s16_s21 = sadd.s32 1, %s1423_s21  }
 0x11a   : > { %p13_p4 = scmp.ge.s32.totalorder %s16_s21, 6  }
 0x11c   :  { %15 = sbr.rel (!%p13_p4) target bundleno = 1 (0x1), region = 80 }

// kernel: c3_forward.6
= control target key start
LH: loop header
LB: loop body
LE: loop exit
PB: predicated region body
PF: predicated region fallthrough
CT: control target
= control target key end

     0   :  { %s2697_s15 = smov 0   ;;  %s2699_s16 = smov 0   ;;  %s3712_s0 = inlined_call_operand.vmem [shape: bf16[2,16,16,4], index: 0, kind: input, shape index: {}]   ;;  %s3713_s1 = inlined_call_operand.vmem [shape: bf16[9,4,4], index: 1, kind: input, shape index: {}]   ;;  %s3714_s2 = inlined_call_operand.vmem [shape: f32[1,4], index: 2, kind: input, shape index: {}]   ;;  %s3715_s3 = inlined_call_operand.vmem [shape: bf16[2,256,4], index: 3, kind: input, shape index: {}]   ;;  %s3716_s4 = inlined_call_operand.vmem [shape: bf16[2,256,4], index: 4, kind: output, shape index: {}]  }
   0x1   :  { %s2701_s17 = smov 0   ;;  %s2703_s18 = smov 0  }
   0x2   :  { %s2705_s19 = smov 0  }
   0x3 LB: > { %s23_s20 = sadd.s32 1, %s2661_s17  ;;  %s26_s21 = sadd.s32 1, %s2665_s18  ;;  %s2669_s19 = sphi %s2705_s19, %s14_s19   ;;  %s2665_s18 = sphi %s2703_s18, %s3732_s18   ;;  %s2661_s17 = sphi %s2701_s17, %s3731_s17   ;;  %s2657_s16 = sphi %s2699_s16, %s3730_s16   ;;  %s2653_s15 = sphi %s2697_s15, %s3729_s15  }
   0x4   : > { %p24_p0 = scmp.ge.s32.totalorder %s23_s20, 2  ;;  %p2299_p1 = scmp.ge.s32.totalorder %s2669_s19, 1 }
   0x5   : > { %p193_p2 = scmp.lt.s32.totalorder %s2669_s19, 5 }
   0x6   : > { %s3734_s20 = smov (%p24_p0, %s23_s20), 0  ;;  %s3736_s21 = smov (!%p24_p0, %s26_s21), %s2665_s18 }
   0x7   : > { %p194_p3 = pnand %p2299_p1, %p193_p2  ;;  %p28_p4 = scmp.ge.s32.totalorder %s3736_s21, 2 }
   0x8   : > { %s2308_s22 = sshll.u32 (!%p194_p3), %s2653_s15, 3  ;;  %p232_p5 = scmp.lt.s32.totalorder (!%p194_p3), %s2657_s16, 1 }
   0x9   : > { %s3738_s21 = smov (%p28_p4, %s3736_s21), 0  ;;  %197 = sbr.rel (%p194_p3) target bundleno = 579 (0x243), region = 36 }
   0xa   : > { %s2302_s23 = sshll.u32 (!%p194_p3), %s2653_s15, 4  ;;  %s2470_s25 = sshll.u32 (!%p194_p3), %s2653_s15, 6 }
   0xb   : > { %p240_p6 = scmp.lt.s32.totalorder (!%p194_p3), %s2302_s23, 31  ;;  %p2311_p7 = scmp.le.s32.totalorder (!%p194_p3), %s2653_s15, 0 }
   0xe   : > { %vm259_vm0 = vcmask 27648   ;;  %v2671_v0 = vmov 0   ;;  %s3740_s16 = smov (!%p232_p5, %s2657_s16), 1  ;;  %s3742_s23 = smov (!%p240_p6, %s2302_s23), 31  ;;  %vm262_vm1 = vcmask 24576  }
   0xf   : > { %264 = vst.msk [vmem:[#allocation2 + $0xc] sm:$0xf] %vm259_vm0, %v2671_v0  ;;  %s2468_s24 = sshll.u32 %s3740_s16, 7  ;;  %s2303_s29 = sshll.u32 %s3740_s16, 5  ;;  %vm475_vm2 = vsmask.f32 7938 }
  0x10   : > { %260 = vst.msk [vmem:[#allocation2] sm:$0xf] %vm259_vm0, %v2671_v0  ;;  %s2745_s28 = scalar_lea.vmem %s3712_s0, %s2468_s24  ;;  %s243_s30 = sadd.s32 %s2303_s29, %s3742_s23  ;;  %vm310_vm3 = vsmask.f32 256  ;;  %vm311_vm4 = vsmask.f32 4368  ;;  %vm2820_vm5 = vmand %vm259_vm0, %vm475_vm2 }
  0x11   : > { %261 = vst.msk [vmem:[#allocation2 + $0x4] sm:$0xf] %vm259_vm0, %v2671_v0  ;;  %s2754_s5 = scalar_lea.vmem %s2745_s28, %s2470_s25  ;;  %s2304_s6 = sshll.u32 %s243_s30, 2  ;;  %vm2829_vm6 = vmor %vm310_vm3, %vm311_vm4 }
  0x12   : > { %265 = vst.msk [vmem:[#allocation2 + $0x10] sm:$0xf] %vm259_vm0, %v2671_v0  ;;  %s2763_s9 = scalar_lea.vmem %s3715_s3, %s2304_s6  ;;  %s2768_s12 = scalar_lea.vmem %s3716_s4, %s2304_s6  ;;  %v294_v1 = vld [vmem:[%s2754_s5] sm:$0xf]  ;;  %v295_v2 = vld [vmem:[%s2754_s5 + $0x4] sm:$0xf]  ;;  %vm2841_vm7 = vmand %vm262_vm1, %vm310_vm3 }
  0x13   : > { %267 = vst.msk [vmem:[#allocation2 + $0x18] sm:$0xf] %vm259_vm0, %v2671_v0  ;;  %v296_v3 = vld [vmem:[%s2754_s5 + $0x8] sm:$0xf]  ;;  %v314_v4 = vshrl.u32 %v294_v1, 16  ;;  %v322_v6 = vshrl.u32 %v295_v2, 16 }
  0x14   : > { %268 = vst.msk [vmem:[#allocation2 + $0x1c] sm:$0xf] %vm259_vm0, %v2671_v0  ;;  %v297_v5 = vld [vmem:[%s2754_s5 + $0xc] sm:$0xf]  ;;  %v298_v7 = vld [vmem:[%s2754_s5 + $0x10] sm:$0xf] }
  0x15   : > { %270 = vst.msk [vmem:[#allocation2 + $0x24] sm:$0xf] %vm259_vm0, %v2671_v0  ;;  %v331_v8 = vshrl.u32 %v296_v3, 16  ;;  %v339_v9 = vshrl.u32 %v297_v5, 16  ;;  %v316_v10 = vrot.slane %v314_v4, 7  ;;  %v348_v11 = vshrl.u32 %v298_v7, 16 }
  0x16   : > { %271 = vst.msk [vmem:[#allocation2 + $0x28] sm:$0xf] %vm259_vm0, %v2671_v0  ;;  %v317_v12 = vshll.u32 %v294_v1, 16  ;;  %v324_v13 = vrot.slane %v322_v6, 7  ;;  %v325_v14 = vshll.u32 %v295_v2, 16  ;;  %v334_v15 = vshll.u32 %v296_v3, 16 }
  0x17   : > { %273 = vst.msk [vmem:[#allocation2 + $0x30] sm:$0xf] %vm259_vm0, %v2671_v0  ;;  %v333_v16 = vrot.slane %v331_v8, 7  ;;  %v2795_v17 = vrot.slane %v339_v9, 7  ;;  %v299_v18 = vld [vmem:[%s2754_s5 + $0x14] sm:$0xf] }
  0x18   : > { %274 = vst.msk [vmem:[#allocation2 + $0x34] sm:$0xf] %vm259_vm0, %v2671_v0  ;;  %v300_v19 = vld [vmem:[%s2754_s5 + $0x18] sm:$0xf]  ;;  %v2802_v20 = vld [vmem:[%s2754_s5 + $0x1c] sm:$0xf]  ;;  %v319_v24 = vor.u32 %v317_v12, %v316_v10  ;;  %v327_v29 = vor.u32 %v325_v14, %v324_v13 }
  0x19   : > { %276 = vst.msk [vmem:[#allocation2 + $0x3c] sm:$0xf] %vm259_vm0, %v2671_v0  ;;  %v320_v21 = vrot.slane %v316_v10, 4  ;;  %v342_v22 = vshll.u32 %v297_v5, 16  ;;  %v2806_v23 = vrot.slane %v348_v11, 7  ;;  %v351_v26 = vshll.u32 %v298_v7, 16 }
  0x1a   : > { %277 = vst.msk [vmem:[#allocation2 + $0x40] sm:$0xf] %vm259_vm0, %v2671_v0  ;;  %v477_v25 = vld [vmem:[#allocation2 + $0xc] sm:$0xf]  ;;  %v356_v27 = vshrl.u32 %v299_v18, 16  ;;  %v329_v30 = vrot.slane %v324_v13, 4  ;;  %v336_v35 = vor.u32 %v334_v15, %v333_v16 }
  0x1b   : > { %279 = vst.msk [vmem:[#allocation2 + $0x48] sm:$0xf] %vm259_vm0, %v2671_v0  ;;  %v2811_v28 = vld [vmem:[%s2754_s5 + $0x20] sm:$0xf]  ;;  %v486_v31 = vld [vmem:[#allocation2 + $0x18] sm:$0xf]  ;;  %v344_v40 = vor.u32 %v342_v22, %v2795_v17  ;;  %v353_v46 = vor.u32 %v351_v26, %v2806_v23  ;;  %v478_v50 = vsel %vm2820_vm5, %v319_v24, %v477_v25  ;;  %v328_v54 = vsel %vm2829_vm6, %v320_v21, %v327_v29 }
  0x1c   : > { %280 = vst.msk [vmem:[#allocation2 + $0x4c] sm:$0xf] %vm259_vm0, %v2671_v0  ;;  %v365_v32 = vshrl.u32 %v300_v19, 16  ;;  %v373_v33 = vshrl.u32 %v2802_v20, 16  ;;  %v337_v36 = vrot.slane %v333_v16, 4  ;;  %v346_v37 = vrot.slane %v2795_v17, 4 }
  0x1d   : > { %282 = vst.msk [vmem:[#allocation2 + $0x54] sm:$0xf] %vm259_vm0, %v2671_v0  ;;  %v359_v38 = vshll.u32 %v299_v18, 16  ;;  %v493_v41 = vld [vmem:[#allocation2 + $0x24] sm:$0xf]  ;;  %v354_v42 = vrot.slane %v2806_v23, 4  ;;  %v487_v55 = vsel %vm2820_vm5, %v336_v35, %v486_v31 }
  0x1e   : > { %283 = vst.msk [vmem:[#allocation2 + $0x58] sm:$0xf] %vm259_vm0, %v2671_v0  ;;  %v382_v43 = vshrl.u32 %v2811_v28, 16  ;;  %v303_v44 = vld [vmem:[%s2754_s5 + $0x24] sm:$0xf]  ;;  %v358_v47 = vrot.slane %v356_v27, 7  ;;  %v345_v60 = vsel %vm2829_vm6, %v337_v36, %v344_v40  ;;  %v494_v1 = vsel %vm2820_vm5, %v353_v46, %v493_v41 }
  0x1f   : > { %285 = vst.msk [vmem:[#allocation2 + $0x60] sm:$0xf] %vm259_vm0, %v2671_v0  ;;  %v368_v48 = vshll.u32 %v300_v19, 16  ;;  %v2847_v49 = vld [vmem:[%s2754_s5 + $0x28] sm:$0xf]  ;;  %v367_v52 = vrot.slane %v365_v32, 7 }
  0x20   : > { %286 = vst.msk [vmem:[#allocation2 + $0x64] sm:$0xf] %vm259_vm0, %v2671_v0  ;;  %v375_v53 = vrot.slane %v373_v33, 7  ;;  %v376_v56 = vshll.u32 %v2802_v20, 16  ;;  %v390_v57 = vshrl.u32 %v303_v44, 16  ;;  %v384_v62 = vrot.slane %v382_v43, 7 }
  0x21   : > { %288 = vst.msk [vmem:[#allocation2 + $0x6c] sm:$0xf] %vm259_vm0, %v2671_v0  ;;  %v305_v58 = vld [vmem:[%s2754_s5 + $0x2c] sm:$0xf]  ;;  %v399_v63 = vshrl.u32 %v2847_v49, 16  ;;  %v361_v2 = vor.u32 %v359_v38, %v358_v47  ;;  %v363_v3 = vrot.slane %v358_v47, 4 }
  0x22   : > { %289 = vst.msk [vmem:[#allocation2 + $0x70] sm:$0xf] %vm259_vm0, %v2671_v0  ;;  %v385_v4 = vshll.u32 %v2811_v28, 16  ;;  %v500_v5 = vld [vmem:[#allocation2 + $0x30] sm:$0xf]  ;;  %v371_v6 = vrot.slane %v367_v52, 4  ;;  %v378_v11 = vor.u32 %v376_v56, %v375_v53 }
  0x23   : > { %266 = vst.msk [vmem:[#allocation2 + $0x14] sm:$0x1] %vm262_vm1, %v2671_v0  ;;  %v380_v7 = vrot.slane %v375_v53, 4  ;;  %v407_v8 = vshrl.u32 %v305_v58, 16  ;;  %v392_v12 = vrot.slane %v390_v57, 7  ;;  %v393_v13 = vshll.u32 %v303_v44, 16 }
  0x24   : > { %263 = vst.msk [vmem:[#allocation2 + $0x8] sm:$0x1] %vm262_vm1, %v2671_v0  ;;  %v388_v14 = vrot.slane %v384_v62, 4  ;;  %v401_v15 = vrot.slane %v399_v63, 7  ;;  %v402_v16 = vshll.u32 %v2847_v49, 16  ;;  %v410_v17 = vshll.u32 %v305_v58, 16 }
  0x25   : > { %269 = vst.msk [vmem:[#allocation2 + $0x20] sm:$0x1] %vm262_vm1, %v2671_v0  ;;  %v362_v18 = vsel %vm2829_vm6, %v354_v42, %v361_v2  ;;  %v507_v20 = vld [vmem:[#allocation2 + $0x3c] sm:$0xf]  ;;  %v306_v21 = vld [vmem:[%s2754_s5 + $0x30] sm:$0xf]  ;;  %v387_v23 = vor.u32 %v385_v4, %v384_v62  ;;  %v395_v28 = vor.u32 %v393_v13, %v392_v12  ;;  %v379_v32 = vsel %vm2829_vm6, %v371_v6, %v378_v11 }
  0x26   : > { %272 = vst.msk [vmem:[#allocation2 + $0x2c] sm:$0x1] %vm262_vm1, %v2671_v0  ;;  %v409_v24 = vrot.slane %v407_v8, 7  ;;  %v416_v25 = vshrl.u32 %v306_v21, 16  ;;  %v307_v26 = vld [vmem:[%s2754_s5 + $0x34] sm:$0xf]  ;;  %v404_v38 = vor.u32 %v402_v16, %v401_v15 }
  0x27   : > { %275 = vst.msk [vmem:[#allocation2 + $0x38] sm:$0x1] %vm262_vm1, %v2671_v0  ;;  %v397_v29 = vrot.slane %v392_v12, 4  ;;  %v424_v31 = vshrl.u32 %v307_v26, 16  ;;  %v419_v36 = vshll.u32 %v306_v21, 16  ;;  %v427_v41 = vshll.u32 %v307_v26, 16 }
  0x28   : > { %278 = vst.msk [vmem:[#allocation2 + $0x44] sm:$0x1] %vm262_vm1, %v2671_v0  ;;  %v418_v35 = vrot.slane %v416_v25, 7  ;;  %v508_v43 = vsel %vm2820_vm5, %v387_v23, %v507_v20  ;;  %v514_v44 = vld [vmem:[#allocation2 + $0x48] sm:$0xf]  ;;  %v405_v46 = vrot.slane %v401_v15, 4  ;;  %v412_v47 = vor.u32 %v410_v17, %v409_v24 }
  0x29   : > { %281 = vst.msk [vmem:[#allocation2 + $0x50] sm:$0x1] %vm262_vm1, %v2671_v0  ;;  %v426_v40 = vrot.slane %v424_v31, 7  ;;  %v396_v49 = vsel %vm2829_vm6, %v388_v14, %v395_v28  ;;  %v515_v58 = vsel %vm2820_vm5, %v404_v38, %v514_v44  ;;  %s2312_s13 = sadd.s32 (!%p2311_p7), 4294967295, %s2308_s22 }
  0x2a   : > { %284 = vst.msk [vmem:[#allocation2 + $0x5c] sm:$0x1] %vm262_vm1, %v2671_v0  ;;  %v483_v51 = vld [vmem:[#allocation2 + $0x14] sm:$0x1]  ;;  %v413_v62 = vsel %vm2829_vm6, %v405_v46, %v412_v47  ;;  %s2471_s14 = sshll.u32 (!%p2311_p7), %s2312_s13, 3 }
  0x2b   : > { %287 = vst.msk [vmem:[#allocation2 + $0x68] sm:$0x1] %vm262_vm1, %v2671_v0  ;;  %v484_v59 = vsel %vm2841_vm7, %v329_v30, %v483_v51  ;;  %v431_v63 = vrot.slane %v426_v40, 4  ;;  %s542_s16 = scalar_lea.vmem (!%p2311_p7), %s2745_s28, %s2471_s14 }
  0x2c   : > { %290 = vst.msk [vmem:[#allocation2 + $0x74] sm:$0x1] %vm262_vm1, %v2671_v0  ;;  %v490_v61 = vld [vmem:[#allocation2 + $0x20] sm:$0x1]  ;;  %v370_v0 = vor.u32 %v368_v48, %v367_v52  ;;  %v414_v48 = vrot.slane %v409_v24, 4 }
  0x2d   : > { %479 = vst [vmem:[#allocation2 + $0xc] sm:$0xf] %v478_v50  ;;  %v491_v9 = vsel %vm2841_vm7, %v346_v37, %v490_v61  ;;  %v497_v10 = vld [vmem:[#allocation2 + $0x2c] sm:$0x1]  ;;  %v308_v37 = vld [vmem:[%s2754_s5 + $0x38] sm:$0xf]  ;;  %v429_v61 = vor.u32 %v427_v41, %v426_v40 }
  0x2e   : > { %480 = vst.msk [vmem:[#allocation2 + $0x10] sm:$0xf] %vm259_vm0, %v328_v54  ;;  %v504_v19 = vld [vmem:[#allocation2 + $0x38] sm:$0x1]  ;;  %v498_v22 = vsel %vm2841_vm7, %v363_v3, %v497_v10  ;;  %v501_v27 = vsel %vm2820_vm5, %v370_v0, %v500_v5  ;;  %v433_v42 = vshrl.u32 %v308_v37, 16  ;;  %v436_v51 = vshll.u32 %v308_v37, 16 }
  0x2f   : > { %485 = vst [vmem:[#allocation2 + $0x14] sm:$0x1] %v484_v59  ;;  %v511_v30 = vld [vmem:[#allocation2 + $0x44] sm:$0x1]  ;;  %v505_v33 = vsel %vm2841_vm7, %v380_v7, %v504_v19  ;;  %v309_v52 = vld [vmem:[%s2754_s5 + $0x3c] sm:$0xf] }
  0x30   : > { %488 = vst [vmem:[#allocation2 + $0x18] sm:$0xf] %v487_v55  ;;  %v435_v50 = vrot.slane %v433_v42, 7  ;;  %v512_v53 = vsel %vm2841_vm7, %v397_v29, %v511_v30  ;;  %v518_v54 = vld [vmem:[#allocation2 + $0x50] sm:$0x1]  ;;  %v421_v55 = vor.u32 %v419_v36, %v418_v35  ;;  %v441_v56 = vshrl.u32 %v309_v52, 16 }
  0x31   : > { %489 = vst.msk [vmem:[#allocation2 + $0x1c] sm:$0xf] %vm259_vm0, %v345_v60  ;;  %v444_v57 = vshll.u32 %v309_v52, 16  ;;  %v521_v59 = vld [vmem:[#allocation2 + $0x54] sm:$0xf]  ;;  %v422_v60 = vrot.slane %v418_v35, 4  ;;  %v519_v2 = vsel %vm2841_vm7, %v414_v48, %v518_v54 }
  0x32   : > { %492 = vst [vmem:[#allocation2 + $0x20] sm:$0x1] %v491_v9  ;;  %v525_v3 = vld [vmem:[#allocation2 + $0x5c] sm:$0x1]  ;;  %v438_v4 = vor.u32 %v436_v51, %v435_v50  ;;  %v522_v0 = vsel %vm2820_vm5, %v421_v55, %v521_v59  ;;  %v528_v5 = vld [vmem:[#allocation2 + $0x60] sm:$0xf] }
  0x33   : > { %495 = vst [vmem:[#allocation2 + $0x24] sm:$0xf] %v494_v1  ;;  %v443_v1 = vrot.slane %v441_v56, 7  ;;  %v439_v6 = vrot.slane %v435_v50, 4  ;;  %v430_v8 = vsel %vm2829_vm6, %v422_v60, %v429_v61  ;;  %v526_v10 = vsel %vm2841_vm7, %v431_v63, %v525_v3  ;;  %v532_v11 = vld [vmem:[#allocation2 + $0x68] sm:$0x1] }
  0x34   : > { %496 = vst.msk [vmem:[#allocation2 + $0x28] sm:$0xf] %vm259_vm0, %v362_v18  ;;  %v529_v12 = vsel %vm2820_vm5, %v438_v4, %v528_v5 }
  0x35   : > { %499 = vst [vmem:[#allocation2 + $0x2c] sm:$0x1] %v498_v22  ;;  %v446_v7 = vor.u32 %v444_v57, %v443_v1  ;;  %v448_v9 = vrot.slane %v443_v1, 4 }
  0x36   : > { %502 = vst [vmem:[#allocation2 + $0x30] sm:$0xf] %v501_v27 }
  0x37   : > { %503 = vst.msk [vmem:[#allocation2 + $0x34] sm:$0xf] %vm259_vm0, %v379_v32  ;;  %v447_v13 = vsel %vm2829_vm6, %v439_v6, %v446_v7  ;;  %v533_v14 = vsel %vm2841_vm7, %v448_v9, %v532_v11 }
  0x38   : > { %506 = vst [vmem:[#allocation2 + $0x38] sm:$0x1] %v505_v33 }
  0x39   : > { %509 = vst [vmem:[#allocation2 + $0x3c] sm:$0xf] %v508_v43 }
  0x3a   : > { %510 = vst.msk [vmem:[#allocation2 + $0x40] sm:$0xf] %vm259_vm0, %v396_v49 }
  0x3b   : > { %513 = vst [vmem:[#allocation2 + $0x44] sm:$0x1] %v512_v53 }
  0x3c   : > { %516 = vst [vmem:[#allocation2 + $0x48] sm:$0xf] %v515_v58 }
  0x3d   : > { %517 = vst.msk [vmem:[#allocation2 + $0x4c] sm:$0xf] %vm259_vm0, %v413_v62 }
  0x3e   : > { %520 = vst [vmem:[#allocation2 + $0x50] sm:$0x1] %v519_v2 }
  0x3f   : > { %523 = vst [vmem:[#allocation2 + $0x54] sm:$0xf] %v522_v0 }
  0x40   : > { %524 = vst.msk [vmem:[#allocation2 + $0x58] sm:$0xf] %vm259_vm0, %v430_v8  ;;  %538 = sbr.rel (%p2311_p7) target bundleno = 80 (0x50), region = 40 }
  0x41   : > { %527 = vst [vmem:[#allocation2 + $0x5c] sm:$0x1] %v526_v10 }
  0x42   : > { %530 = vst [vmem:[#allocation2 + $0x60] sm:$0xf] %v529_v12 }
  0x43   : > { %531 = vst.msk [vmem:[#allocation2 + $0x64] sm:$0xf] %vm259_vm0, %v447_v13 }
  0x44   : > { %534 = vst [vmem:[#allocation2 + $0x68] sm:$0x1] %v533_v14 }
  0x45   : > { %v543_v15 = vld [vmem:[%s542_s16] sm:$0xf]  ;;  %v544_v16 = vld [vmem:[%s542_s16 + $0x4] sm:$0xf]  ;;  %v569_v24 = vld [vmem:[#allocation2 + $0x8] sm:$0x1] }
  0x46   : > { %v546_v17 = vshrl.u32 %v543_v15, 16  ;;  %v549_v18 = vshll.u32 %v543_v15, 16  ;;  %v554_v19 = vshrl.u32 %v544_v16, 16  ;;  %v557_v20 = vshll.u32 %v544_v16, 16  ;;  %v565_v23 = vld [vmem:[#allocation2] sm:$0xf] }
  0x48   : > { %v548_v21 = vrot.slane %v546_v17, 7  ;;  %v556_v22 = vrot.slane %v554_v19, 7 }
  0x4a   : > { %v551_v25 = vor.u32 %v549_v18, %v548_v21  ;;  %v552_v26 = vrot.slane %v548_v21, 4  ;;  %v559_v27 = vor.u32 %v557_v20, %v556_v22  ;;  %v561_v28 = vrot.slane %v556_v22, 4 }
  0x4c   : > { %v566_v29 = vsel %vm2820_vm5, %v551_v25, %v565_v23  ;;  %v560_v30 = vsel %vm2829_vm6, %v552_v26, %v559_v27  ;;  %v570_v31 = vsel %vm2841_vm7, %v561_v28, %v569_v24 }
  0x4d   : > { %567 = vst [vmem:[#allocation2] sm:$0xf] %v566_v29 }
  0x4e   : > { %568 = vst.msk [vmem:[#allocation2 + $0x4] sm:$0xf] %vm259_vm0, %v560_v30 }
  0x4f   : > { %571 = vst [vmem:[#allocation2 + $0x8] sm:$0x1] %v570_v31 }
  0x50 PF: > { %p2315_p8 = scmp.ge.s32.totalorder %s2653_s15, 1 }
  0x52   : > { %575 = sbr.rel (%p2315_p8) target bundleno = 98 (0x62), region = 44 }
  0x57   : > { %v2318_v32 = vld [vmem:[%s2754_s5 + $0x40] sm:$0xf]  ;;  %v2319_v33 = vld [vmem:[%s2754_s5 + $0x44] sm:$0xf]  ;;  %v603_v42 = vld [vmem:[#allocation2 + $0x6c] sm:$0xf] }
  0x58   : > { %v583_v35 = vshrl.u32 %v2318_v32, 16  ;;  %v586_v36 = vshll.u32 %v2318_v32, 16  ;;  %v591_v37 = vshrl.u32 %v2319_v33, 16  ;;  %v594_v38 = vshll.u32 %v2319_v33, 16  ;;  %v607_v43 = vld [vmem:[#allocation2 + $0x74] sm:$0x1] }
  0x5a   : > { %v585_v40 = vrot.slane %v583_v35, 7  ;;  %v593_v41 = vrot.slane %v591_v37, 7 }
  0x5c   : > { %v588_v44 = vor.u32 %v586_v36, %v585_v40  ;;  %v589_v46 = vrot.slane %v585_v40, 4  ;;  %v596_v47 = vor.u32 %v594_v38, %v593_v41  ;;  %v598_v48 = vrot.slane %v593_v41, 4 }
  0x5e   : > { %v604_v49 = vsel %vm2820_vm5, %v588_v44, %v603_v42  ;;  %v597_v50 = vsel %vm2829_vm6, %v589_v46, %v596_v47  ;;  %v608_v51 = vsel %vm2841_vm7, %v598_v48, %v607_v43 }
  0x5f   : > { %605 = vst [vmem:[#allocation2 + $0x6c] sm:$0xf] %v604_v49 }
  0x60   : > { %606 = vst.msk [vmem:[#allocation2 + $0x70] sm:$0xf] %vm259_vm0, %v597_v50 }
  0x61   : > { %609 = vst [vmem:[#allocation2 + $0x74] sm:$0x1] %v608_v51 }
  0x62 PF: > { %v2320_v52 = vld [vmem:[%s3713_s1 + $0x2] sm:$0x3]  ;;  %vm887_vm8 = vcmask 1041408   ;;  %v2944_v53 = vld [vmem:[#allocation2 + $0x18] sm:$0xf]  ;;  %vm862_vm11 = vcmask 31744  }
  0x63   : > { %v889_v34 = vsel %vm887_vm8, %v2320_v52, 0  ;;  %v2947_v54 = vld [vmem:[#allocation2 + $0x1c] sm:$0xf]  ;;  %v2949_v39 = vld [vmem:[#allocation2 + $0x20] sm:$0x1]  ;;  %v693_v45 = vshrl.u32 %v2944_v53, 16 }
  0x64   : > { %2522 = vmatpush.bf16.msra.mxu1 %v889_v34  ;;  %2523 = vmatpush.bf16.msra.mxu2 %v889_v34  ;;  %vm641_vm9 = vsmask.f32 3328  ;;  %vm642_vm10 = vsmask.f32 7440  ;;  %v696_v55 = vshll.u32 %v2944_v53, 16  ;;  %v702_v56 = vshll.u32 %v2947_v54, 16 }
  0x65   : > { %2524 = vmatpush.bf16.msra.mxu3 %v889_v34  ;;  %898 = vmatpush.bf16.msra.mxu0 %v889_v34  ;;  %v695_v57 = vrot.slane %v693_v45, 4  ;;  %v706_v58 = vshrl.u32 %v2947_v54, 16  ;;  %v712_v59 = vshll.u32 %v2949_v39, 16  ;;  %v2956_v60 = vld [vmem:[#allocation2 + $0x30] sm:$0xf]  ;;  %vm2971_vm12 = vmor %vm641_vm9, %vm642_vm10  ;;  %vm1064_vm13 = vcmask 1042432  }
  0x66   : > { %v698_v61 = vrot.slane %v696_v55, 5  ;;  %v704_v62 = vrot.slane %v702_v56, 5  ;;  %v2958_v63 = vld [vmem:[#allocation2 + $0x34] sm:$0xf]  ;;  %v2960_v1 = vld [vmem:[#allocation2 + $0x38] sm:$0x1] }
  0x67   : > { %v708_v2 = vrot.slane %v706_v58, 4  ;;  %v714_v3 = vrot.slane %v712_v59, 5  ;;  %v741_v4 = vshrl.u32 %v2956_v60, 16  ;;  %v744_v0 = vshll.u32 %v2956_v60, 16  ;;  %v2964_v5 = vld [vmem:[#allocation2 + $0x48] sm:$0xf] }
  0x68   : > { %v699_v6 = vor.u32 %v698_v61, %v695_v57  ;;  %v750_v7 = vshll.u32 %v2958_v63, 16  ;;  %v754_v8 = vshrl.u32 %v2958_v63, 16  ;;  %v760_v9 = vshll.u32 %v2960_v1, 16  ;;  %v2975_v14 = vld [vmem:[#allocation2 + $0x4c] sm:$0xf] }
  0x69   : > { %v709_v11 = vor.u32 %v708_v2, %v704_v62  ;;  %v743_v12 = vrot.slane %v741_v4, 4  ;;  %v746_v13 = vrot.slane %v744_v0, 5  ;;  %v789_v15 = vshrl.u32 %v2964_v5, 16  ;;  %v2981_v26 = vld [vmem:[#allocation2 + $0x50] sm:$0x1] }
  0x6a   : > { %v700_v16 = vrot.slane %v699_v6, 4  ;;  %v752_v17 = vrot.slane %v750_v7, 5  ;;  %v756_v18 = vrot.slane %v754_v8, 4  ;;  %v762_v19 = vrot.slane %v760_v9, 5  ;;  %v2377_v29 = vld [vmem:[%s3713_s1 + $0x4] sm:$0x3] }
  0x6b   : > { %v710_v20 = vrot.slane %v709_v11, 4  ;;  %v747_v21 = vor.u32 %v746_v13, %v743_v12  ;;  %v791_v22 = vrot.slane %v789_v15, 4  ;;  %v792_v23 = vshll.u32 %v2964_v5, 16  ;;  %v2990_v40 = vld [vmem:[#allocation2] sm:$0xf] }
  0x6c   : > { %v705_v24 = vsel %vm2971_vm12, %v700_v16, %v704_v62  ;;  %v757_v25 = vor.u32 %v756_v18, %v752_v17  ;;  %v798_v27 = vshll.u32 %v2975_v14, 16  ;;  %v802_v28 = vshrl.u32 %v2975_v14, 16  ;;  %v2996_v46 = vld [vmem:[#allocation2 + $0x4] sm:$0xf]  ;;  %v3002_v51 = vld [vmem:[#allocation2 + $0x8] sm:$0x1] }
  0x6d   : > { %v715_v30 = vsel %vm2971_vm12, %v710_v20, %v714_v3  ;;  %v842_v31 = vunpack.c.l.b16 %v705_v24  ;;  %v748_v32 = vrot.slane %v747_v21, 4  ;;  %v794_v33 = vrot.slane %v792_v23, 5  ;;  %v2386_v56 = vld [vmem:[%s3713_s1 + $0x6] sm:$0x3]  ;;  %v640_v62 = vld [vmem:[%s3713_s1] sm:$0x3] }
  0x6e   : > { %v843_v35 = vunpack.c.l.b16 %v715_v30  ;;  %v758_v36 = vrot.slane %v757_v25, 4  ;;  %v800_v37 = vrot.slane %v798_v27, 5  ;;  %v804_v38 = vrot.slane %v802_v28, 4  ;;  %v2399_v6 = vld [vmem:[%s3713_s1 + $0x8] sm:$0x3] }
  0x6f   : > { %v753_v41 = vsel %vm2971_vm12, %v748_v32, %v752_v17  ;;  %v795_v42 = vor.u32 %v794_v33, %v791_v22  ;;  %v808_v43 = vshll.u32 %v2981_v26, 16  ;;  %v1174_v44 = vsel %vm887_vm8, %v2377_v29, 0  ;;  %v3024_v7 = vld [vmem:[#allocation2 + $0x24] sm:$0xf]  ;;  %v3028_v13 = vld [vmem:[#allocation2 + $0x28] sm:$0xf] }
  0x70   : > { %v2998_v47 = vpack.c.b16 %v843_v35, %v842_v31  ;;  %v763_v48 = vsel %vm2971_vm12, %v758_v36, %v762_v19  ;;  %v846_v49 = vunpack.c.l.b16 %v753_v41  ;;  %v805_v50 = vor.u32 %v804_v38, %v800_v37  ;;  %1183 = vmatpush.bf16.msrb.mxu2 %v1174_v44  ;;  %v3030_v15 = vld [vmem:[#allocation2 + $0x2c] sm:$0x1]  ;;  %v3035_v20 = vld [vmem:[#allocation2 + $0x3c] sm:$0xf]  ;;  %v3047_v35 = vld [vmem:[#allocation2 + $0x40] sm:$0xf] }
  0x71   : > { %v847_v52 = vunpack.c.l.b16 %v763_v48  ;;  %v796_v34 = vrot.slane %v795_v42, 4  ;;  %v810_v45 = vrot.slane %v808_v43, 5  ;;  %v645_v55 = vshrl.u32 %v2990_v40, 16  ;;  %v3051_v41 = vld [vmem:[#allocation2 + $0x44] sm:$0x1] }
  0x72   : > { %2323 = vmatmul.msk.bf16.vlgmr.msra.gmra.mxu1 %vm862_vm11, %v2998_v47  ;;  %v806_v57 = vrot.slane %v805_v50, 4  ;;  %v648_v58 = vshll.u32 %v2990_v40, 16  ;;  %v654_v59 = vshll.u32 %v2996_v46, 16  ;;  %v658_v61 = vshrl.u32 %v2996_v46, 16  ;;  %v3056_v50 = vld [vmem:[#allocation2 + $0x54] sm:$0xf] }
  0x73   : > { %v3016_v2 = vpack.c.b16 %v847_v52, %v846_v49  ;;  %v801_v3 = vsel %vm2971_vm12, %v796_v34, %v800_v37  ;;  %v647_v4 = vrot.slane %v645_v55, 4  ;;  %v664_v0 = vshll.u32 %v3002_v51, 16 }
  0x74   : > { %v811_v8 = vsel %vm2971_vm12, %v806_v57, %v810_v45  ;;  %v850_v9 = vunpack.c.l.b16 %v801_v3  ;;  %v650_v11 = vrot.slane %v648_v58, 5  ;;  %v656_v12 = vrot.slane %v654_v59, 5 }
  0x75   : > { %2325 = vmatmul.msk.bf16.vlgmr.msra.gmra.mxu2 %vm862_vm11, %v3016_v2  ;;  %v851_v16 = vunpack.c.l.b16 %v811_v8  ;;  %v660_v17 = vrot.slane %v658_v61, 4  ;;  %v666_v18 = vrot.slane %v664_v0, 5  ;;  %v1072_v19 = vrot.slane %v3002_v51, 5 }
  0x76   : > { %v651_v21 = vor.u32 %v650_v11, %v647_v4  ;;  %v1252_v22 = vsel %vm887_vm8, %v2386_v56, 0  ;;  %v1005_v23 = vsel %vm887_vm8, %v640_v62, 0  ;;  %v1352_v24 = vsel %vm887_vm8, %v2399_v6, 0  ;;  %v3064_v4 = vld [vmem:[#allocation2 + $0x58] sm:$0xf] }
  0x77   : > { %v3040_v25 = vpack.c.b16 %v851_v16, %v850_v9  ;;  %v661_v27 = vor.u32 %v660_v17, %v656_v12  ;;  %1261 = vmatpush.bf16.msrb.mxu3 %v1252_v22  ;;  %1014 = vmatpush.bf16.msrb.mxu1 %v1005_v23  ;;  %v717_v28 = vshrl.u32 %v3024_v7, 16  ;;  %v720_v29 = vshll.u32 %v3024_v7, 16  ;;  %v3071_v22 = vld [vmem:[#allocation2 + $0xc] sm:$0xf] }
  0x78   : > { %v652_v30 = vrot.slane %v651_v21, 4  ;;  %1361 = vmatpush.bf16.msrb.mxu0 %v1352_v24  ;;  %v726_v31 = vshll.u32 %v3028_v13, 16  ;;  %v730_v32 = vshrl.u32 %v3028_v13, 16  ;;  %v736_v33 = vshll.u32 %v3030_v15, 16 }
  0x79   : > { %2327 = vmatmul.msk.bf16.vlgmr.msra.gmra.mxu3 %vm862_vm11, %v3040_v25  ;;  %v662_v36 = vrot.slane %v661_v27, 4  ;;  %v719_v37 = vrot.slane %v717_v28, 4  ;;  %v722_v38 = vrot.slane %v720_v29, 5  ;;  %v765_v42 = vshrl.u32 %v3035_v20, 16 }
  0x7a   : > { %v657_v43 = vsel %vm2971_vm12, %v652_v30, %v656_v12  ;;  %v728_v44 = vrot.slane %v726_v31, 5  ;;  %v732_v48 = vrot.slane %v730_v32, 4  ;;  %v738_v49 = vrot.slane %v736_v33, 5  ;;  %v3067_v12 = vld [vmem:[#allocation2 + $0x5c] sm:$0x1] }
  0x7b   : > { %v667_v52 = vsel %vm2971_vm12, %v662_v36, %v666_v18  ;;  %v838_v34 = vunpack.c.l.b16 %v657_v43  ;;  %v723_v45 = vor.u32 %v722_v38, %v719_v37  ;;  %v767_v55 = vrot.slane %v765_v42, 4 }
  0x7c   : > { %v839_v56 = vunpack.c.l.b16 %v667_v52  ;;  %v733_v57 = vor.u32 %v732_v48, %v728_v44  ;;  %v768_v58 = vshll.u32 %v3035_v20, 16  ;;  %v774_v59 = vshll.u32 %v3047_v35, 16 }
  0x7d   : > { %v724_v61 = vrot.slane %v723_v45, 4  ;;  %v778_v62 = vshrl.u32 %v3047_v35, 16  ;;  %v784_v3 = vshll.u32 %v3051_v41, 16  ;;  %v813_v0 = vshrl.u32 %v3056_v50, 16 }
  0x7e   : > { %v854_v6 = vpack.c.b16 %v839_v56, %v838_v34  ;;  %v734_v8 = vrot.slane %v733_v57, 4  ;;  %v770_v9 = vrot.slane %v768_v58, 5  ;;  %v776_v11 = vrot.slane %v774_v59, 5 }
  0x7f   : > { %v729_v16 = vsel %vm2971_vm12, %v724_v61, %v728_v44  ;;  %v780_v17 = vrot.slane %v778_v62, 4  ;;  %v786_v18 = vrot.slane %v784_v3, 5  ;;  %v815_v21 = vrot.slane %v813_v0, 4 }
  0x80   : > { %2321 = vmatmul.msk.bf16.vlgmr.msra.gmra.mxu0 %vm862_vm11, %v854_v6  ;;  %v739_v23 = vsel %vm2971_vm12, %v734_v8, %v738_v49  ;;  %v844_v24 = vunpack.c.l.b16 %v729_v16  ;;  %v771_v27 = vor.u32 %v770_v9, %v767_v55  ;;  %v816_v28 = vshll.u32 %v3056_v50, 16  ;;  %v3083_v49 = vld [vmem:[#allocation2 + $0x10] sm:$0xf]  ;;  %v3087_v55 = vld [vmem:[#allocation2 + $0x14] sm:$0x1] }
  0x81   : > { %v845_v29 = vunpack.c.l.b16 %v739_v23  ;;  %v781_v30 = vor.u32 %v780_v17, %v776_v11  ;;  %v822_v31 = vshll.u32 %v3064_v4, 16  ;;  %v826_v32 = vshrl.u32 %v3064_v4, 16  ;;  %v2418_v23 = vld [vmem:[%s3713_s1 + $0xc] sm:$0x3] }
  0x82   : > { %v772_v33 = vrot.slane %v771_v27, 4  ;;  %v818_v36 = vrot.slane %v816_v28, 5  ;;  %v832_v37 = vshll.u32 %v3067_v12, 16  ;;  %v669_v38 = vshrl.u32 %v3071_v22, 16 }
  0x83   : > { %v3081_v42 = vpack.c.b16 %v845_v29, %v844_v24  ;;  %v782_v43 = vrot.slane %v781_v30, 4  ;;  %v824_v44 = vrot.slane %v822_v31, 5  ;;  %v828_v48 = vrot.slane %v826_v32, 4  ;;  %v2431_v24 = vld [vmem:[%s3713_s1 + $0xe] sm:$0x3] }
  0x84   : > { %v777_v52 = vsel %vm2971_vm12, %v772_v33, %v776_v11  ;;  %v819_v34 = vor.u32 %v818_v36, %v815_v21  ;;  %v834_v45 = vrot.slane %v832_v37, 5  ;;  %v671_v56 = vrot.slane %v669_v38, 4  ;;  %v2409_v31 = vld [vmem:[%s3713_s1 + $0xa] sm:$0x3]  ;;  %v2441_v32 = vld [vmem:[%s3713_s1 + $0x10] sm:$0x3] }
  0x85   : > { %2324 = vmatmul.msk.bf16.gmra.mxu1 %vm862_vm11, %v3081_v42  ;;  %v787_v57 = vsel %vm2971_vm12, %v782_v43, %v786_v18  ;;  %v848_v58 = vunpack.c.l.b16 %v777_v52  ;;  %v829_v59 = vor.u32 %v828_v48, %v824_v44  ;;  %v672_v61 = vshll.u32 %v3071_v22, 16 }
  0x86   : > { %v849_v62 = vunpack.c.l.b16 %v787_v57  ;;  %v820_v3 = vrot.slane %v819_v34, 4  ;;  %v678_v0 = vshll.u32 %v3083_v49, 16  ;;  %v682_v6 = vshrl.u32 %v3083_v49, 16 }
  0x87   : > { %v830_v8 = vrot.slane %v829_v59, 4  ;;  %v674_v9 = vrot.slane %v672_v61, 5  ;;  %v688_v11 = vshll.u32 %v3087_v55, 16  ;;  %vm1065_vm14 = vcmask 1046532  }
  0x88   : > { %v3097_v16 = vpack.c.b16 %v849_v62, %v848_v58  ;;  %v825_v17 = vsel %vm2971_vm12, %v820_v3, %v824_v44  ;;  %v680_v18 = vrot.slane %v678_v0, 5  ;;  %v684_v21 = vrot.slane %v682_v6, 4  ;;  %vm3124_vm15 = vmor %vm1064_vm13, %vm1065_vm14  ;;  %v2473_v6 = vld [vmem:[#allocation2] sm:$0xff] }
  0x89   : > { %v835_v27 = vsel %vm2971_vm12, %v830_v8, %v834_v45  ;;  %v852_v28 = vunpack.c.l.b16 %v825_v17  ;;  %v675_v29 = vor.u32 %v674_v9, %v671_v56  ;;  %v690_v30 = vrot.slane %v688_v11, 5 }
  0x8a   : > { %2326 = vmatmul.msk.bf16.gmra.mxu2 %vm862_vm11, %v3097_v16  ;;  %v853_v33 = vunpack.c.l.b16 %v835_v27  ;;  %v685_v36 = vor.u32 %v684_v21, %v680_v18  ;;  %v2369_v37 = vrot.slane %v2990_v40, 9  ;;  %v1069_v43 = vrot.slane %v2996_v46, 5 }
  0x8b   : > { %v676_v38 = vrot.slane %v675_v29, 4  ;;  %v1514_v44 = vsel %vm887_vm8, %v2418_v23, 0  ;;  %v1614_v48 = vsel %vm887_vm8, %v2431_v24, 0  ;;  %v1436_v56 = vsel %vm887_vm8, %v2409_v31, 0 }
  0x8c   : > { %v3121_v52 = vpack.c.b16 %v853_v33, %v852_v28  ;;  %v686_v34 = vrot.slane %v685_v36, 4  ;;  %1523 = vmatpush.bf16.msra.mxu2 %v1514_v44  ;;  %1623 = vmatpush.bf16.msra.mxu3 %v1614_v48  ;;  %v1698_v40 = vsel %vm887_vm8, %v2441_v32, 0  ;;  %v1071_v57 = vrot.slane %v1069_v43, 4  ;;  %v2474_v28 = vld [vmem:[#allocation2 + $0xc] sm:$0xff] }
  0x8d   : > { %v681_v46 = vsel %vm2971_vm12, %v676_v38, %v680_v18  ;;  %1445 = vmatpush.bf16.msra.mxu1 %v1436_v56  ;;  %1707 = vmatpush.bf16.msra.mxu0 %v1698_v40  ;;  %v1070_v62 = vsel %vm3124_vm15, %v2369_v37, %v1069_v43  ;;  %v2371_v11 = vrot.slane %v2944_v53, 9  ;;  %v1083_v17 = vrot.slane %v2947_v54, 5  ;;  %v3198_v40 = vld [vmem:[#allocation2 + $0x30] sm:$0xff] }
  0x8e   : > { %2328 = vmatmul.msk.bf16.gmra.mxu3 %vm862_vm11, %v3121_v52  ;;  %v691_v58 = vsel %vm2971_vm12, %v686_v34, %v690_v30  ;;  %v840_v59 = vunpack.c.l.b16 %v681_v46  ;;  %v1073_v3 = vsel %vm3124_vm15, %v1071_v57, %v1072_v19  ;;  %v1125_v8 = vunpack.c.l.b16 %v1070_v62  ;;  %v3175_v34 = vld [vmem:[#allocation2 + $0x18] sm:$0xff] }
  0x8f   : > { %v841_v61 = vunpack.c.l.b16 %v691_v58  ;;  %v1126_v9 = vunpack.c.l.b16 %v1073_v3  ;;  %v1086_v18 = vrot.slane %v2949_v39, 5  ;;  %v1076_v51 = vrot.slane %v3083_v49, 5  ;;  %v3217_v3 = vld [vmem:[#allocation2 + $0x3c] sm:$0xff] }
  0x90   : > { %v1084_v19 = vsel %vm3124_vm15, %v2371_v11, %v1083_v17  ;;  %v1085_v23 = vrot.slane %v1083_v17, 4  ;;  %v2370_v53 = vrot.slane %v3071_v22, 9  ;;  %v1079_v39 = vrot.slane %v3087_v55, 5 }
  0x91   : > { %v855_v0 = vpack.c.b16 %v841_v61, %v840_v59  ;;  %v1141_v21 = vpack.c.b16 %v1126_v9, %v1125_v8  ;;  %v1129_v24 = vunpack.c.l.b16 %v1084_v19  ;;  %v1078_v54 = vrot.slane %v1076_v51, 4 }
  0x92   : > { %v1087_v27 = vsel %vm3124_vm15, %v1085_v23, %v1086_v18  ;;  %v1077_v49 = vsel %vm3124_vm15, %v2370_v53, %v1076_v51  ;;  %v2372_v22 = vrot.slane %v3024_v7, 9  ;;  %v1090_v55 = vrot.slane %v3028_v13, 5  ;;  %v3187_v13 = vld [vmem:[#allocation2 + $0x24] sm:$0xff] }
  0x93   : > { %2322 = vmatmul.msk.bf16.gmra.mxu0 %vm862_vm11, %v855_v0  ;;  %v1130_v29 = vunpack.c.l.b16 %v1087_v27  ;;  %v1080_v31 = vsel %vm3124_vm15, %v1078_v54, %v1079_v39  ;;  %v1127_v32 = vunpack.c.l.b16 %v1077_v49  ;;  %v1093_v36 = vrot.slane %v3030_v15, 5  ;;  %v3236_v18 = vld [vmem:[#allocation2 + $0x48] sm:$0xff] }
  0x94   : > { %v1128_v33 = vunpack.c.l.b16 %v1080_v31  ;;  %v1091_v38 = vsel %vm3124_vm15, %v2372_v22, %v1090_v55  ;;  %v1092_v43 = vrot.slane %v1090_v55, 4  ;;  %v1097_v15 = vrot.slane %v2958_v63, 5  ;;  %v3269_v22 = vld [vmem:[#allocation2 + $0x54] sm:$0xff] }
  0x95   : > { %2361 = vmatmul.msk.bf16.vlgmr.msrb.gmra.mxu1 %vm862_vm11, %v2473_v6  ;;  %v3155_v30 = vpack.c.b16 %v1130_v29, %v1129_v24  ;;  %v1131_v44 = vunpack.c.l.b16 %v1091_v38  ;;  %v2373_v46 = vrot.slane %v2956_v60, 9  ;;  %v1100_v58 = vrot.slane %v2960_v1, 5 }
  0x96   : > { %v3167_v37 = vpack.c.b16 %v1128_v33, %v1127_v32  ;;  %v1094_v48 = vsel %vm3124_vm15, %v1092_v43, %v1093_v36  ;;  %v1099_v57 = vrot.slane %v1097_v15, 4  ;;  %v1104_v1 = vrot.slane %v3047_v35, 5 }
  0x97   : > { %v1132_v7 = vunpack.c.l.b16 %v1094_v48  ;;  %v1098_v59 = vsel %vm3124_vm15, %v2373_v46, %v1097_v15  ;;  %v1107_v8 = vrot.slane %v3051_v41, 5  ;;  %v1111_v41 = vrot.slane %v2975_v14, 5  ;;  %v3275_v46 = vld [vmem:[#allocation2 + $0x68] sm:$0x1] }
  0x98   : > { %v1101_v61 = vsel %vm3124_vm15, %v1099_v57, %v1100_v58  ;;  %v1133_v63 = vunpack.c.l.b16 %v1098_v59  ;;  %v1106_v6 = vrot.slane %v1104_v1, 4  ;;  %v1114_v19 = vrot.slane %v2981_v26, 5  ;;  %v3254_v26 = vld [vmem:[#allocation2 + $0x64] sm:$0xf] }
  0x99   : > { %v3177_v56 = vpack.c.b16 %v1132_v7, %v1131_v44  ;;  %v1134_v62 = vunpack.c.l.b16 %v1101_v61  ;;  %v1113_v51 = vrot.slane %v1111_v41, 4  ;;  %v1118_v53 = vrot.slane %v3064_v4, 5 }
  0x9a   : > { %2378 = vmatmul.msk.bf16.vlgmr.msrb.gmra.mxu2 %vm862_vm11, %v1141_v21  ;;  %v1108_v11 = vsel %vm3124_vm15, %v1106_v6, %v1107_v8  ;;  %v2375_v21 = vrot.slane %v2964_v5, 9  ;;  %v3252_v5 = vld [vmem:[#allocation2 + $0x60] sm:$0xf]  ;;  %v1329_v31 = vshll.u32 %v3254_v26, 16  ;;  %v1333_v32 = vshrl.u32 %v3254_v26, 16 }
  0x9b   : > { %v3212_v60 = vpack.c.b16 %v1134_v62, %v1133_v63  ;;  %v1136_v17 = vunpack.c.l.b16 %v1108_v11  ;;  %v1115_v14 = vsel %vm3124_vm15, %v1113_v51, %v1114_v19  ;;  %v1320_v39 = vshrl.u32 %v3252_v5, 16 }
  0x9c   : > { %v1112_v24 = vsel %vm3124_vm15, %v2375_v21, %v1111_v41  ;;  %v1323_v49 = vshll.u32 %v3252_v5, 16  ;;  %v2376_v55 = vrot.slane %v3056_v50, 9  ;;  %v1120_v4 = vrot.slane %v1118_v53, 4  ;;  %v3302_v21 = vld [vmem:[#allocation2 + $0x60] sm:$0xff] }
  0x9d   : > { %v1137_v27 = vunpack.c.l.b16 %v1112_v24  ;;  %v1121_v36 = vrot.slane %v3067_v12, 5  ;;  %v1322_v38 = vrot.slane %v1320_v39, 4  ;;  %v1331_v44 = vrot.slane %v1329_v31, 5 }
  0x9e   : > { %2391 = vmatmul.msk.bf16.vlgmr.msrb.gmra.mxu3 %vm862_vm11, %v2474_v28  ;;  %v1325_v43 = vrot.slane %v1323_v49, 5  ;;  %v1335_v48 = vrot.slane %v1333_v32, 4  ;;  %v1119_v57 = vsel %vm3124_vm15, %v2376_v55, %v1118_v53  ;;  %v1339_v59 = vshll.u32 %v3275_v46, 16 }
  0x9f   : > { %v1122_v50 = vsel %vm3124_vm15, %v1120_v4, %v1121_v36  ;;  %v1139_v63 = vunpack.c.l.b16 %v1119_v57 }
  0xa0   : > { %v1326_v58 = vor.u32 %v1325_v43, %v1322_v38  ;;  %v1336_v12 = vor.u32 %v1335_v48, %v1331_v44  ;;  %v1140_v62 = vunpack.c.l.b16 %v1122_v50  ;;  %v1341_v8 = vrot.slane %v1339_v59, 5 }
  0xa2   : > { %v1337_v6 = vrot.slane %v1336_v12, 4  ;;  %v3292_v11 = vpack.c.b16 %v1140_v62, %v1139_v63 }
  0xa3   : > { %2400 = vmatmul.msk.bf16.vlgmr.msrb.gmra.mxu0 %vm862_vm11, %v855_v0  ;;  %v2374_v0 = vrot.slane %v3035_v20, 9 }
  0xa4   : > { %v1342_v41 = vsel %vm2971_vm12, %v1337_v6, %v1341_v8 }
  0xa5   : > { %2362 = vmatmul.msk.bf16.gmra.mxu1 %vm862_vm11, %v2474_v28  ;;  %v1105_v9 = vsel %vm3124_vm15, %v2374_v0, %v1104_v1  ;;  %v1138_v28 = vunpack.c.l.b16 %v1115_v14  ;;  %v1327_v0 = vrot.slane %v1326_v58, 4  ;;  %v1346_v24 = vunpack.c.l.b16 %v1342_v41 }
  0xa6   : > { %v1135_v35 = vunpack.c.l.b16 %v1105_v9 }
  0xa7   : > { %v3256_v29 = vpack.c.b16 %v1138_v28, %v1137_v27 }
  0xa8   : > { %v3231_v20 = vpack.c.b16 %v1136_v17, %v1135_v35  ;;  %v1332_v17 = vsel %vm2971_vm12, %v1327_v0, %v1331_v44 }
  0xa9   : > { %v1345_v19 = vunpack.c.l.b16 %v1332_v17 }
  0xaa   : > { %2379 = vmatmul.msk.bf16.gmra.mxu2 %vm862_vm11, %v3167_v37 }
  0xab   : > { %v3310_v27 = vpack.c.b16 %v1346_v24, %v1345_v19 }
  0xae   : > { %2392 = vmatmul.msk.bf16.gmra.mxu3 %vm862_vm11, %v3175_v34 }
  0xb3   : > { %2401 = vmatmul.msk.bf16.gmra.mxu0 %vm862_vm11, %v2998_v47 }
  0xb5   : > { %2363 = vmatmul.msk.bf16.gmra.mxu1 %vm862_vm11, %v3175_v34 }
  0xba   : > { %2380 = vmatmul.msk.bf16.gmra.mxu2 %vm862_vm11, %v3155_v30 }
  0xbe   : > { %2393 = vmatmul.msk.bf16.gmra.mxu3 %vm862_vm11, %v3187_v13 }
  0xc3   : > { %2402 = vmatmul.msk.bf16.gmra.mxu0 %vm862_vm11, %v3081_v42 }
  0xc5   : > { %2364 = vmatmul.msk.bf16.gmra.mxu1 %vm862_vm11, %v3187_v13 }
  0xca   : > { %2381 = vmatmul.msk.bf16.gmra.mxu2 %vm862_vm11, %v3177_v56 }
  0xce   : > { %2394 = vmatmul.msk.bf16.gmra.mxu3 %vm862_vm11, %v3198_v40 }
  0xd3   : > { %2403 = vmatmul.msk.bf16.gmra.mxu0 %vm862_vm11, %v3016_v2 }
  0xd5   : > { %2365 = vmatmul.msk.bf16.gmra.mxu1 %vm862_vm11, %v3198_v40 }
  0xda   : > { %2382 = vmatmul.msk.bf16.gmra.mxu2 %vm862_vm11, %v3212_v60 }
  0xde   : > { %2395 = vmatmul.msk.bf16.gmra.mxu3 %vm862_vm11, %v3217_v3 }
  0xe3   : > { %2404 = vmatmul.msk.bf16.gmra.mxu0 %vm862_vm11, %v3097_v16 }
  0xe5   : > { %2366 = vmatmul.msk.bf16.gmra.mxu1 %vm862_vm11, %v3217_v3 }
  0xea   : > { %2383 = vmatmul.msk.bf16.gmra.mxu2 %vm862_vm11, %v3231_v20 }
  0xee   : > { %2396 = vmatmul.msk.bf16.gmra.mxu3 %vm862_vm11, %v3236_v18 }
  0xef   : > { %v3242_v23 = vpop.f32.mrf.mxu1 }
  0xf3   : > { %2405 = vmatmul.msk.bf16.gmra.mxu0 %vm862_vm11, %v3040_v25 }
  0xf5   : > { %2367 = vmatmul.msk.bf16.gmra.mxu1 %vm862_vm11, %v3236_v18 }
  0xf7   : > { %v3259_v54 = vpop.f32.mrf.mxu1 }
  0xf8   : > { %v3265_v33 = vpop.f32.mrf.mxu2 }
  0xfa   : > { %2384 = vmatmul.msk.bf16.gmra.mxu2 %vm862_vm11, %v3256_v29 }
  0xfc   : > { %v3273_v15 = vpop.f32.mrf.mxu3 }
  0xfd   : > { %v900_v7 = vpop.f32.mrf.mxu0 }
  0xfe   : > { %2397 = vmatmul.msk.bf16.gmra.mxu3 %vm862_vm11, %v3269_v22 }
 0x100   : > { %v3288_v1 = vpop.f32.mrf.mxu2 }
 0x102   : > { %v3284_v61 = vpop.f32.mrf.mxu1 }
 0x103   : > { %2406 = vmatmul.msk.bf16.gmra.mxu0 %vm862_vm11, %v3121_v52 }
 0x104   : > { %v3294_v35 = vpop.f32.mrf.mxu3 }
 0x105   : > { %2368 = vmatmul.msk.bf16.gmra.mxu1 %vm862_vm11, %v3269_v22  ;;  %v902_v9 = vpop.f32.mrf.mxu0 }
 0x10a   : > { %2385 = vmatmul.msk.bf16.gmra.mxu2 %vm862_vm11, %v3292_v11  ;;  %v3304_v51 = vpop.f32.mrf.mxu1 }
 0x10d   : > { %v3306_v14 = vpop.f32.mrf.mxu2 }
 0x10e   : > { %2398 = vmatmul.msk.bf16.gmra.mxu3 %vm862_vm11, %v3302_v21 }
 0x110   : > { %v905_v28 = vpop.f32.mrf.mxu0 }
 0x111   : > { %v3312_v53 = vpop.f32.mrf.mxu3 }
 0x112   : > { %v1016_v39 = vpop.f32.mrf.mxu1 }
 0x113   : > { %2407 = vmatmul.msk.bf16.gmra.mxu0 %vm862_vm11, %v3310_v27  ;;  %v1017_v49 = vadd.f32 %v1016_v39, %v900_v7 }
 0x115   : > { %v3316_v31 = vpop.f32.mrf.mxu2  ;;  %2410 = vmatmul.msk.bf16.vlgmr.msra.gmra.mxu1 %vm862_vm11, %v3167_v37 }
 0x118   : > { %v907_v32 = vpop.f32.mrf.mxu0 }
 0x119   : > { %v3320_v55 = vpop.f32.mrf.mxu3 }
 0x11a   : > { %2423 = vmatmul.msk.bf16.vlgmr.msra.gmra.mxu2 %vm862_vm11, %v3175_v34  ;;  %v1018_v4 = vpop.f32.mrf.mxu1 }
 0x11b   : > { %v1019_v36 = vadd.f32 %v1018_v4, %v902_v9 }
 0x11d   : > { %v1185_v38 = vpop.f32.mrf.mxu2 }
 0x11e   : > { %2432 = vmatmul.msk.bf16.vlgmr.msra.gmra.mxu3 %vm862_vm11, %v2998_v47  ;;  %v1225_v43 = vadd.f32 %v1185_v38, %v1017_v49 }
 0x120   : > { %v1363_v44 = vpop.f32.mrf.mxu0 }
 0x121   : > { %v1263_v48 = vpop.f32.mrf.mxu3 }
 0x122   : > { %v1303_v7 = vadd.f32 %v1263_v48, %v1225_v43  ;;  %v1021_v57 = vpop.f32.mrf.mxu1 }
 0x123   : > { %2442 = vmatmul.msk.bf16.vlgmr.msra.gmra.mxu0 %vm862_vm11, %v3155_v30  ;;  %v1022_v37 = vadd.f32 %v1021_v57, %v905_v28 }
 0x124   : > { %v3328_v50 = vadd.f32 %v1363_v44, %v1303_v7 }
 0x125   : > { %v1187_v58 = vpop.f32.mrf.mxu2  ;;  %2411 = vmatmul.msk.bf16.gmra.mxu1 %vm862_vm11, %v3155_v30 }
 0x126   : > { %v1226_v34 = vadd.f32 %v1187_v58, %v1019_v36 }
 0x128   : > { %v1365_v12 = vpop.f32.mrf.mxu0 }
 0x129   : > { %v1265_v59 = vpop.f32.mrf.mxu3 }
 0x12a   : > { %v1304_v63 = vadd.f32 %v1265_v59, %v1226_v34  ;;  %2424 = vmatmul.msk.bf16.gmra.mxu2 %vm862_vm11, %v3187_v13  ;;  %v1023_v47 = vpop.f32.mrf.mxu1 }
 0x12b   : > { %v1024_v62 = vadd.f32 %v1023_v47, %v907_v32 }
 0x12c   : > { %v3334_v0 = vadd.f32 %v1365_v12, %v1304_v63 }
 0x12d   : > { %v1190_v6 = vpop.f32.mrf.mxu2 }
 0x12e   : > { %2433 = vmatmul.msk.bf16.gmra.mxu3 %vm862_vm11, %v3081_v42  ;;  %v1227_v8 = vadd.f32 %v1190_v6, %v1022_v37 }
 0x130   : > { %v1368_v9 = vpop.f32.mrf.mxu0 }
 0x131   : > { %v1268_v17 = vpop.f32.mrf.mxu3 }
 0x132   : > { %v1305_v41 = vadd.f32 %v1268_v17, %v1227_v8  ;;  %v1026_v30 = vpop.f32.mrf.mxu1 }
 0x133   : > { %2443 = vmatmul.msk.bf16.gmra.mxu0 %vm862_vm11, %v3177_v56  ;;  %v1027_v19 = vadd.f32 %v1026_v30, %v3242_v23 }
 0x134   : > { %v3341_v24 = vadd.f32 %v1368_v9, %v1305_v41 }
 0x135   : > { %v1192_v13 = vpop.f32.mrf.mxu2  ;;  %2412 = vmatmul.msk.bf16.gmra.mxu1 %vm862_vm11, %v3177_v56 }
 0x136   : > { %v1228_v28 = vadd.f32 %v1192_v13, %v1024_v62 }
 0x138   : > { %v1370_v39 = vpop.f32.mrf.mxu0 }
 0x139   : > { %v1270_v49 = vpop.f32.mrf.mxu3 }
 0x13a   : > { %v1306_v42 = vadd.f32 %v1270_v49, %v1228_v28  ;;  %2425 = vmatmul.msk.bf16.gmra.mxu2 %vm862_vm11, %v3198_v40  ;;  %v1028_v32 = vpop.f32.mrf.mxu1 }
 0x13b   : > { %v1029_v4 = vadd.f32 %v1028_v32, %v3259_v54 }
 0x13c   : > { %v3348_v36 = vadd.f32 %v1370_v39, %v1306_v42 }
 0x13d   : > { %v1195_v38 = vpop.f32.mrf.mxu2 }
 0x13e   : > { %2434 = vmatmul.msk.bf16.gmra.mxu3 %vm862_vm11, %v3016_v2  ;;  %v1229_v23 = vadd.f32 %v1195_v38, %v1027_v19 }
 0x140   : > { %v1373_v43 = vpop.f32.mrf.mxu0 }
 0x141   : > { %v1273_v44 = vpop.f32.mrf.mxu3 }
 0x142   : > { %v1307_v56 = vadd.f32 %v1273_v44, %v1229_v23  ;;  %v1031_v48 = vpop.f32.mrf.mxu1 }
 0x143   : > { %2444 = vmatmul.msk.bf16.gmra.mxu0 %vm862_vm11, %v3212_v60  ;;  %v1032_v7 = vadd.f32 %v1031_v48, %v3284_v61 }
 0x144   : > { %v3355_v40 = vadd.f32 %v1373_v43, %v1307_v56 }
 0x145   : > { %v1197_v57 = vpop.f32.mrf.mxu2  ;;  %2413 = vmatmul.msk.bf16.gmra.mxu1 %vm862_vm11, %v3212_v60 }
 0x146   : > { %v1230_v54 = vadd.f32 %v1197_v57, %v1029_v4  ;;  %v3394_v57 = vld [vmem:[#allocation2 + $0x6c] sm:$0xf] }
 0x148   : > { %v1375_v37 = vpop.f32.mrf.mxu0 }
 0x149   : > { %v1275_v58 = vpop.f32.mrf.mxu3 }
 0x14a   : > { %v1308_v2 = vadd.f32 %v1275_v58, %v1230_v54  ;;  %2426 = vmatmul.msk.bf16.gmra.mxu2 %vm862_vm11, %v3217_v3  ;;  %v1033_v34 = vpop.f32.mrf.mxu1  ;;  %v3396_v54 = vld [vmem:[#allocation2 + $0x70] sm:$0xf] }
 0x14b   : > { %v1034_v12 = vadd.f32 %v1033_v34, %v3304_v51  ;;  %v1591_v34 = vshll.u32 %v3396_v54, 16 }
 0x14c   : > { %v3362_v59 = vadd.f32 %v1375_v37, %v1308_v2  ;;  %v2408_v2 = vrot.slane %v3252_v5, 9 }
 0x14d   : > { %v1200_v63 = vpop.f32.mrf.mxu2 }
 0x14e   : > { %2435 = vmatmul.msk.bf16.gmra.mxu3 %vm862_vm11, %v3097_v16  ;;  %v1231_v61 = vadd.f32 %v1200_v63, %v1032_v7  ;;  %v1422_v7 = vrot.slane %v3254_v26, 5  ;;  %v1595_v26 = vshrl.u32 %v3396_v54, 16 }
 0x150   : > { %v1378_v47 = vpop.f32.mrf.mxu0 }
 0x151   : > { %v1278_v62 = vpop.f32.mrf.mxu3 }
 0x152   : > { %v1309_v60 = vadd.f32 %v1278_v62, %v1231_v61  ;;  %v1036_v6 = vpop.f32.mrf.mxu1  ;;  %v1424_v61 = vrot.slane %v1422_v7, 4 }
 0x153   : > { %2445 = vmatmul.msk.bf16.gmra.mxu0 %vm862_vm11, %v3231_v20  ;;  %v1037_v30 = vadd.f32 %v1036_v6, %v3265_v33 }
 0x154   : > { %v3368_v8 = vadd.f32 %v1378_v47, %v1309_v60  ;;  %v1423_v60 = vsel %vm3124_vm15, %v2408_v2, %v1422_v7 }
 0x155   : > { %v1202_v3 = vpop.f32.mrf.mxu2  ;;  %2414 = vmatmul.msk.bf16.gmra.mxu1 %vm862_vm11, %v3231_v20 }
 0x156   : > { %v1232_v51 = vadd.f32 %v1202_v3, %v1034_v12  ;;  %v1425_v12 = vrot.slane %v3275_v46, 5 }
 0x158   : > { %v1380_v9 = vpop.f32.mrf.mxu0  ;;  %v1426_v46 = vsel %vm3124_vm15, %v1424_v61, %v1425_v12 }
 0x159   : > { %v1280_v17 = vpop.f32.mrf.mxu3 }
 0x15a   : > { %v1310_v41 = vadd.f32 %v1280_v17, %v1232_v51  ;;  %2427 = vmatmul.msk.bf16.gmra.mxu2 %vm862_vm11, %v3236_v18  ;;  %v1038_v16 = vpop.f32.mrf.mxu1  ;;  %v1593_v51 = vrot.slane %v1591_v34, 5 }
 0x15b   : > { %v1039_v32 = vadd.f32 %v1038_v16, %v3288_v1 }
 0x15c   : > { %v3375_v19 = vadd.f32 %v1380_v9, %v1310_v41  ;;  %v1597_v9 = vrot.slane %v1595_v26, 4 }
 0x15d   : > { %v1205_v13 = vpop.f32.mrf.mxu2 }
 0x15e   : > { %2436 = vmatmul.msk.bf16.gmra.mxu3 %vm862_vm11, %v3040_v25  ;;  %v1233_v28 = vadd.f32 %v1205_v13, %v1037_v30  ;;  %v1429_v30 = vunpack.c.l.b16 %v1423_v60  ;;  %v1430_v13 = vunpack.c.l.b16 %v1426_v46 }
 0x160   : > { %v1383_v39 = vpop.f32.mrf.mxu0 }
 0x161   : > { %v1283_v49 = vpop.f32.mrf.mxu3 }
 0x162   : > { %v1311_v20 = vadd.f32 %v1283_v49, %v1233_v28  ;;  %v1041_v42 = vpop.f32.mrf.mxu1 }
 0x163   : > { %2446 = vmatmul.msk.bf16.gmra.mxu0 %vm862_vm11, %v3256_v29  ;;  %v1042_v44 = vadd.f32 %v1041_v42, %v3306_v14  ;;  %v1582_v14 = vshrl.u32 %v3394_v57, 16 }
 0x164   : > { %v3384_v33 = vadd.f32 %v1383_v39, %v1311_v20  ;;  %v1598_v39 = vor.u32 %v1597_v9, %v1593_v51 }
 0x165   : > { %v1207_v18 = vpop.f32.mrf.mxu2  ;;  %2415 = vmatmul.msk.bf16.gmra.mxu1 %vm862_vm11, %v3256_v29  ;;  %v1584_v6 = vrot.slane %v1582_v14, 4  ;;  %v2482_v14 = vld [vmem:[#allocation2 + $0x6c] sm:$0xff] }
 0x166   : > { %v1234_v4 = vadd.f32 %v1207_v18, %v1039_v32 }
 0x168   : > { %v1385_v38 = vpop.f32.mrf.mxu0 }
 0x169   : > { %v1285_v23 = vpop.f32.mrf.mxu3 }
 0x16a   : > { %v1312_v25 = vadd.f32 %v1285_v23, %v1234_v4  ;;  %2428 = vmatmul.msk.bf16.gmra.mxu2 %vm862_vm11, %v3269_v22  ;;  %v1043_v43 = vpop.f32.mrf.mxu1  ;;  %v1431_v4 = vpack.c.b16 %v1430_v13, %v1429_v30  ;;  %v1599_v23 = vrot.slane %v1598_v39, 4 }
 0x16b   : > { %v1044_v63 = vadd.f32 %v1043_v43, %v3316_v31  ;;  %v639_v31 = vld [vmem:[#allocation2 + $0x74] sm:$0x1]  ;;  %v1684_v43 = vrot.slane %v3396_v54, 5 }
 0x16c   : > { %v3389_v48 = vadd.f32 %v1385_v38, %v1312_v25  ;;  %v1601_v49 = vshll.u32 %v639_v31, 16 }
 0x16d   : > { %v1210_v56 = vpop.f32.mrf.mxu2 }
 0x16e   : > { %2437 = vmatmul.msk.bf16.gmra.mxu3 %vm862_vm11, %v3121_v52  ;;  %v1235_v1 = vadd.f32 %v1210_v56, %v1042_v44  ;;  %v1585_v52 = vshll.u32 %v3394_v57, 16  ;;  %v1603_v25 = vrot.slane %v1601_v49, 5 }
 0x170   : > { %v1388_v29 = vpop.f32.mrf.mxu0  ;;  %v1587_v3 = vrot.slane %v1585_v52, 5 }
 0x171   : > { %v1288_v37 = vpop.f32.mrf.mxu3 }
 0x172   : > { %v1313_v58 = vadd.f32 %v1288_v37, %v1235_v1  ;;  %v1046_v22 = vpop.f32.mrf.mxu1  ;;  %v1588_v28 = vor.u32 %v1587_v3, %v1584_v6  ;;  %v1686_v37 = vrot.slane %v1684_v43, 4 }
 0x173   : > { %2447 = vmatmul.msk.bf16.gmra.mxu0 %vm862_vm11, %v3292_v11  ;;  %v1047_v20 = vadd.f32 %v1046_v22, %v3273_v15 }
 0x174   : > { %v3407_v47 = vadd.f32 %v1388_v29, %v1313_v58  ;;  %v1589_v38 = vrot.slane %v1588_v28, 4  ;;  %v1604_v29 = vsel %vm2971_vm12, %v1599_v23, %v1603_v25  ;;  %v1687_v58 = vrot.slane %v639_v31, 5 }
 0x175   : > { %v1212_v62 = vpop.f32.mrf.mxu2  ;;  %2416 = vmatmul.msk.bf16.gmra.mxu1 %vm862_vm11, %v3292_v11  ;;  %v1608_v34 = vunpack.c.l.b16 %v1604_v29 }
 0x176   : > { %v1236_v5 = vadd.f32 %v1212_v62, %v1044_v63  ;;  %v1594_v15 = vsel %vm2971_vm12, %v1589_v38, %v1593_v51 }
 0x177   : > { %v1607_v52 = vunpack.c.l.b16 %v1594_v15 }
 0x178   : > { %v1390_v17 = vpop.f32.mrf.mxu0 }
 0x179   : > { %v1290_v41 = vpop.f32.mrf.mxu3  ;;  %v1609_v63 = vpack.c.b16 %v1608_v34, %v1607_v52 }
 0x17a   : > { %v1314_v16 = vadd.f32 %v1290_v41, %v1236_v5  ;;  %2429 = vmatmul.msk.bf16.gmra.mxu2 %vm862_vm11, %v3302_v21  ;;  %v1048_v11 = vpop.f32.mrf.mxu1 }
 0x17b   : > { %v1049_v7 = vadd.f32 %v1048_v11, %v3294_v35 }
 0x17c   : > { %v3418_v42 = vadd.f32 %v1390_v17, %v1314_v16 }
 0x17d   : > { %v1215_v32 = vpop.f32.mrf.mxu2 }
 0x17e   : > { %2438 = vmatmul.msk.bf16.gmra.mxu3 %vm862_vm11, %v3310_v27  ;;  %v1237_v18 = vadd.f32 %v1215_v32, %v1047_v20  ;;  %v2440_v27 = vrot.slane %v3394_v57, 9  ;;  %v1688_v57 = vsel %vm3124_vm15, %v1686_v37, %v1687_v58 }
 0x17f   : > { %v1692_v5 = vunpack.c.l.b16 %v1688_v57 }
 0x180   : > { %v1393_v21 = vpop.f32.mrf.mxu0  ;;  %v1685_v10 = vsel %vm3124_vm15, %v2440_v27, %v1684_v43 }
 0x181   : > { %v1293_v44 = vpop.f32.mrf.mxu3  ;;  %v1691_v62 = vunpack.c.l.b16 %v1685_v10 }
 0x182   : > { %v1315_v56 = vadd.f32 %v1293_v44, %v1237_v18  ;;  %v1051_v1 = vpop.f32.mrf.mxu1 }
 0x183   : > { %2448 = vmatmul.msk.bf16.gmra.mxu0 %vm862_vm11, %v1431_v4  ;;  %v1052_v60 = vadd.f32 %v1051_v1, %v3312_v53  ;;  %v1693_v9 = vpack.c.b16 %v1692_v5, %v1691_v62 }
 0x184   : > { %v3430_v22 = vadd.f32 %v1393_v21, %v1315_v56 }
 0x185   : > { %v1217_v54 = vpop.f32.mrf.mxu2  ;;  %2417 = vmatmul.msk.bf16.gmra.mxu1 %vm862_vm11, %v1431_v4 }
 0x186   : > { %v1238_v2 = vadd.f32 %v1217_v54, %v1049_v7 }
 0x188   : > { %v1395_v26 = vpop.f32.mrf.mxu0 }
 0x189   : > { %v1295_v12 = vpop.f32.mrf.mxu3 }
 0x18a   : > { %v1316_v35 = vadd.f32 %v1295_v12, %v1238_v2  ;;  %2430 = vmatmul.msk.bf16.gmra.mxu2 %vm862_vm11, %v2482_v14  ;;  %v1053_v61 = vpop.f32.mrf.mxu1 }
 0x18b   : > { %v1054_v41 = vadd.f32 %v1053_v61, %v3320_v55  ;;  %v3452_v55 = vld [vmem:[%s3714_s2] ss:$0 sm:$0xff] }
 0x18c   : > { %v3439_v6 = vadd.f32 %v1395_v26, %v1316_v35 }
 0x18d   : > { %v1220_v3 = vpop.f32.mrf.mxu2 }
 0x18e   : > { %2439 = vmatmul.msk.bf16.gmra.mxu3 %vm862_vm11, %v1609_v63  ;;  %v1239_v51 = vadd.f32 %v1220_v3, %v1052_v60 }
 0x190   : > { %v1398_v17 = vpop.f32.mrf.mxu0 }
 0x191   : > { %v1298_v45 = vpop.f32.mrf.mxu3 }
 0x192   : > { %v1317_v46 = vadd.f32 %v1298_v45, %v1239_v51  ;;  %v1447_v31 = vpop.f32.mrf.mxu1 }
 0x193   : > { %2449 = vmatmul.msk.bf16.gmra.mxu0 %vm862_vm11, %v1693_v9  ;;  %v1487_v49 = vadd.f32 %v1447_v31, %v3328_v50 }
 0x194   : > { %v3444_v16 = vadd.f32 %v1398_v17, %v1317_v46 }
 0x195   : > { %v1222_v30 = vpop.f32.mrf.mxu2 }
 0x196   : > { %v1240_v11 = vadd.f32 %v1222_v30, %v1054_v41 }
 0x198   : > { %v1400_v53 = vpop.f32.mrf.mxu0 }
 0x199   : > { %v1300_v13 = vpop.f32.mrf.mxu3 }
 0x19a   : > { %v1318_v28 = vadd.f32 %v1300_v13, %v1240_v11  ;;  %v1449_v39 = vpop.f32.mrf.mxu1 }
 0x19b   : > { %v1488_v43 = vadd.f32 %v1449_v39, %v3334_v0 }
 0x19c   : > { %v3447_v20 = vadd.f32 %v1400_v53, %v1318_v28  ;;  %v3473_v28 = vld [vmem:[%s2763_s9] sm:$0xff]  }
 0x19d   : > { %v1525_v32 = vpop.f32.mrf.mxu2 }
 0x19e   : > { %v1565_v18 = vadd.f32 %v1525_v32, %v1487_v49 }
 0x1a0   : > { %v1709_v4 = vpop.f32.mrf.mxu0 }
 0x1a1   : > { %v1625_v38 = vpop.f32.mrf.mxu3 }
 0x1a2   : > { %v1665_v23 = vadd.f32 %v1625_v38, %v1565_v18  ;;  %v1452_v25 = vpop.f32.mrf.mxu1 }
 0x1a3   : > { %v1489_v58 = vadd.f32 %v1452_v25, %v3341_v24 }
 0x1a4   : > { %v1749_v21 = vadd.f32 %v1709_v4, %v1665_v23 }
 0x1a5   : > { %v1527_v44 = vpop.f32.mrf.mxu2 }
 0x1a6   : > { %v3456_v56 = vadd.f32 %v3452_v55, %v1749_v21  ;;  %v1566_v50 = vadd.f32 %v1527_v44, %v1488_v43  ;;  %v2485_v43 = vunpack.c.l.bf16 %v3473_v28 }
 0x1a8   : > { %v2450_v1 = vmul.f32 -1.442695, %v3456_v56  ;;  %v1711_v15 = vpop.f32.mrf.mxu0 }
 0x1a9   : > { %v1627_v29 = vpop.f32.mrf.mxu3 }
 0x1aa   : > { %2567 = vpow2.f32 %v2450_v1  ;;  %v1666_v27 = vadd.f32 %v1627_v29, %v1566_v50  ;;  %v1454_v7 = vpop.f32.mrf.mxu1 }
 0x1ab   : > { %v1490_v63 = vadd.f32 %v1454_v7, %v3348_v36 }
 0x1ac   : > { %v1750_v37 = vadd.f32 %v1711_v15, %v1666_v27 }
 0x1ad   : > { %v1530_v54 = vpop.f32.mrf.mxu2 }
 0x1ae   : > { %v3461_v2 = vadd.f32 %v3452_v55, %v1750_v37  ;;  %v1567_v0 = vadd.f32 %v1530_v54, %v1489_v58 }
 0x1b0   : > { %v2568_v14 = vpop.eup %2567  ;;  %v2451_v52 = vmul.f32 -1.442695, %v3461_v2  ;;  %v1714_v34 = vpop.f32.mrf.mxu0 }
 0x1b1   : > { %v1833_v26 = vadd.f32 1.0, %v2568_v14  ;;  %v1630_v10 = vpop.f32.mrf.mxu3 }
 0x1b2   : > { %2569 = vpow2.f32 %v2451_v52  ;;  %v1667_v57 = vadd.f32 %v1630_v10, %v1567_v0  ;;  %v1457_v12 = vpop.f32.mrf.mxu1 }
 0x1b3   : > { %2571 = vrcp.f32 %v1833_v26  ;;  %v1858_v30 = vand.u32 2147483647, %v1833_v26  ;;  %v1860_v11 = vand.u32 2147483648, %v1833_v26  ;;  %v1491_v49 = vadd.f32 %v1457_v12, %v3355_v40 }
 0x1b4   : > { %v1751_v35 = vadd.f32 %v1714_v34, %v1667_v57  ;;  %vm1854_vm2 = vweird.f32 %v1833_v26 }
 0x1b5   : > { %v1532_v61 = vpop.f32.mrf.mxu2  ;;  %v1861_v21 = vor.u32 1.1754944e-38, %v1860_v11  ;;  %vm1859_vm4 = vcmp.eq.f32.partialorder %v1858_v30, 8.507059e+37 }
 0x1b6   : > { %v3466_v24 = vadd.f32 %v3452_v55, %v1751_v35  ;;  %v1568_v62 = vadd.f32 %v1532_v61, %v1490_v63 }
 0x1b8   : > { %v2570_v5 = vpop.eup %2569  ;;  %v2452_v60 = vmul.f32 -1.442695, %v3466_v24  ;;  %v1716_v3 = vpop.f32.mrf.mxu0 }
 0x1b9   : > { %v2572_v51 = vpop.eup %2571  ;;  %v3469_v9 = vadd.f32 1.0, %v2570_v5  ;;  %v1632_v17 = vpop.f32.mrf.mxu3 }
 0x1ba   : > { %v1850_v45 = vmul.f32 %v2572_v51, %v1833_v26  ;;  %2573 = vpow2.f32 %v2452_v60  ;;  %v1668_v46 = vadd.f32 %v1632_v17, %v1568_v62  ;;  %v1459_v31 = vpop.f32.mrf.mxu1  ;;  %vm1855_vm1 = vweird.f32 %v2572_v51 }
 0x1bb   : > { %2575 = vrcp.f32 %v3469_v9  ;;  %vm1856_vm3 = vmor %vm1854_vm2, %vm1855_vm1  ;;  %v1873_v58 = vand.u32 2147483647, %v3469_v9  ;;  %v1875_v54 = vand.u32 2147483648, %v3469_v9  ;;  %v1492_v26 = vadd.f32 %v1459_v31, %v3362_v59 }
 0x1bc   : > { %v1851_v36 = vsub.f32 1.0, %v1850_v45  ;;  %v1752_v41 = vadd.f32 %v1716_v3, %v1668_v46  ;;  %vm1869_vm6 = vweird.f32 %v3469_v9  ;;  %v2486_v62 = vunpack.c.h.bf16 %v3473_v28 }
 0x1bd   : > { %v1535_v53 = vpop.f32.mrf.mxu2  ;;  %v1876_v61 = vor.u32 1.1754944e-38, %v1875_v54  ;;  %vm1874_vm8 = vcmp.eq.f32.partialorder %v1873_v58, 8.507059e+37 }
 0x1be   : > { %v1852_v13 = vmul.f32 %v2572_v51, %v1851_v36  ;;  %v3476_v39 = vadd.f32 %v3452_v55, %v1752_v41  ;;  %v1569_v23 = vadd.f32 %v1535_v53, %v1491_v49  ;;  %v2515_v49 = vld [vmem:[%s2763_s9 + $0x8] sm:$0xff]  }
 0x1c0   : > { %v2574_v32 = vpop.eup %2573  ;;  %v1853_v18 = vadd.f32 %v2572_v51, %v1852_v13  ;;  %v2453_v4 = vmul.f32 -1.442695, %v3476_v39  ;;  %v1719_v38 = vpop.f32.mrf.mxu0 }
 0x1c1   : > { %v2576_v25 = vpop.eup %2575  ;;  %v3481_v44 = vadd.f32 1.0, %v2574_v32  ;;  %v1635_v50 = vpop.f32.mrf.mxu3 }
 0x1c2   : > { %v1857_v1 = vsel %vm1856_vm3, %v2572_v51, %v1853_v18  ;;  %v1865_v15 = vmul.f32 %v2576_v25, %v3469_v9  ;;  %2577 = vpow2.f32 %v2453_v4  ;;  %v1462_v40 = vpop.f32.mrf.mxu1  ;;  %v1669_v37 = vadd.f32 %v1635_v50, %v1569_v23 }
 0x1c3   : > { %v1862_v29 = vsel %vm1859_vm4, %v1861_v21, %v1857_v1  ;;  %2579 = vrcp.f32 %v3481_v44  ;;  %vm1870_vm5 = vweird.f32 %v2576_v25  ;;  %v1493_v36 = vadd.f32 %v1462_v40, %v3368_v8 }
 0x1c4   : > { %v2089_v27 = vmul.f32 %v1862_v29, %v3456_v56  ;;  %v1866_v7 = vsub.f32 1.0, %v1865_v15  ;;  %v1753_v34 = vadd.f32 %v1719_v38, %v1669_v37  ;;  %vm1871_vm7 = vmor %vm1869_vm6, %vm1870_vm5  ;;  %v1888_v41 = vand.u32 2147483647, %v3481_v44 }
 0x1c5   : > { %v1537_v0 = vpop.f32.mrf.mxu2  ;;  %v1890_v30 = vand.u32 2147483648, %v3481_v44  ;;  %vm1884_vm10 = vweird.f32 %v3481_v44 }
 0x1c6   : > { %v2137_v14 = vadd.f32 %v2485_v43, %v2089_v27  ;;  %v1867_v52 = vmul.f32 %v2576_v25, %v1866_v7  ;;  %v3491_v56 = vadd.f32 %v3452_v55, %v1753_v34  ;;  %v1570_v60 = vadd.f32 %v1537_v0, %v1492_v26 }
 0x1c7   : > { %v1891_v8 = vor.u32 1.1754944e-38, %v1890_v30  ;;  %vm1889_vm12 = vcmp.eq.f32.partialorder %v1888_v41, 8.507059e+37 }
 0x1c8   : > { %v2578_v10 = vpop.eup %2577  ;;  %v2153_v57 = vpack.c.bf16 %v2137_v14, %v2137_v14  ;;  %v1868_v12 = vadd.f32 %v2576_v25, %v1867_v52  ;;  %v1721_v35 = vpop.f32.mrf.mxu0  ;;  %v2454_v9 = vmul.f32 -1.442695, %v3491_v56 }
 0x1c9   : > { %v2580_v63 = vpop.eup %2579  ;;  %v3494_v5 = vadd.f32 1.0, %v2578_v10  ;;  %v1637_v3 = vpop.f32.mrf.mxu3 }
 0x1ca   : > { %2169 = vst.msk [vmem:[%s2768_s12] sm:$0xf] %vm259_vm0, %v2153_v57  ;;  %v1872_v59 = vsel %vm1871_vm7, %v2576_v25, %v1868_v12  ;;  %v1880_v51 = vmul.f32 %v2580_v63, %v3481_v44  ;;  %v1464_v17 = vpop.f32.mrf.mxu1  ;;  %v1670_v11 = vadd.f32 %v1637_v3, %v1570_v60  ;;  %vm1885_vm9 = vweird.f32 %v2580_v63 }
 0x1cb   : > { %v1877_v45 = vsel %vm1874_vm8, %v1876_v61, %v1872_v59  ;;  %2581 = vrcp.f32 %v3494_v5  ;;  %vm1886_vm11 = vmor %vm1884_vm10, %vm1885_vm9  ;;  %v2489_v25 = vunpack.c.l.bf16 %v2515_v49  ;;  %v1903_v54 = vand.u32 2147483647, %v3494_v5 }
 0x1cc   : > { %v2090_v46 = vmul.f32 %v1877_v45, %v3461_v2  ;;  %v1881_v31 = vsub.f32 1.0, %v1880_v51  ;;  %2583 = vpow2.f32 %v2454_v9  ;;  %v1754_v18 = vadd.f32 %v1721_v35, %v1670_v11 }
 0x1cd   : > { %v1540_v53 = vpop.f32.mrf.mxu2  ;;  %v1905_v14 = vand.u32 2147483648, %v3494_v5  ;;  %v1494_v52 = vadd.f32 %v1464_v17, %v3375_v19  ;;  %vm1899_vm14 = vweird.f32 %v3494_v5  ;;  %v2490_v19 = vunpack.c.h.bf16 %v2515_v49 }
 0x1ce   : > { %v2138_v13 = vadd.f32 %v2486_v62, %v2090_v46  ;;  %v1882_v28 = vmul.f32 %v2580_v63, %v1881_v31  ;;  %v1571_v32 = vadd.f32 %v1540_v53, %v1493_v36  ;;  %v3508_v21 = vadd.f32 %v3452_v55, %v1754_v18 }
 0x1cf   : > { %v1906_v62 = vor.u32 1.1754944e-38, %v1905_v14  ;;  %vm1904_vm1 = vcmp.eq.f32.partialorder %v1903_v54, 8.507059e+37 }
 0x1d0   : > { %v2154_v4 = vpack.c.bf16 %v2138_v13, %v2138_v13  ;;  %v1883_v38 = vadd.f32 %v2580_v63, %v1882_v28  ;;  %v1724_v2 = vpop.f32.mrf.mxu0  ;;  %v2455_v7 = vmul.f32 -1.442695, %v3508_v21 }
 0x1d1   : > { %v2582_v23 = vpop.eup %2581  ;;  %v1640_v43 = vpop.f32.mrf.mxu3 }
 0x1d2   : > { %v2584_v50 = vpop.eup %2583  ;;  %2170 = vst.msk [vmem:[%s2768_s12 + $0x4] sm:$0xf] %vm259_vm0, %v2154_v4  ;;  %v1887_v1 = vsel %vm1886_vm11, %v2580_v63, %v1883_v38  ;;  %v1895_v15 = vmul.f32 %v2582_v23, %v3494_v5  ;;  %v1671_v40 = vadd.f32 %v1640_v43, %v1571_v32  ;;  %v1467_v29 = vpop.f32.mrf.mxu1  ;;  %vm1900_vm13 = vweird.f32 %v2582_v23 }
 0x1d3   : > { %v1892_v27 = vsel %vm1889_vm12, %v1891_v8, %v1887_v1  ;;  %v3513_v44 = vadd.f32 1.0, %v2584_v50  ;;  %vm1901_vm15 = vmor %vm1899_vm14, %vm1900_vm13  ;;  %v1495_v36 = vadd.f32 %v1467_v29, %v3384_v33 }
 0x1d4   : > { %v2091_v37 = vmul.f32 %v1892_v27, %v3466_v24  ;;  %v1896_v58 = vsub.f32 1.0, %v1895_v15  ;;  %v1755_v0 = vadd.f32 %v1724_v2, %v1671_v40  ;;  %v3542_v2 = vld [vmem:[%s2763_s9 + $0x10] sm:$0xff]  }
 0x1d5   : > { %2585 = vrcp.f32 %v3513_v44  ;;  %v1542_v34 = vpop.f32.mrf.mxu2  ;;  %v1918_v49 = vand.u32 2147483647, %v3513_v44  ;;  %vm1914_vm3 = vweird.f32 %v3513_v44  ;;  %v2493_v40 = vunpack.c.l.bf16 %v3542_v2 }
 0x1d6   : > { %v2139_v26 = vadd.f32 %v2489_v25, %v2091_v37  ;;  %v1897_v10 = vmul.f32 %v2582_v23, %v1896_v58  ;;  %2587 = vpow2.f32 %v2455_v7  ;;  %v3522_v57 = vadd.f32 %v3452_v55, %v1755_v0 }
 0x1d7   : > { %v1572_v24 = vadd.f32 %v1542_v34, %v1494_v52  ;;  %vm1919_vm5 = vcmp.eq.f32.partialorder %v1918_v49, 8.507059e+37 }
 0x1d8   : > { %v2155_v12 = vpack.c.bf16 %v2139_v26, %v2139_v26  ;;  %v1898_v35 = vadd.f32 %v2582_v23, %v1897_v10  ;;  %v2456_v63 = vmul.f32 -1.442695, %v3522_v57  ;;  %v1726_v61 = vpop.f32.mrf.mxu0 }
 0x1d9   : > { %v1642_v60 = vpop.f32.mrf.mxu3 }
 0x1da   : > { %2171 = vst.msk [vmem:[%s2768_s12 + $0x8] sm:$0xf] %vm259_vm0, %v2155_v12  ;;  %v1902_v3 = vsel %vm1901_vm15, %v2582_v23, %v1898_v35  ;;  %2589 = vpow2.f32 %v2456_v63  ;;  %v1672_v59 = vadd.f32 %v1642_v60, %v1572_v24  ;;  %v1469_v51 = vpop.f32.mrf.mxu1 }
 0x1db   : > { %v2586_v9 = vpop.eup %2585  ;;  %v1907_v17 = vsel %vm1904_vm1, %v1906_v62, %v1902_v3  ;;  %v1496_v0 = vadd.f32 %v1469_v51, %v3389_v48 }
 0x1dc   : > { %v2588_v45 = vpop.eup %2587  ;;  %v2092_v5 = vmul.f32 %v1907_v17, %v3476_v39  ;;  %v1910_v46 = vmul.f32 %v2586_v9, %v3513_v44  ;;  %v1756_v31 = vadd.f32 %v1726_v61, %v1672_v59  ;;  %v1920_v39 = vand.u32 2147483648, %v3513_v44 }
 0x1dd   : > { %v3532_v41 = vadd.f32 1.0, %v2588_v45  ;;  %v1545_v30 = vpop.f32.mrf.mxu2  ;;  %vm1915_vm2 = vweird.f32 %v2586_v9  ;;  %v2494_v59 = vunpack.c.h.bf16 %v3542_v2 }
 0x1de   : > { %v2140_v11 = vadd.f32 %v2490_v19, %v2092_v5  ;;  %v1911_v53 = vsub.f32 1.0, %v1910_v46  ;;  %v3535_v13 = vadd.f32 %v3452_v55, %v1756_v31  ;;  %v1573_v28 = vadd.f32 %v1545_v30, %v1495_v36  ;;  %vm1916_vm4 = vmor %vm1914_vm3, %vm1915_vm2 }
 0x1df   : > { %2591 = vrcp.f32 %v3532_v41  ;;  %v1921_v1 = vor.u32 1.1754944e-38, %v1920_v39  ;;  %v1933_v14 = vand.u32 2147483647, %v3532_v41  ;;  %vm1929_vm7 = vweird.f32 %v3532_v41 }
 0x1e0   : > { %v2590_v32 = vpop.eup %2589  ;;  %v2156_v18 = vpack.c.bf16 %v2140_v11, %v2140_v11  ;;  %v1912_v33 = vmul.f32 %v2586_v9, %v1911_v53  ;;  %v2457_v4 = vmul.f32 -1.442695, %v3535_v13  ;;  %v1729_v38 = vpop.f32.mrf.mxu0  ;;  %v3576_v11 = vld [vmem:[%s2763_s9 + $0x18] sm:$0xff]  }
 0x1e1   : > { %v3544_v23 = vadd.f32 1.0, %v2590_v32  ;;  %v1645_v8 = vpop.f32.mrf.mxu3  ;;  %vm3564_vm8 = vcmp.eq.f32.partialorder %v1933_v14, 8.507059e+37 }
 0x1e2   : > { %2172 = vst.msk [vmem:[%s2768_s12 + $0xc] sm:$0xf] %vm259_vm0, %v2156_v18  ;;  %v1913_v25 = vadd.f32 %v2586_v9, %v1912_v33  ;;  %2593 = vpow2.f32 %v2457_v4  ;;  %v1673_v43 = vadd.f32 %v1645_v8, %v1573_v28  ;;  %v1472_v50 = vpop.f32.mrf.mxu1 }
 0x1e3   : > { %2595 = vrcp.f32 %v3544_v23  ;;  %v1948_v5 = vand.u32 2147483647, %v3544_v23  ;;  %v1950_v46 = vand.u32 2147483648, %v3544_v23  ;;  %v1497_v31 = vadd.f32 %v1472_v50, %v3407_v47 }
 0x1e4   : > { %v1917_v15 = vsel %vm1916_vm4, %v2586_v9, %v1913_v25  ;;  %v1757_v29 = vadd.f32 %v1729_v38, %v1673_v43  ;;  %vm1944_vm11 = vweird.f32 %v3544_v23  ;;  %v2497_v38 = vunpack.c.l.bf16 %v3576_v11 }
 0x1e5   : > { %v2592_v27 = vpop.eup %2591  ;;  %v1922_v7 = vsel %vm1919_vm5, %v1921_v1, %v1917_v15  ;;  %v1547_v37 = vpop.f32.mrf.mxu2  ;;  %v1951_v4 = vor.u32 1.1754944e-38, %v1950_v46  ;;  %vm1949_vm13 = vcmp.eq.f32.partialorder %v1948_v5, 8.507059e+37 }
 0x1e6   : > { %v2093_v58 = vmul.f32 %v1922_v7, %v3491_v56  ;;  %v1925_v54 = vmul.f32 %v2592_v27, %v3532_v41  ;;  %v3554_v44 = vadd.f32 %v3452_v55, %v1757_v29  ;;  %v1574_v12 = vadd.f32 %v1547_v37, %v1496_v0 }
 0x1e7   : > { %v1935_v56 = vand.u32 2147483648, %v3532_v41  ;;  %vm1930_vm6 = vweird.f32 %v2592_v27 }
 0x1e8   : > { %v2594_v52 = vpop.eup %2593  ;;  %v2141_v34 = vadd.f32 %v2493_v40, %v2093_v58  ;;  %v1926_v26 = vsub.f32 1.0, %v1925_v54  ;;  %v2458_v10 = vmul.f32 -1.442695, %v3554_v44  ;;  %v1731_v24 = vpop.f32.mrf.mxu0  ;;  %vm1931_vm9 = vmor %vm1929_vm7, %vm1930_vm6 }
 0x1e9   : > { %v2596_v35 = vpop.eup %2595  ;;  %v3560_v63 = vadd.f32 1.0, %v2594_v52  ;;  %v1647_v61 = vpop.f32.mrf.mxu3  ;;  %v1936_v45 = vor.u32 1.1754944e-38, %v1935_v56 }
 0x1ea   : > { %v2157_v62 = vpack.c.bf16 %v2141_v34, %v2141_v34  ;;  %v1927_v19 = vmul.f32 %v2592_v27, %v1926_v26  ;;  %v1940_v48 = vmul.f32 %v2596_v35, %v3544_v23  ;;  %v1474_v60 = vpop.f32.mrf.mxu1  ;;  %v1674_v17 = vadd.f32 %v1647_v61, %v1574_v12 }
 0x1eb   : > { %2597 = vrcp.f32 %v3560_v63  ;;  %vm1945_vm10 = vweird.f32 %v2596_v35  ;;  %v1963_v7 = vand.u32 2147483647, %v3560_v63  ;;  %v1965_v58 = vand.u32 2147483648, %v3560_v63 }
 0x1ec   : > { %2173 = vst.msk [vmem:[%s2768_s12 + $0x10] sm:$0xf] %vm259_vm0, %v2157_v62  ;;  %v1928_v51 = vadd.f32 %v2592_v27, %v1927_v19  ;;  %v1941_v9 = vsub.f32 1.0, %v1940_v48  ;;  %2599 = vpow2.f32 %v2458_v10  ;;  %v1758_v53 = vadd.f32 %v1731_v24, %v1674_v17  ;;  %vm1946_vm12 = vmor %vm1944_vm11, %vm1945_vm10 }
 0x1ed   : > { %v1550_v36 = vpop.f32.mrf.mxu2  ;;  %v1498_v54 = vadd.f32 %v1474_v60, %v3418_v42  ;;  %vm1959_vm15 = vweird.f32 %v3560_v63  ;;  %v1966_v42 = vor.u32 1.1754944e-38, %v1965_v58  ;;  %vm1964_vm2 = vcmp.eq.f32.partialorder %v1963_v7, 8.507059e+37 }
 0x1ee   : > { %v1932_v41 = vsel %vm1931_vm9, %v2592_v27, %v1928_v51  ;;  %v1942_v30 = vmul.f32 %v2596_v35, %v1941_v9  ;;  %v1575_v49 = vadd.f32 %v1550_v36, %v1497_v31  ;;  %v3583_v18 = vadd.f32 %v3452_v55, %v1758_v53  ;;  %v3615_v53 = vld [vmem:[%s2763_s9 + $0x20] sm:$0xff]  }
 0x1ef   : > { %v1937_v28 = vsel %vm3564_vm8, %v1936_v45, %v1932_v41 }
 0x1f0   : > { %v2094_v39 = vmul.f32 %v1937_v28, %v3508_v21  ;;  %v1943_v32 = vadd.f32 %v2596_v35, %v1942_v30  ;;  %v1734_v47 = vpop.f32.mrf.mxu0  ;;  %v2459_v23 = vmul.f32 -1.442695, %v3583_v18 }
 0x1f1   : > { %v2598_v33 = vpop.eup %2597  ;;  %v1650_v2 = vpop.f32.mrf.mxu3 }
 0x1f2   : > { %v2600_v8 = vpop.eup %2599  ;;  %v2142_v25 = vadd.f32 %v2494_v59, %v2094_v39  ;;  %v1947_v43 = vsel %vm1946_vm12, %v2596_v35, %v1943_v32  ;;  %v1955_v21 = vmul.f32 %v2598_v33, %v3560_v63  ;;  %v1675_v15 = vadd.f32 %v1650_v2, %v1575_v49  ;;  %v1477_v37 = vpop.f32.mrf.mxu1 }
 0x1f3   : > { %v1952_v50 = vsel %vm1949_vm13, %v1951_v4, %v1947_v43  ;;  %v3587_v1 = vadd.f32 1.0, %v2600_v8  ;;  %vm1960_vm14 = vweird.f32 %v2598_v33  ;;  %v2498_v35 = vunpack.c.h.bf16 %v3576_v11 }
 0x1f4   : > { %v2158_v40 = vpack.c.bf16 %v2142_v25, %v2142_v25  ;;  %v2095_v29 = vmul.f32 %v1952_v50, %v3522_v57  ;;  %v1956_v27 = vsub.f32 1.0, %v1955_v21  ;;  %v1759_v34 = vadd.f32 %v1734_v47, %v1675_v15  ;;  %vm1961_vm1 = vmor %vm1959_vm15, %vm1960_vm14 }
 0x1f5   : > { %2601 = vrcp.f32 %v3587_v1  ;;  %v1552_v0 = vpop.f32.mrf.mxu2  ;;  %v1499_v51 = vadd.f32 %v1477_v37, %v3430_v22  ;;  %v1978_v41 = vand.u32 2147483647, %v3587_v1  ;;  %v1980_v30 = vand.u32 2147483648, %v3587_v1 }
 0x1f6   : > { %2174 = vst.msk [vmem:[%s2768_s12 + $0x14] sm:$0xf] %vm259_vm0, %v2158_v40  ;;  %v2143_v14 = vadd.f32 %v2497_v38, %v2095_v29  ;;  %v1957_v52 = vmul.f32 %v2598_v33, %v1956_v27  ;;  %2603 = vpow2.f32 %v2459_v23  ;;  %v1576_v57 = vadd.f32 %v1552_v0, %v1498_v54 }
 0x1f7   : > { %v3599_v24 = vadd.f32 %v3452_v55, %v1759_v34  ;;  %vm1974_vm4 = vweird.f32 %v3587_v1  ;;  %v1981_v4 = vor.u32 1.1754944e-38, %v1980_v30  ;;  %v2501_v38 = vunpack.c.l.bf16 %v3615_v53 }
 0x1f8   : > { %v2159_v26 = vpack.c.bf16 %v2143_v14, %v2143_v14  ;;  %v1958_v10 = vadd.f32 %v2598_v33, %v1957_v52  ;;  %v1736_v12 = vpop.f32.mrf.mxu0  ;;  %vm1979_vm6 = vcmp.eq.f32.partialorder %v1978_v41, 8.507059e+37 }
 0x1f9   : > { %v1652_v56 = vpop.f32.mrf.mxu3  ;;  %v2460_v62 = vmul.f32 -1.442695, %v3599_v24 }
 0x1fa   : > { %2175 = vst.msk [vmem:[%s2768_s12 + $0x18] sm:$0xf] %vm259_vm0, %v2159_v26  ;;  %v1962_v61 = vsel %vm1961_vm1, %v2598_v33, %v1958_v10  ;;  %v1676_v19 = vadd.f32 %v1652_v56, %v1576_v57  ;;  %v1479_v36 = vpop.f32.mrf.mxu1 }
 0x1fb   : > { %v2602_v48 = vpop.eup %2601  ;;  %v1967_v60 = vsel %vm1964_vm2, %v1966_v42, %v1962_v61  ;;  %2605 = vpow2.f32 %v2460_v62  ;;  %v1500_v50 = vadd.f32 %v1479_v36, %v3439_v6  ;;  %v2502_v61 = vunpack.c.h.bf16 %v3615_v53 }
 0x1fc   : > { %v2604_v63 = vpop.eup %2603  ;;  %v2096_v3 = vmul.f32 %v1967_v60, %v3535_v13  ;;  %v1970_v59 = vmul.f32 %v2602_v48, %v3587_v1  ;;  %v1760_v17 = vadd.f32 %v1736_v12, %v1676_v19  ;;  %vm1975_vm3 = vweird.f32 %v2602_v48 }
 0x1fd   : > { %v3609_v9 = vadd.f32 1.0, %v2604_v63  ;;  %v1555_v45 = vpop.f32.mrf.mxu2  ;;  %vm1976_vm5 = vmor %vm1974_vm4, %vm1975_vm3 }
 0x1fe   : > { %v2144_v5 = vadd.f32 %v2498_v35, %v2096_v3  ;;  %v1971_v46 = vsub.f32 1.0, %v1970_v59  ;;  %v1577_v31 = vadd.f32 %v1555_v45, %v1499_v51  ;;  %v3618_v22 = vadd.f32 %v3452_v55, %v1760_v17 }
 0x1ff   : > { %2607 = vrcp.f32 %v3609_v9  ;;  %v1993_v54 = vand.u32 2147483647, %v3609_v9  ;;  %v1995_v0 = vand.u32 2147483648, %v3609_v9  ;;  %vm1989_vm8 = vweird.f32 %v3609_v9 }
 0x200   : > { %v2160_v13 = vpack.c.bf16 %v2144_v5, %v2144_v5  ;;  %v1972_v11 = vmul.f32 %v2602_v48, %v1971_v46  ;;  %v1739_v28 = vpop.f32.mrf.mxu0  ;;  %v2461_v47 = vmul.f32 -1.442695, %v3618_v22  ;;  %v2519_v5 = vld [vmem:[%s2763_s9 + $0x28] sm:$0xff]  }
 0x201   : > { %v1655_v49 = vpop.f32.mrf.mxu3  ;;  %v2606_v39 = vpop.eup %2605  ;;  %v1996_v56 = vor.u32 1.1754944e-38, %v1995_v0  ;;  %vm1994_vm10 = vcmp.eq.f32.partialorder %v1993_v54, 8.507059e+37 }
 0x202   : > { %2176 = vst.msk [vmem:[%s2768_s12 + $0x1c] sm:$0xf] %vm259_vm0, %v2160_v13  ;;  %v1973_v32 = vadd.f32 %v2602_v48, %v1972_v11  ;;  %v1677_v33 = vadd.f32 %v1655_v49, %v1577_v31  ;;  %v3625_v2 = vadd.f32 1.0, %v2606_v39  ;;  %2609 = vpow2.f32 %v2461_v47  ;;  %v1482_v58 = vpop.f32.mrf.mxu1 }
 0x203   : > { %v1501_v62 = vadd.f32 %v1482_v58, %v3444_v16 }
 0x204   : > { %v1977_v8 = vsel %vm1976_vm5, %v2602_v48, %v1973_v32  ;;  %v1761_v25 = vadd.f32 %v1739_v28, %v1677_v33  ;;  %2611 = vrcp.f32 %v3625_v2  ;;  %v2008_v59 = vand.u32 2147483647, %v3625_v2 }
 0x205   : > { %v2608_v43 = vpop.eup %2607  ;;  %v1982_v21 = vsel %vm1979_vm6, %v1981_v4, %v1977_v8  ;;  %v1557_v1 = vpop.f32.mrf.mxu2  ;;  %v2010_v51 = vand.u32 2147483648, %v3625_v2  ;;  %vm2004_vm12 = vweird.f32 %v3625_v2  ;;  %v2505_v28 = vunpack.c.l.bf16 %v2519_v5 }
 0x206   : > { %v2097_v23 = vmul.f32 %v1982_v21, %v3554_v44  ;;  %v1985_v15 = vmul.f32 %v2608_v43, %v3609_v9  ;;  %v3632_v40 = vadd.f32 %v3452_v55, %v1761_v25  ;;  %v1578_v29 = vadd.f32 %v1557_v1, %v1500_v50 }
 0x207   : > { %vm1990_vm7 = vweird.f32 %v2608_v43  ;;  %vm2009_vm14 = vcmp.eq.f32.partialorder %v2008_v59, 8.507059e+37 }
 0x208   : > { %v2145_v27 = vadd.f32 %v2501_v38, %v2097_v23  ;;  %v1986_v7 = vsub.f32 1.0, %v1985_v15  ;;  %v1741_v37 = vpop.f32.mrf.mxu0  ;;  %v2462_v6 = vmul.f32 -1.442695, %v3632_v40  ;;  %v2610_v52 = vpop.eup %2609  ;;  %vm1991_vm9 = vmor %vm1989_vm8, %vm1990_vm7 }
 0x209   : > { %v1657_v14 = vpop.f32.mrf.mxu3  ;;  %v3637_v10 = vadd.f32 1.0, %v2610_v52 }
 0x20a   : > { %v2161_v44 = vpack.c.bf16 %v2145_v27, %v2145_v27  ;;  %v1987_v34 = vmul.f32 %v2608_v43, %v1986_v7  ;;  %v1678_v57 = vadd.f32 %v1657_v14, %v1578_v29  ;;  %v2612_v26 = vpop.eup %2611  ;;  %2613 = vpow2.f32 %v2462_v6  ;;  %v1484_v11 = vpop.f32.mrf.mxu1 }
 0x20b   : > { %v2000_v42 = vmul.f32 %v2612_v26, %v3625_v2  ;;  %2615 = vrcp.f32 %v3637_v10  ;;  %vm2005_vm11 = vweird.f32 %v2612_v26  ;;  %v1502_v4 = vadd.f32 %v1484_v11, %v3447_v20 }
 0x20c   : > { %2177 = vst.msk [vmem:[%s2768_s12 + $0x20] sm:$0xf] %vm259_vm0, %v2161_v44  ;;  %v1988_v12 = vadd.f32 %v2608_v43, %v1987_v34  ;;  %v1762_v35 = vadd.f32 %v1741_v37, %v1678_v57  ;;  %vm2006_vm13 = vmor %vm2004_vm12, %vm2005_vm11  ;;  %v2025_v21 = vand.u32 2147483648, %v3637_v10  ;;  %vm2019_vm1 = vweird.f32 %v3637_v10 }
 0x20d   : > { %v1560_v19 = vpop.f32.mrf.mxu2  ;;  %v2001_v60 = vsub.f32 1.0, %v2000_v42  ;;  %v2506_v6 = vunpack.c.h.bf16 %v2519_v5 }
 0x20e   : > { %v1992_v48 = vsel %vm1991_vm9, %v2608_v43, %v1988_v12  ;;  %v3647_v63 = vadd.f32 %v3452_v55, %v1762_v35  ;;  %v1579_v9 = vadd.f32 %v1560_v19, %v1501_v62  ;;  %v2023_v43 = vand.u32 2147483647, %v3637_v10  ;;  %v2520_v19 = vld [vmem:[%s2763_s9 + $0x30] sm:$0xff]  }
 0x20f   : > { %v1997_v3 = vsel %vm1994_vm10, %v1996_v56, %v1992_v48  ;;  %v2002_v45 = vmul.f32 %v2612_v26, %v2001_v60  ;;  %v2026_v0 = vor.u32 1.1754944e-38, %v2025_v21 }
 0x210   : > { %v2098_v17 = vmul.f32 %v1997_v3, %v3583_v18  ;;  %v2463_v16 = vmul.f32 -1.442695, %v3647_v63  ;;  %v2614_v46 = vpop.eup %2613  ;;  %v1744_v13 = vpop.f32.mrf.mxu0  ;;  %v2011_v18 = vor.u32 1.1754944e-38, %v2010_v51  ;;  %vm2024_vm3 = vcmp.eq.f32.partialorder %v2023_v43, 8.507059e+37  ;;  %v2521_v43 = vld [vmem:[%s2763_s9 + $0x38] sm:$0xff]  }
 0x211   : > { %v1660_v31 = vpop.f32.mrf.mxu3  ;;  %v2003_v41 = vadd.f32 %v2612_v26, %v2002_v45  ;;  %v3655_v30 = vadd.f32 1.0, %v2614_v46  ;;  %v2616_v53 = vpop.eup %2615 }
 0x212   : > { %v2146_v36 = vadd.f32 %v2502_v61, %v2098_v17  ;;  %2617 = vpow2.f32 %v2463_v16  ;;  %v1679_v49 = vadd.f32 %v1660_v31, %v1579_v9  ;;  %v2015_v47 = vmul.f32 %v2616_v53, %v3637_v10 }
 0x213   : > { %v2007_v32 = vsel %vm2006_vm13, %v2612_v26, %v2003_v41  ;;  %2619 = vrcp.f32 %v3655_v30  ;;  %vm2020_vm15 = vweird.f32 %v2616_v53  ;;  %v2040_v12 = vand.u32 2147483648, %v3655_v30 }
 0x214   : > { %v2162_v39 = vpack.c.bf16 %v2146_v36, %v2146_v36  ;;  %v2012_v33 = vsel %vm2009_vm14, %v2011_v18, %v2007_v32  ;;  %v2016_v8 = vsub.f32 1.0, %v2015_v47  ;;  %v1763_v25 = vadd.f32 %v1744_v13, %v1679_v49  ;;  %vm2021_vm2 = vmor %vm2019_vm1, %vm2020_vm15 }
 0x215   : > { %v1562_v38 = vpop.f32.mrf.mxu2  ;;  %v2099_v2 = vmul.f32 %v2012_v33, %v3599_v24  ;;  %v2038_v61 = vand.u32 2147483647, %v3655_v30  ;;  %vm2034_vm5 = vweird.f32 %v3655_v30  ;;  %v2041_v51 = vor.u32 1.1754944e-38, %v2040_v12 }
 0x216   : > { %2178 = vst.msk [vmem:[%s2768_s12 + $0x24] sm:$0xf] %vm259_vm0, %v2162_v39  ;;  %v1580_v50 = vadd.f32 %v1562_v38, %v1502_v4  ;;  %v2017_v15 = vmul.f32 %v2616_v53, %v2016_v8  ;;  %v3666_v29 = vadd.f32 %v3452_v55, %v1763_v25  ;;  %v2509_v17 = vunpack.c.l.bf16 %v2520_v19 }
 0x217   : > { %v2147_v23 = vadd.f32 %v2505_v28, %v2099_v2  ;;  %vm2039_vm7 = vcmp.eq.f32.partialorder %v2038_v61, 8.507059e+37 }
 0x218   : > { %v2618_v1 = vpop.eup %2617  ;;  %v2018_v7 = vadd.f32 %v2616_v53, %v2017_v15  ;;  %v2464_v37 = vmul.f32 -1.442695, %v3666_v29  ;;  %v1746_v44 = vpop.f32.mrf.mxu0 }
 0x219   : > { %v1846_v20 = vadd.f32 1.0, %v2618_v1  ;;  %v1662_v27 = vpop.f32.mrf.mxu3  ;;  %v2163_v24 = vpack.c.bf16 %v2147_v23, %v2147_v23  ;;  %v2620_v54 = vpop.eup %2619 }
 0x21a   : > { %v1680_v58 = vadd.f32 %v1662_v27, %v1580_v50  ;;  %v2022_v14 = vsel %vm2021_vm2, %v2616_v53, %v2018_v7  ;;  %v2030_v52 = vmul.f32 %v2620_v54, %v3655_v30  ;;  %vm2035_vm4 = vweird.f32 %v2620_v54 }
 0x21b   : > { %2621 = vrcp.f32 %v1846_v20  ;;  %2179 = vst.msk [vmem:[%s2768_s12 + $0x28] sm:$0xf] %vm259_vm0, %v2163_v24  ;;  %v2027_v34 = vsel %vm2024_vm3, %v2026_v0, %v2022_v14  ;;  %vm2036_vm6 = vmor %vm2034_vm5, %vm2035_vm4  ;;  %v2055_v16 = vand.u32 2147483648, %v1846_v20  ;;  %v2053_v36 = vand.u32 2147483647, %v1846_v20 }
 0x21c   : > { %2623 = vpow2.f32 %v2464_v37  ;;  %v1764_v57 = vadd.f32 %v1746_v44, %v1680_v58  ;;  %v2100_v26 = vmul.f32 %v2027_v34, %v3618_v22  ;;  %v2031_v10 = vsub.f32 1.0, %v2030_v52 }
 0x21d   : > { %vm2049_vm9 = vweird.f32 %v1846_v20  ;;  %v2056_v11 = vor.u32 1.1754944e-38, %v2055_v16  ;;  %v2510_v53 = vunpack.c.h.bf16 %v2520_v19  ;;  %vm2054_vm11 = vcmp.eq.f32.partialorder %v2053_v36, 8.507059e+37 }
 0x21e   : > { %v3676_v42 = vadd.f32 %v3452_v55, %v1764_v57  ;;  %v2148_v35 = vadd.f32 %v2506_v6, %v2100_v26  ;;  %v2032_v56 = vmul.f32 %v2620_v54, %v2031_v10  ;;  %v2514_v44 = vunpack.c.h.bf16 %v2521_v43 }
 0x220   : > { %v2465_v48 = vmul.f32 -1.442695, %v3676_v42  ;;  %v2164_v3 = vpack.c.bf16 %v2148_v35, %v2148_v35  ;;  %v2033_v59 = vadd.f32 %v2620_v54, %v2032_v56 }
 0x221   : > { %v2622_v62 = vpop.eup %2621 }
 0x222   : > { %v2624_v60 = vpop.eup %2623  ;;  %v2045_v22 = vmul.f32 %v2622_v62, %v1846_v20  ;;  %2625 = vpow2.f32 %v2465_v48  ;;  %2180 = vst.msk [vmem:[%s2768_s12 + $0x2c] sm:$0xf] %vm259_vm0, %v2164_v3  ;;  %v2037_v9 = vsel %vm2036_vm6, %v2620_v54, %v2033_v59  ;;  %vm2050_vm8 = vweird.f32 %v2622_v62 }
 0x223   : > { %v1847_v55 = vadd.f32 1.0, %v2624_v60  ;;  %v2042_v5 = vsel %vm2039_vm7, %v2041_v51, %v2037_v9  ;;  %vm2051_vm10 = vmor %vm2049_vm9, %vm2050_vm8 }
 0x224   : > { %v2046_v45 = vsub.f32 1.0, %v2045_v22  ;;  %v2101_v46 = vmul.f32 %v2042_v5, %v3632_v40 }
 0x225   : > { %2627 = vrcp.f32 %v1847_v55  ;;  %v2070_v38 = vand.u32 2147483648, %v1847_v55  ;;  %v2068_v25 = vand.u32 2147483647, %v1847_v55  ;;  %vm2064_vm13 = vweird.f32 %v1847_v55 }
 0x226   : > { %v2047_v31 = vmul.f32 %v2622_v62, %v2046_v45  ;;  %v2149_v41 = vadd.f32 %v2509_v17, %v2101_v46 }
 0x227   : > { %v2071_v1 = vor.u32 1.1754944e-38, %v2070_v38  ;;  %vm2069_vm15 = vcmp.eq.f32.partialorder %v2068_v25, 8.507059e+37 }
 0x228   : > { %v2048_v30 = vadd.f32 %v2622_v62, %v2047_v31  ;;  %v2626_v13 = vpop.eup %2625  ;;  %v2165_v18 = vpack.c.bf16 %v2149_v41, %v2149_v41 }
 0x229   : > { %v1848_v49 = vadd.f32 1.0, %v2626_v13 }
 0x22a   : > { %v2052_v28 = vsel %vm2051_vm10, %v2622_v62, %v2048_v30  ;;  %2181 = vst.msk [vmem:[%s2768_s12 + $0x30] sm:$0xf] %vm259_vm0, %v2165_v18 }
 0x22b   : > { %v2628_v39 = vpop.eup %2627  ;;  %v2057_v32 = vsel %vm2054_vm11, %v2056_v11, %v2052_v28  ;;  %2629 = vrcp.f32 %v1848_v49  ;;  %v2085_v7 = vand.u32 2147483648, %v1848_v49  ;;  %v2083_v58 = vand.u32 2147483647, %v1848_v49 }
 0x22c   : > { %v2102_v40 = vmul.f32 %v2057_v32, %v3647_v63  ;;  %v2060_v47 = vmul.f32 %v2628_v39, %v1847_v55  ;;  %vm2065_vm12 = vweird.f32 %v2628_v39  ;;  %v2513_v63 = vunpack.c.l.bf16 %v2521_v43 }
 0x22d   : > { %vm2066_vm14 = vmor %vm2064_vm13, %vm2065_vm12  ;;  %vm2079_vm2 = vweird.f32 %v1848_v49  ;;  %v2086_v14 = vor.u32 1.1754944e-38, %v2085_v7  ;;  %vm2084_vm4 = vcmp.eq.f32.partialorder %v2083_v58, 8.507059e+37 }
 0x22e   : > { %v2150_v33 = vadd.f32 %v2510_v53, %v2102_v40  ;;  %v2061_v4 = vsub.f32 1.0, %v2060_v47 }
 0x230   : > { %v2166_v2 = vpack.c.bf16 %v2150_v33, %v2150_v33  ;;  %v2062_v8 = vmul.f32 %v2628_v39, %v2061_v4 }
 0x231   : > { %v2630_v21 = vpop.eup %2629 }
 0x232   : > { %2182 = vst.msk [vmem:[%s2768_s12 + $0x34] sm:$0xf] %vm259_vm0, %v2166_v2  ;;  %v2063_v50 = vadd.f32 %v2628_v39, %v2062_v8  ;;  %v2075_v23 = vmul.f32 %v2630_v21, %v1848_v49  ;;  %vm2080_vm1 = vweird.f32 %v2630_v21 }
 0x233   : > { %vm2081_vm3 = vmor %vm2079_vm2, %vm2080_vm1 }
 0x234   : > { %v2067_v15 = vsel %vm2066_vm14, %v2628_v39, %v2063_v50  ;;  %v2076_v27 = vsub.f32 1.0, %v2075_v23 }
 0x235   : > { %v2072_v20 = vsel %vm2069_vm15, %v2071_v1, %v2067_v15 }
 0x236   : > { %v2103_v24 = vmul.f32 %v2072_v20, %v3666_v29  ;;  %v2077_v37 = vmul.f32 %v2630_v21, %v2076_v27 }
 0x238   : > { %v2151_v54 = vadd.f32 %v2513_v63, %v2103_v24  ;;  %v2078_v0 = vadd.f32 %v2630_v21, %v2077_v37 }
 0x23a   : > { %v2167_v6 = vpack.c.bf16 %v2151_v54, %v2151_v54  ;;  %v2082_v52 = vsel %vm2081_vm3, %v2630_v21, %v2078_v0 }
 0x23b   : > { %v2087_v34 = vsel %vm2084_vm4, %v2086_v14, %v2082_v52 }
 0x23c   : > { %2183 = vst.msk [vmem:[%s2768_s12 + $0x38] sm:$0xf] %vm259_vm0, %v2167_v6  ;;  %v2104_v57 = vmul.f32 %v2087_v34, %v3676_v42 }
 0x23e   : > { %v2152_v29 = vadd.f32 %v2514_v44, %v2104_v57 }
 0x240   : > { %v2168_v26 = vpack.c.bf16 %v2152_v29, %v2152_v29 }
 0x242   : > { %2184 = vst.msk [vmem:[%s2768_s12 + $0x3c] sm:$0xf] %vm259_vm0, %v2168_v26 }
 0x243 PF: > { %s14_s19 = sadd.s32 1, %s2669_s19   ;;  %s3729_s15 = smov %s2661_s17 }
 0x244   : > { %p11_p9 = scmp.ge.s32.totalorder %s14_s19, 6   ;;  %s3730_s16 = smov %s2665_s18 }
 0x245   : > { %s3731_s17 = smov %s3734_s20  ;;  %s3732_s18 = smov %s3738_s21 }
 0x246   :  { %13 = sbr.rel (!%p11_p9) target bundleno = 3 (0x3), region = 90 }

</bundles_post_ra>
